<compile_context>
chip_gen: v7x
topology: tpu7x:2x2x1
jax: 0.10.0
libtpu: 0.0.40
codegen_flags: <defaults>
</compile_context>

<pallas_src>
import functools

import jax
import jax.numpy as jnp
from jax.experimental import pallas as pl
from jax.experimental.pallas import tpu as pltpu

EPS = 1e-5


# ----------------------------------------------------------------------------- kernels
def _xstats_kernel(x_ref, sum_ref, sq_ref):
    """Per-channel sum / sum-of-squares of x, accumulated across T tiles."""
    @pl.when(pl.program_id(0) == 0)
    def _():
        sum_ref[...] = jnp.zeros_like(sum_ref)
        sq_ref[...] = jnp.zeros_like(sq_ref)

    b, tt, cin = x_ref.shape
    x = x_ref[...].astype(jnp.float32).reshape(b * tt, cin)
    sum_ref[...] += jnp.sum(x, axis=0, keepdims=True)
    sq_ref[...] += jnp.sum(x * x, axis=0, keepdims=True)


def _pass1_kernel(x_ref, g0_ref, b0_ref, mu0_ref, rs0_ref, w0_ref, bfc0_ref,
                  net_ref, sum_ref, sq_ref):
    """net = fc_0(relu(CBN_0(x, c))) per T tile + accumulate net statistics."""
    @pl.when(pl.program_id(0) == 0)
    def _():
        sum_ref[...] = jnp.zeros_like(sum_ref)
        sq_ref[...] = jnp.zeros_like(sq_ref)

    b, tt, cin = x_ref.shape
    h = net_ref.shape[-1]

    # CBN_0: batch-norm with precomputed global stats, then conditional affine (f32).
    x = x_ref[...].astype(jnp.float32)                              # (B, Tt, Cin)
    normed = (x - mu0_ref[...]) * rs0_ref[...]
    a0 = jnp.maximum(g0_ref[...][:, None, :] * normed + b0_ref[...][:, None, :], 0.0)

    # fc_0: flatten (B, Tt) -> one MXU M axis; bf16 operands, f32 accumulation.
    a0 = a0.reshape(b * tt, cin).astype(jnp.bfloat16)
    net = jnp.dot(a0, w0_ref[...], preferred_element_type=jnp.float32) + bfc0_ref[...]

    net16 = net.astype(jnp.bfloat16)
    net_ref[...] = net16.reshape(b, tt, h)

    # Accumulate stats from exactly the values pass 2 will normalize (f32 accum).
    netf = net16.astype(jnp.float32)
    sum_ref[...] += jnp.sum(netf, axis=0, keepdims=True)
    sq_ref[...] += jnp.sum(netf * netf, axis=0, keepdims=True)


def _make_pass2_kernel(has_shortcut: bool):
    def kernel(x_ref, net_ref, g1_ref, b1_ref, mu1_ref, rs1_ref,
               w1_ref, bfc1_ref, *rest):
        if has_shortcut:
            wsc_ref, out_ref = rest
        else:
            (out_ref,) = rest

        b, tt, h = net_ref.shape
        cout = out_ref.shape[-1]

        # CBN_1 + ReLU (f32)
        net = net_ref[...].astype(jnp.float32)                      # (B, Tt, H)
        normed = (net - mu1_ref[...]) * rs1_ref[...]
        a1 = jnp.maximum(g1_ref[...][:, None, :] * normed + b1_ref[...][:, None, :], 0.0)

        # fc_1 on the flattened (B*Tt, H) tile, bf16 MXU inputs, f32 accumulation.
        a1 = a1.reshape(b * tt, h).astype(jnp.bfloat16)
        dx = jnp.dot(a1, w1_ref[...], preferred_element_type=jnp.float32) + bfc1_ref[...]

        if has_shortcut:
            cin = x_ref.shape[-1]
            xs = jnp.dot(x_ref[...].reshape(b * tt, cin).astype(jnp.bfloat16),
                         wsc_ref[...], preferred_element_type=jnp.float32)
        else:
            xs = x_ref[...].astype(jnp.float32).reshape(b * tt, cout)

        out_ref[...] = (xs + dx).reshape(b, tt, cout).astype(out_ref.dtype)

    return kernel


# ----------------------------------------------------------------------------- wrapper
def _pick_t_tile(t):
    for cand in (1024, 512, 256, 128, 64, 32, 16, 8):
        if t % cand == 0:
            return cand
    return t


def _compiler_params(dim_sem, tile_bytes):
    # Explicit scoped-VMEM budget: double-buffered tiles + headroom for weights
    # and compiler temporaries, clamped so it is valid on v7x (64 MiB physical).
    need = 2 * tile_bytes + (8 << 20)
    return pltpu.CompilerParams(
        dimension_semantics=dim_sem,
        vmem_limit_bytes=int(min(max(need, 32 << 20), 64 << 20)),
    )


def _finish_stats(s, ss, n):
    mean = s / n
    var = jnp.maximum(ss / n - mean * mean, 0.0)   # f32 accumulation; clamp cancellation
    return mean, jax.lax.rsqrt(var + EPS)


def cresnet_block_conv1d(x, c, params, *, t_tile=None):
    """x: (B, T, size_in) channels-last; c: (B, c_dim) -> (B, T, size_out).

    Callers holding PyTorch NCL tensors transpose once at the model boundary,
    not per block (channel dims should be multiples of 128 for lane density).
    """
    B, T, Cin = x.shape
    H = params['wfc0'].shape[0]
    Cout = params['wfc1'].shape[0]
    has_shortcut = 'wsc' in params
    if not has_shortcut:
        assert Cin == Cout

    tt = t_tile or _pick_t_tile(T)
    assert T % tt == 0, (T, tt)
    nT = T // tt
    n = B * T
    f32, bf16 = jnp.float32, jnp.bfloat16
    xi = x.dtype.itemsize

    # Tiny conditional-affine params (gamma/beta over c) + weight casts: plain JAX.
    c32 = c.astype(f32)
    g0 = c32 @ params['wg0'].T.astype(f32) + params['bg0'].astype(f32)   # (B, Cin)
    b0 = c32 @ params['wb0'].T.astype(f32) + params['bb0'].astype(f32)
    g1 = c32 @ params['wg1'].T.astype(f32) + params['bg1'].astype(f32)   # (B, H)
    b1 = c32 @ params['wb1'].T.astype(f32) + params['bb1'].astype(f32)
    w0t = params['wfc0'].T.astype(bf16)                                  # (Cin, H)
    w1t = params['wfc1'].T.astype(bf16)                                  # (H, Cout)
    bfc0 = params['bfc0'].astype(f32)                                    # (1, H)
    bfc1 = params['bfc1'].astype(f32)                                    # (1, Cout)

    rep = lambda i: (0, 0)                               # resident small operands
    tile3 = lambda shape: pl.BlockSpec(shape, lambda i: (0, i, 0))

    # ---- pass 0: per-channel sum / sum-sq of x -------------------------------
    xs_sum, xs_sq = pl.pallas_call(
        _xstats_kernel,
        grid=(nT,),
        in_specs=[tile3((B, tt, Cin))],
        out_specs=[pl.BlockSpec((1, Cin), rep), pl.BlockSpec((1, Cin), rep)],
        out_shape=(jax.ShapeDtypeStruct((1, Cin), f32),
                   jax.ShapeDtypeStruct((1, Cin), f32)),
        compiler_params=_compiler_params(("arbitrary",), B * tt * Cin * xi),
        cost_estimate=pl.CostEstimate(flops=3 * n * Cin, transcendentals=0,
                                      bytes_accessed=n * Cin * xi),
    )(x)
    mu0, rs0 = _finish_stats(xs_sum, xs_sq, float(n))

    # ---- pass 1: net = fc_0(relu(CBN_0(x))) + net statistics -----------------
    x_bytes = B * tt * Cin * xi
    net_bytes = B * tt * H * 2
    net, ns_sum, ns_sq = pl.pallas_call(
        _pass1_kernel,
        grid=(nT,),
        in_specs=[tile3((B, tt, Cin)),
                  pl.BlockSpec((B, Cin), rep), pl.BlockSpec((B, Cin), rep),
                  pl.BlockSpec((1, Cin), rep), pl.BlockSpec((1, Cin), rep),
                  pl.BlockSpec((Cin, H), rep), pl.BlockSpec((1, H), rep)],
        out_specs=[tile3((B, tt, H)),
                   pl.BlockSpec((1, H), rep), pl.BlockSpec((1, H), rep)],
        out_shape=(jax.ShapeDtypeStruct((B, T, H), bf16),
                   jax.ShapeDtypeStruct((1, H), f32),
                   jax.ShapeDtypeStruct((1, H), f32)),
        compiler_params=_compiler_params(("arbitrary",), x_bytes + net_bytes),
        cost_estimate=pl.CostEstimate(
            flops=2 * n * Cin * H + 10 * n * (Cin + H), transcendentals=0,
            bytes_accessed=n * Cin * xi + n * H * 2 + Cin * H * 2),
    )(x, g0, b0, mu0, rs0, w0t, bfc0)
    mu1, rs1 = _finish_stats(ns_sum, ns_sq, float(n))

    # ---- pass 2: out = shortcut(x) + fc_1(relu(CBN_1(net))) ------------------
    out_bytes = B * tt * Cout * xi
    in_specs = [tile3((B, tt, Cin)), tile3((B, tt, H)),
                pl.BlockSpec((B, H), rep), pl.BlockSpec((B, H), rep),
                pl.BlockSpec((1, H), rep), pl.BlockSpec((1, H), rep),
                pl.BlockSpec((H, Cout), rep), pl.BlockSpec((1, Cout), rep)]
    args = [x, net, g1, b1, mu1, rs1, w1t, bfc1]
    flops2 = 2 * n * H * Cout + 10 * n * (H + Cout)
    if has_shortcut:
        in_specs.append(pl.BlockSpec((Cin, Cout), rep))
        args.append(params['wsc'].T.astype(bf16))
        flops2 += 2 * n * Cin * Cout

    out = pl.pallas_call(
        _make_pass2_kernel(has_shortcut),
        grid=(nT,),
        in_specs=in_specs,
        out_specs=tile3((B, tt, Cout)),
        out_shape=jax.ShapeDtypeStruct((B, T, Cout), x.dtype),
        compiler_params=_compiler_params(("parallel",), x_bytes + net_bytes + out_bytes),
        cost_estimate=pl.CostEstimate(
            flops=flops2, transcendentals=0,
            bytes_accessed=n * (Cin * xi + H * 2 + Cout * xi)),
    )(*args)
    return out


# ----------------------------------------------------------------------------- reference / test
def reference(x, c, params):
    """Pure-f32, channels-last mirror of the PyTorch forward (training-mode BN)."""
    def cbn(h, wg, bg, wb, bb):
        gamma = c @ wg.T + bg
        beta = c @ wb.T + bb
        mean = h.mean(axis=(0, 1), keepdims=True)
        var = ((h - mean) ** 2).mean(axis=(0, 1), keepdims=True)
        return gamma[:, None, :] * (h - mean) * jax.lax.rsqrt(var + EPS) + beta[:, None, :]

    def conv1x1(h, w, b=None):
        y = jnp.einsum('btc,oc->bto', h, w)
        return y if b is None else y + b[None]

    a0 = jax.nn.relu(cbn(x, params['wg0'], params['bg0'], params['wb0'], params['bb0']))
    net = conv1x1(a0, params['wfc0'], params['bfc0'])
    a1 = jax.nn.relu(cbn(net, params['wg1'], params['bg1'], params['wb1'], params['bb1']))
    dx = conv1x1(a1, params['wfc1'], params['bfc1'])
    x_s = conv1x1(x, params['wsc']) if 'wsc' in params else x
    return x_s + dx


def make_params(key, c_dim, size_in, size_h, size_out):
    # Synthetic parameters (the module's default init zeroes the conditioning and
    # fc_1.weight; small random values exercise the whole compute path instead).
    ks = jax.random.split(key, 11)
    f32 = jnp.float32
    p = {
        'wg0': 0.1 * jax.random.normal(ks[0], (size_in, c_dim), f32),
        'bg0': 1.0 + 0.1 * jax.random.normal(ks[1], (1, size_in), f32),
        'wb0': 0.1 * jax.random.normal(ks[2], (size_in, c_dim), f32),
        'bb0': 0.1 * jax.random.normal(ks[3], (1, size_in), f32),
        'wfc0': 0.1 * jax.random.normal(ks[4], (size_h, size_in), f32),
        'bfc0': 0.1 * jax.random.normal(ks[5], (1, size_h), f32),
        'wg1': 0.1 * jax.random.normal(ks[6], (size_h, c_dim), f32),
        'bg1': 1.0 + 0.1 * jax.random.normal(ks[7], (1, size_h), f32),
        'wb1': 0.1 * jax.random.normal(ks[8], (size_h, c_dim), f32),
        'bb1': 0.1 * jax.random.normal(ks[9], (1, size_h), f32),
        'wfc1': 0.1 * jax.random.normal(ks[10], (size_out, size_h), f32),
        'bfc1': jnp.zeros((1, size_out), f32),
    }
    if size_in != size_out:
        p['wsc'] = 0.1 * jax.random.normal(
            jax.random.fold_in(key, 99), (size_out, size_in), f32)
    return p


if __name__ == "__main__":
    B, c_dim, T = 2, 16, 512
    key = jax.random.PRNGKey(0)

    # Lane-aligned channel widths; second config exercises the identity shortcut.
    for size_in, size_h, size_out in ((128, 128, 256), (128, 128, 128)):
        kx, kc, kp = jax.random.split(jax.random.fold_in(key, size_out), 3)
        x = jax.random.normal(kx, (B, T, size_in), jnp.float32)   # channels-last
        c = jax.random.normal(kc, (B, c_dim), jnp.float32)
        params = make_params(kp, c_dim, size_in, size_h, size_out)

        fn = jax.jit(functools.partial(cresnet_block_conv1d, t_tile=128))
        out = jax.block_until_ready(fn(x, c, params))
        ref = reference(x, c, params)

        assert out.shape == (B, T, size_out), out.shape
        err = float(jnp.max(jnp.abs(out - ref)))
        # Tolerance reflects bf16 MXU operands vs. the pure-f32 reference.
        assert jnp.allclose(out, ref, rtol=3e-2, atol=3e-2), err

    print("KERNEL_OK")
</pallas_src>

<mosaic_0001>
module attributes {stable_mosaic.version = 11 : i64} {
  func.func @_xstats_kernel(%arg0: i32, %arg1: memref<2x128x128xf32, #tpu.memory_space<vmem>>, %arg2: memref<1x128xf32, #tpu.memory_space<vmem>>, %arg3: memref<1x128xf32, #tpu.memory_space<vmem>>) attributes {dimension_semantics = [#tpu.dimension_semantics<arbitrary>], iteration_bounds = array<i64: 4>, scalar_prefetch = 0 : i64, scratch_operands = 0 : i64, tpu.core_type = #tpu.core_type<tc>, window_params = [{transform_indices = @transform_0, window_bounds = array<i64: 2, 128, 128>}, {pipeline_mode = #tpu.pipeline_mode<synchronous>, transform_indices = @transform_1, window_bounds = array<i64: 1, 128>}, {pipeline_mode = #tpu.pipeline_mode<synchronous>, transform_indices = @transform_2, window_bounds = array<i64: 1, 128>}]} {
    %c0_i32 = arith.constant 0 : i32
    %0 = arith.cmpi eq, %arg0, %c0_i32 : i32
    %1 = arith.extui %0 : i1 to i32
    %c0_i32_0 = arith.constant 0 : i32
    %2 = arith.cmpi ne, %1, %c0_i32_0 : i32
    scf.if %2 {
      %cst_12 = arith.constant 0.000000e+00 : f32
      %16 = vector.broadcast %cst_12 : f32 to vector<1x128xf32>
      %c0_13 = arith.constant 0 : index
      %c0_14 = arith.constant 0 : index
      %17 = vector.load %arg2[%c0_13, %c0_14] : memref<1x128xf32, #tpu.memory_space<vmem>>, vector<1x128xf32>
      tpu.vector_store %arg2[%c0_13, %c0_14], %16 {strides = array<i32>} : memref<1x128xf32, #tpu.memory_space<vmem>>, vector<1x128xf32>,
      %cst_15 = arith.constant 0.000000e+00 : f32
      %18 = vector.broadcast %cst_15 : f32 to vector<1x128xf32>
      %c0_16 = arith.constant 0 : index
      %c0_17 = arith.constant 0 : index
      %19 = vector.load %arg3[%c0_16, %c0_17] : memref<1x128xf32, #tpu.memory_space<vmem>>, vector<1x128xf32>
      tpu.vector_store %arg3[%c0_16, %c0_17], %18 {strides = array<i32>} : memref<1x128xf32, #tpu.memory_space<vmem>>, vector<1x128xf32>,
    } else {
    }
    %c0 = arith.constant 0 : index
    %c0_1 = arith.constant 0 : index
    %c0_2 = arith.constant 0 : index
    %3 = vector.load %arg1[%c0, %c0_1, %c0_2] : memref<2x128x128xf32, #tpu.memory_space<vmem>>, vector<2x128x128xf32>
    %4 = vector.shape_cast %3 : vector<2x128x128xf32> to vector<256x128xf32>
    %c0_3 = arith.constant 0 : index
    %c0_4 = arith.constant 0 : index
    %5 = vector.load %arg2[%c0_3, %c0_4] : memref<1x128xf32, #tpu.memory_space<vmem>>, vector<1x128xf32>
    %cst = arith.constant dense<0.000000e+00> : vector<128xf32>
    %6 = vector.multi_reduction <add>, %4, %cst [0] : vector<256x128xf32> to vector<128xf32>
    %7 = vector.shape_cast %6 : vector<128xf32> to vector<1x128xf32>
    %8 = arith.addf %5, %7 : vector<1x128xf32>
    %c0_5 = arith.constant 0 : index
    %c0_6 = arith.constant 0 : index
    %9 = vector.load %arg2[%c0_5, %c0_6] : memref<1x128xf32, #tpu.memory_space<vmem>>, vector<1x128xf32>
    tpu.vector_store %arg2[%c0_5, %c0_6], %8 {strides = array<i32>} : memref<1x128xf32, #tpu.memory_space<vmem>>, vector<1x128xf32>,
    %c0_7 = arith.constant 0 : index
    %c0_8 = arith.constant 0 : index
    %10 = vector.load %arg3[%c0_7, %c0_8] : memref<1x128xf32, #tpu.memory_space<vmem>>, vector<1x128xf32>
    %11 = arith.mulf %4, %4 : vector<256x128xf32>
    %cst_9 = arith.constant dense<0.000000e+00> : vector<128xf32>
    %12 = vector.multi_reduction <add>, %11, %cst_9 [0] : vector<256x128xf32> to vector<128xf32>
    %13 = vector.shape_cast %12 : vector<128xf32> to vector<1x128xf32>
    %14 = arith.addf %10, %13 : vector<1x128xf32>
    %c0_10 = arith.constant 0 : index
    %c0_11 = arith.constant 0 : index
    %15 = vector.load %arg3[%c0_10, %c0_11] : memref<1x128xf32, #tpu.memory_space<vmem>>, vector<1x128xf32>
    tpu.vector_store %arg3[%c0_10, %c0_11], %14 {strides = array<i32>} : memref<1x128xf32, #tpu.memory_space<vmem>>, vector<1x128xf32>,
    return
  }
  func.func @transform_0(%arg0: i32) -> (i32, i32, i32) {
    %c0_i32 = arith.constant 0 : i32
    %c0_i32_0 = arith.constant 0 : i32
    %c0_i32_1 = arith.constant 0 : i32
    return %c0_i32, %arg0, %c0_i32_0 : i32, i32, i32
  }
  func.func @transform_1(%arg0: i32) -> (i32, i32) {
    %c0_i32 = arith.constant 0 : i32
    %c0_i32_0 = arith.constant 0 : i32
    %c0_i32_1 = arith.constant 0 : i32
    return %c0_i32, %c0_i32_0 : i32, i32
  }
  func.func @transform_2(%arg0: i32) -> (i32, i32) {
    %c0_i32 = arith.constant 0 : i32
    %c0_i32_0 = arith.constant 0 : i32
    %c0_i32_1 = arith.constant 0 : i32
    return %c0_i32, %c0_i32_0 : i32, i32
  }
}

module attributes {stable_mosaic.version = 11 : i64} {
  func.func @_pass1_kernel(%arg0: i32, %arg1: memref<2x128x128xf32, #tpu.memory_space<vmem>>, %arg2: memref<2x128xf32, #tpu.memory_space<vmem>>, %arg3: memref<2x128xf32, #tpu.memory_space<vmem>>, %arg4: memref<1x128xf32, #tpu.memory_space<vmem>>, %arg5: memref<1x128xf32, #tpu.memory_space<vmem>>, %arg6: memref<128x128xbf16, #tpu.memory_space<vmem>>, %arg7: memref<1x128xf32, #tpu.memory_space<vmem>>, %arg8: memref<2x128x128xbf16, #tpu.memory_space<vmem>>, %arg9: memref<1x128xf32, #tpu.memory_space<vmem>>, %arg10: memref<1x128xf32, #tpu.memory_space<vmem>>) attributes {dimension_semantics = [#tpu.dimension_semantics<arbitrary>], iteration_bounds = array<i64: 4>, scalar_prefetch = 0 : i64, scratch_operands = 0 : i64, tpu.core_type = #tpu.core_type<tc>, window_params = [{transform_indices = @transform_0, window_bounds = array<i64: 2, 128, 128>}, {pipeline_mode = #tpu.pipeline_mode<synchronous>, transform_indices = @transform_1, window_bounds = array<i64: 2, 128>}, {pipeline_mode = #tpu.pipeline_mode<synchronous>, transform_indices = @transform_2, window_bounds = array<i64: 2, 128>}, {pipeline_mode = #tpu.pipeline_mode<synchronous>, transform_indices = @transform_3, window_bounds = array<i64: 1, 128>}, {pipeline_mode = #tpu.pipeline_mode<synchronous>, transform_indices = @transform_4, window_bounds = array<i64: 1, 128>}, {pipeline_mode = #tpu.pipeline_mode<synchronous>, transform_indices = @transform_5, window_bounds = array<i64: 128, 128>}, {pipeline_mode = #tpu.pipeline_mode<synchronous>, transform_indices = @transform_6, window_bounds = array<i64: 1, 128>}, {transform_indices = @transform_7, window_bounds = array<i64: 2, 128, 128>}, {pipeline_mode = #tpu.pipeline_mode<synchronous>, transform_indices = @transform_8, window_bounds = array<i64: 1, 128>}, {pipeline_mode = #tpu.pipeline_mode<synchronous>, transform_indices = @transform_9, window_bounds = array<i64: 1, 128>}]} {
    %c0_i32 = arith.constant 0 : i32
    %0 = arith.cmpi eq, %arg0, %c0_i32 : i32
    %1 = arith.extui %0 : i1 to i32
    %c0_i32_0 = arith.constant 0 : i32
    %2 = arith.cmpi ne, %1, %c0_i32_0 : i32
    scf.if %2 {
      %cst_29 = arith.constant 0.000000e+00 : f32
      %44 = vector.broadcast %cst_29 : f32 to vector<1x128xf32>
      %c0_30 = arith.constant 0 : index
      %c0_31 = arith.constant 0 : index
      %45 = vector.load %arg9[%c0_30, %c0_31] : memref<1x128xf32, #tpu.memory_space<vmem>>, vector<1x128xf32>
      tpu.vector_store %arg9[%c0_30, %c0_31], %44 {strides = array<i32>} : memref<1x128xf32, #tpu.memory_space<vmem>>, vector<1x128xf32>,
      %cst_32 = arith.constant 0.000000e+00 : f32
      %46 = vector.broadcast %cst_32 : f32 to vector<1x128xf32>
      %c0_33 = arith.constant 0 : index
      %c0_34 = arith.constant 0 : index
      %47 = vector.load %arg10[%c0_33, %c0_34] : memref<1x128xf32, #tpu.memory_space<vmem>>, vector<1x128xf32>
      tpu.vector_store %arg10[%c0_33, %c0_34], %46 {strides = array<i32>} : memref<1x128xf32, #tpu.memory_space<vmem>>, vector<1x128xf32>,
    } else {
    }
    %c0 = arith.constant 0 : index
    %c0_1 = arith.constant 0 : index
    %c0_2 = arith.constant 0 : index
    %3 = vector.load %arg1[%c0, %c0_1, %c0_2] : memref<2x128x128xf32, #tpu.memory_space<vmem>>, vector<2x128x128xf32>
    %c0_3 = arith.constant 0 : index
    %c0_4 = arith.constant 0 : index
    %4 = vector.load %arg4[%c0_3, %c0_4] : memref<1x128xf32, #tpu.memory_space<vmem>>, vector<1x128xf32>
    %5 = vector.shape_cast %4 : vector<1x128xf32> to vector<1x1x128xf32>
    %6 = vector.broadcast %5 : vector<1x1x128xf32> to vector<2x128x128xf32>
    %7 = arith.subf %3, %6 : vector<2x128x128xf32>
    %c0_5 = arith.constant 0 : index
    %c0_6 = arith.constant 0 : index
    %8 = vector.load %arg5[%c0_5, %c0_6] : memref<1x128xf32, #tpu.memory_space<vmem>>, vector<1x128xf32>
    %9 = vector.shape_cast %8 : vector<1x128xf32> to vector<1x1x128xf32>
    %10 = vector.broadcast %9 : vector<1x1x128xf32> to vector<2x128x128xf32>
    %11 = arith.mulf %7, %10 : vector<2x128x128xf32>
    %c0_7 = arith.constant 0 : index
    %c0_8 = arith.constant 0 : index
    %12 = vector.load %arg2[%c0_7, %c0_8] : memref<2x128xf32, #tpu.memory_space<vmem>>, vector<2x128xf32>
    %13 = vector.shape_cast %12 : vector<2x128xf32> to vector<2x1x128xf32>
    %14 = vector.broadcast %13 : vector<2x1x128xf32> to vector<2x128x128xf32>
    %15 = arith.mulf %14, %11 : vector<2x128x128xf32>
    %c0_9 = arith.constant 0 : index
    %c0_10 = arith.constant 0 : index
    %16 = vector.load %arg3[%c0_9, %c0_10] : memref<2x128xf32, #tpu.memory_space<vmem>>, vector<2x128xf32>
    %17 = vector.shape_cast %16 : vector<2x128xf32> to vector<2x1x128xf32>
    %18 = vector.broadcast %17 : vector<2x1x128xf32> to vector<2x128x128xf32>
    %19 = arith.addf %15, %18 : vector<2x128x128xf32>
    %cst = arith.constant 0.000000e+00 : f32
    %20 = vector.broadcast %cst : f32 to vector<2x128x128xf32>
    %21 = arith.maximumf %19, %20 : vector<2x128x128xf32>
    %22 = vector.shape_cast %21 : vector<2x128x128xf32> to vector<256x128xf32>
    %23 = arith.truncf %22 : vector<256x128xf32> to vector<256x128xbf16>
    %c0_11 = arith.constant 0 : index
    %c0_12 = arith.constant 0 : index
    %24 = vector.load %arg6[%c0_11, %c0_12] : memref<128x128xbf16, #tpu.memory_space<vmem>>, vector<128x128xbf16>
    %cst_13 = arith.constant dense<0.000000e+00> : vector<256x128xf32>
    %25 = tpu.matmul %23, %24, %cst_13 {dimension_numbers = #tpu.dot_dimension_numbers<[1], [0], [0], [1], [0, 0, 1, 1], [], []>} : vector<256x128xbf16>, vector<128x128xbf16>, vector<256x128xf32> -> vector<256x128xf32>
    %c0_14 = arith.constant 0 : index
    %c0_15 = arith.constant 0 : index
    %26 = vector.load %arg7[%c0_14, %c0_15] : memref<1x128xf32, #tpu.memory_space<vmem>>, vector<1x128xf32>
    %27 = vector.broadcast %26 : vector<1x128xf32> to vector<256x128xf32>
    %28 = arith.addf %25, %27 : vector<256x128xf32>
    %29 = arith.truncf %28 : vector<256x128xf32> to vector<256x128xbf16>
    %30 = vector.shape_cast %29 : vector<256x128xbf16> to vector<2x128x128xbf16>
    %c0_16 = arith.constant 0 : index
    %c0_17 = arith.constant 0 : index
    %c0_18 = arith.constant 0 : index
    %31 = vector.load %arg8[%c0_16, %c0_17, %c0_18] : memref<2x128x128xbf16, #tpu.memory_space<vmem>>, vector<2x128x128xbf16>
    tpu.vector_store %arg8[%c0_16, %c0_17, %c0_18], %30 {strides = array<i32>} : memref<2x128x128xbf16, #tpu.memory_space<vmem>>, vector<2x128x128xbf16>,
    %32 = arith.extf %29 : vector<256x128xbf16> to vector<256x128xf32>
    %c0_19 = arith.constant 0 : index
    %c0_20 = arith.constant 0 : index
    %33 = vector.load %arg9[%c0_19, %c0_20] : memref<1x128xf32, #tpu.memory_space<vmem>>, vector<1x128xf32>
    %cst_21 = arith.constant dense<0.000000e+00> : vector<128xf32>
    %34 = vector.multi_reduction <add>, %32, %cst_21 [0] : vector<256x128xf32> to vector<128xf32>
    %35 = vector.shape_cast %34 : vector<128xf32> to vector<1x128xf32>
    %36 = arith.addf %33, %35 : vector<1x128xf32>
    %c0_22 = arith.constant 0 : index
    %c0_23 = arith.constant 0 : index
    %37 = vector.load %arg9[%c0_22, %c0_23] : memref<1x128xf32, #tpu.memory_space<vmem>>, vector<1x128xf32>
    tpu.vector_store %arg9[%c0_22, %c0_23], %36 {strides = array<i32>} : memref<1x128xf32, #tpu.memory_space<vmem>>, vector<1x128xf32>,
    %c0_24 = arith.constant 0 : index
    %c0_25 = arith.constant 0 : index
    %38 = vector.load %arg10[%c0_24, %c0_25] : memref<1x128xf32, #tpu.memory_space<vmem>>, vector<1x128xf32>
    %39 = arith.mulf %32, %32 : vector<256x128xf32>
    %cst_26 = arith.constant dense<0.000000e+00> : vector<128xf32>
    %40 = vector.multi_reduction <add>, %39, %cst_26 [0] : vector<256x128xf32> to vector<128xf32>
    %41 = vector.shape_cast %40 : vector<128xf32> to vector<1x128xf32>
    %42 = arith.addf %38, %41 : vector<1x128xf32>
    %c0_27 = arith.constant 0 : index
    %c0_28 = arith.constant 0 : index
    %43 = vector.load %arg10[%c0_27, %c0_28] : memref<1x128xf32, #tpu.memory_space<vmem>>, vector<1x128xf32>
    tpu.vector_store %arg10[%c0_27, %c0_28], %42 {strides = array<i32>} : memref<1x128xf32, #tpu.memory_space<vmem>>, vector<1x128xf32>,
    return
  }
  func.func @transform_0(%arg0: i32) -> (i32, i32, i32) {
    %c0_i32 = arith.constant 0 : i32
    %c0_i32_0 = arith.constant 0 : i32
    %c0_i32_1 = arith.constant 0 : i32
    return %c0_i32, %arg0, %c0_i32_0 : i32, i32, i32
  }
  func.func @transform_1(%arg0: i32) -> (i32, i32) {
    %c0_i32 = arith.constant 0 : i32
    %c0_i32_0 = arith.constant 0 : i32
    %c0_i32_1 = arith.constant 0 : i32
    return %c0_i32, %c0_i32_0 : i32, i32
  }
  func.func @transform_2(%arg0: i32) -> (i32, i32) {
    %c0_i32 = arith.constant 0 : i32
    %c0_i32_0 = arith.constant 0 : i32
    %c0_i32_1 = arith.constant 0 : i32
    return %c0_i32, %c0_i32_0 : i32, i32
  }
  func.func @transform_3(%arg0: i32) -> (i32, i32) {
    %c0_i32 = arith.constant 0 : i32
    %c0_i32_0 = arith.constant 0 : i32
    %c0_i32_1 = arith.constant 0 : i32
    return %c0_i32, %c0_i32_0 : i32, i32
  }
  func.func @transform_4(%arg0: i32) -> (i32, i32) {
    %c0_i32 = arith.constant 0 : i32
    %c0_i32_0 = arith.constant 0 : i32
    %c0_i32_1 = arith.constant 0 : i32
    return %c0_i32, %c0_i32_0 : i32, i32
  }
  func.func @transform_5(%arg0: i32) -> (i32, i32) {
    %c0_i32 = arith.constant 0 : i32
    %c0_i32_0 = arith.constant 0 : i32
    %c0_i32_1 = arith.constant 0 : i32
    return %c0_i32, %c0_i32_0 : i32, i32
  }
  func.func @transform_6(%arg0: i32) -> (i32, i32) {
    %c0_i32 = arith.constant 0 : i32
    %c0_i32_0 = arith.constant 0 : i32
    %c0_i32_1 = arith.constant 0 : i32
    return %c0_i32, %c0_i32_0 : i32, i32
  }
  func.func @transform_7(%arg0: i32) -> (i32, i32, i32) {
    %c0_i32 = arith.constant 0 : i32
    %c0_i32_0 = arith.constant 0 : i32
    %c0_i32_1 = arith.constant 0 : i32
    return %c0_i32, %arg0, %c0_i32_0 : i32, i32, i32
  }
  func.func @transform_8(%arg0: i32) -> (i32, i32) {
    %c0_i32 = arith.constant 0 : i32
    %c0_i32_0 = arith.constant 0 : i32
    %c0_i32_1 = arith.constant 0 : i32
    return %c0_i32, %c0_i32_0 : i32, i32
  }
  func.func @transform_9(%arg0: i32) -> (i32, i32) {
    %c0_i32 = arith.constant 0 : i32
    %c0_i32_0 = arith.constant 0 : i32
    %c0_i32_1 = arith.constant 0 : i32
    return %c0_i32, %c0_i32_0 : i32, i32
  }
}

module attributes {stable_mosaic.version = 11 : i64} {
  func.func @kernel(%arg0: i32, %arg1: memref<2x128x128xf32, #tpu.memory_space<vmem>>, %arg2: memref<2x128x128xbf16, #tpu.memory_space<vmem>>, %arg3: memref<2x128xf32, #tpu.memory_space<vmem>>, %arg4: memref<2x128xf32, #tpu.memory_space<vmem>>, %arg5: memref<1x128xf32, #tpu.memory_space<vmem>>, %arg6: memref<1x128xf32, #tpu.memory_space<vmem>>, %arg7: memref<128x256xbf16, #tpu.memory_space<vmem>>, %arg8: memref<1x256xf32, #tpu.memory_space<vmem>>, %arg9: memref<128x256xbf16, #tpu.memory_space<vmem>>, %arg10: memref<2x128x256xf32, #tpu.memory_space<vmem>>) attributes {dimension_semantics = [#tpu.dimension_semantics<parallel>], iteration_bounds = array<i64: 4>, scalar_prefetch = 0 : i64, scratch_operands = 0 : i64, tpu.core_type = #tpu.core_type<tc>, window_params = [{transform_indices = @transform_0, window_bounds = array<i64: 2, 128, 128>}, {transform_indices = @transform_1, window_bounds = array<i64: 2, 128, 128>}, {pipeline_mode = #tpu.pipeline_mode<synchronous>, transform_indices = @transform_2, window_bounds = array<i64: 2, 128>}, {pipeline_mode = #tpu.pipeline_mode<synchronous>, transform_indices = @transform_3, window_bounds = array<i64: 2, 128>}, {pipeline_mode = #tpu.pipeline_mode<synchronous>, transform_indices = @transform_4, window_bounds = array<i64: 1, 128>}, {pipeline_mode = #tpu.pipeline_mode<synchronous>, transform_indices = @transform_5, window_bounds = array<i64: 1, 128>}, {pipeline_mode = #tpu.pipeline_mode<synchronous>, transform_indices = @transform_6, window_bounds = array<i64: 128, 256>}, {pipeline_mode = #tpu.pipeline_mode<synchronous>, transform_indices = @transform_7, window_bounds = array<i64: 1, 256>}, {pipeline_mode = #tpu.pipeline_mode<synchronous>, transform_indices = @transform_8, window_bounds = array<i64: 128, 256>}, {transform_indices = @transform_9, window_bounds = array<i64: 2, 128, 256>}]} {
    %c0 = arith.constant 0 : index
    %c0_0 = arith.constant 0 : index
    %c0_1 = arith.constant 0 : index
    %0 = vector.load %arg2[%c0, %c0_0, %c0_1] : memref<2x128x128xbf16, #tpu.memory_space<vmem>>, vector<2x128x128xbf16>
    %1 = arith.extf %0 : vector<2x128x128xbf16> to vector<2x128x128xf32>
    %c0_2 = arith.constant 0 : index
    %c0_3 = arith.constant 0 : index
    %2 = vector.load %arg5[%c0_2, %c0_3] : memref<1x128xf32, #tpu.memory_space<vmem>>, vector<1x128xf32>
    %3 = vector.shape_cast %2 : vector<1x128xf32> to vector<1x1x128xf32>
    %4 = vector.broadcast %3 : vector<1x1x128xf32> to vector<2x128x128xf32>
    %5 = arith.subf %1, %4 : vector<2x128x128xf32>
    %c0_4 = arith.constant 0 : index
    %c0_5 = arith.constant 0 : index
    %6 = vector.load %arg6[%c0_4, %c0_5] : memref<1x128xf32, #tpu.memory_space<vmem>>, vector<1x128xf32>
    %7 = vector.shape_cast %6 : vector<1x128xf32> to vector<1x1x128xf32>
    %8 = vector.broadcast %7 : vector<1x1x128xf32> to vector<2x128x128xf32>
    %9 = arith.mulf %5, %8 : vector<2x128x128xf32>
    %c0_6 = arith.constant 0 : index
    %c0_7 = arith.constant 0 : index
    %10 = vector.load %arg3[%c0_6, %c0_7] : memref<2x128xf32, #tpu.memory_space<vmem>>, vector<2x128xf32>
    %11 = vector.shape_cast %10 : vector<2x128xf32> to vector<2x1x128xf32>
    %12 = vector.broadcast %11 : vector<2x1x128xf32> to vector<2x128x128xf32>
    %13 = arith.mulf %12, %9 : vector<2x128x128xf32>
    %c0_8 = arith.constant 0 : index
    %c0_9 = arith.constant 0 : index
    %14 = vector.load %arg4[%c0_8, %c0_9] : memref<2x128xf32, #tpu.memory_space<vmem>>, vector<2x128xf32>
    %15 = vector.shape_cast %14 : vector<2x128xf32> to vector<2x1x128xf32>
    %16 = vector.broadcast %15 : vector<2x1x128xf32> to vector<2x128x128xf32>
    %17 = arith.addf %13, %16 : vector<2x128x128xf32>
    %cst = arith.constant 0.000000e+00 : f32
    %18 = vector.broadcast %cst : f32 to vector<2x128x128xf32>
    %19 = arith.maximumf %17, %18 : vector<2x128x128xf32>
    %20 = vector.shape_cast %19 : vector<2x128x128xf32> to vector<256x128xf32>
    %21 = arith.truncf %20 : vector<256x128xf32> to vector<256x128xbf16>
    %c0_10 = arith.constant 0 : index
    %c0_11 = arith.constant 0 : index
    %22 = vector.load %arg7[%c0_10, %c0_11] : memref<128x256xbf16, #tpu.memory_space<vmem>>, vector<128x256xbf16>
    %cst_12 = arith.constant dense<0.000000e+00> : vector<256x256xf32>
    %23 = tpu.matmul %21, %22, %cst_12 {dimension_numbers = #tpu.dot_dimension_numbers<[1], [0], [0], [1], [0, 0, 1, 1], [], []>} : vector<256x128xbf16>, vector<128x256xbf16>, vector<256x256xf32> -> vector<256x256xf32>
    %c0_13 = arith.constant 0 : index
    %c0_14 = arith.constant 0 : index
    %24 = vector.load %arg8[%c0_13, %c0_14] : memref<1x256xf32, #tpu.memory_space<vmem>>, vector<1x256xf32>
    %25 = vector.broadcast %24 : vector<1x256xf32> to vector<256x256xf32>
    %26 = arith.addf %23, %25 : vector<256x256xf32>
    %c0_15 = arith.constant 0 : index
    %c0_16 = arith.constant 0 : index
    %c0_17 = arith.constant 0 : index
    %27 = vector.load %arg1[%c0_15, %c0_16, %c0_17] : memref<2x128x128xf32, #tpu.memory_space<vmem>>, vector<2x128x128xf32>
    %28 = vector.shape_cast %27 : vector<2x128x128xf32> to vector<256x128xf32>
    %29 = arith.truncf %28 : vector<256x128xf32> to vector<256x128xbf16>
    %c0_18 = arith.constant 0 : index
    %c0_19 = arith.constant 0 : index
    %30 = vector.load %arg9[%c0_18, %c0_19] : memref<128x256xbf16, #tpu.memory_space<vmem>>, vector<128x256xbf16>
    %cst_20 = arith.constant dense<0.000000e+00> : vector<256x256xf32>
    %31 = tpu.matmul %29, %30, %cst_20 {dimension_numbers = #tpu.dot_dimension_numbers<[1], [0], [0], [1], [0, 0, 1, 1], [], []>} : vector<256x128xbf16>, vector<128x256xbf16>, vector<256x256xf32> -> vector<256x256xf32>
    %32 = arith.addf %31, %26 : vector<256x256xf32>
    %33 = vector.shape_cast %32 : vector<256x256xf32> to vector<2x128x256xf32>
    %c0_21 = arith.constant 0 : index
    %c0_22 = arith.constant 0 : index
    %c0_23 = arith.constant 0 : index
    %34 = vector.load %arg10[%c0_21, %c0_22, %c0_23] : memref<2x128x256xf32, #tpu.memory_space<vmem>>, vector<2x128x256xf32>
    tpu.vector_store %arg10[%c0_21, %c0_22, %c0_23], %33 {strides = array<i32>} : memref<2x128x256xf32, #tpu.memory_space<vmem>>, vector<2x128x256xf32>,
    return
  }
  func.func @transform_0(%arg0: i32) -> (i32, i32, i32) {
    %c0_i32 = arith.constant 0 : i32
    %c0_i32_0 = arith.constant 0 : i32
    %c0_i32_1 = arith.constant 0 : i32
    return %c0_i32, %arg0, %c0_i32_0 : i32, i32, i32
  }
  func.func @transform_1(%arg0: i32) -> (i32, i32, i32) {
    %c0_i32 = arith.constant 0 : i32
    %c0_i32_0 = arith.constant 0 : i32
    %c0_i32_1 = arith.constant 0 : i32
    return %c0_i32, %arg0, %c0_i32_0 : i32, i32, i32
  }
  func.func @transform_2(%arg0: i32) -> (i32, i32) {
    %c0_i32 = arith.constant 0 : i32
    %c0_i32_0 = arith.constant 0 : i32
    %c0_i32_1 = arith.constant 0 : i32
    return %c0_i32, %c0_i32_0 : i32, i32
  }
  func.func @transform_3(%arg0: i32) -> (i32, i32) {
    %c0_i32 = arith.constant 0 : i32
    %c0_i32_0 = arith.constant 0 : i32
    %c0_i32_1 = arith.constant 0 : i32
    return %c0_i32, %c0_i32_0 : i32, i32
  }
  func.func @transform_4(%arg0: i32) -> (i32, i32) {
    %c0_i32 = arith.constant 0 : i32
    %c0_i32_0 = arith.constant 0 : i32
    %c0_i32_1 = arith.constant 0 : i32
    return %c0_i32, %c0_i32_0 : i32, i32
  }
  func.func @transform_5(%arg0: i32) -> (i32, i32) {
    %c0_i32 = arith.constant 0 : i32
    %c0_i32_0 = arith.constant 0 : i32
    %c0_i32_1 = arith.constant 0 : i32
    return %c0_i32, %c0_i32_0 : i32, i32
  }
  func.func @transform_6(%arg0: i32) -> (i32, i32) {
    %c0_i32 = arith.constant 0 : i32
    %c0_i32_0 = arith.constant 0 : i32
    %c0_i32_1 = arith.constant 0 : i32
    return %c0_i32, %c0_i32_0 : i32, i32
  }
  func.func @transform_7(%arg0: i32) -> (i32, i32) {
    %c0_i32 = arith.constant 0 : i32
    %c0_i32_0 = arith.constant 0 : i32
    %c0_i32_1 = arith.constant 0 : i32
    return %c0_i32, %c0_i32_0 : i32, i32
  }
  func.func @transform_8(%arg0: i32) -> (i32, i32) {
    %c0_i32 = arith.constant 0 : i32
    %c0_i32_0 = arith.constant 0 : i32
    %c0_i32_1 = arith.constant 0 : i32
    return %c0_i32, %c0_i32_0 : i32, i32
  }
  func.func @transform_9(%arg0: i32) -> (i32, i32, i32) {
    %c0_i32 = arith.constant 0 : i32
    %c0_i32_0 = arith.constant 0 : i32
    %c0_i32_1 = arith.constant 0 : i32
    return %c0_i32, %arg0, %c0_i32_0 : i32, i32, i32
  }
}

</mosaic_0001>

<bundles_post_ra>
// kernel: cresnet_block_conv1d.3
= control target key start
LH: loop header
LB: loop body
LE: loop exit
PB: predicated region body
PF: predicated region fallthrough
CT: control target
= control target key end

     0   :  { %8 = vsyncpa [#allocation3], 0  ;;  %s626_s0 = inlined_call_operand.hbm [shape: f32[2,512,128], index: 0, kind: input, shape index: {}]   ;;  %s627_s1 = inlined_call_operand.vmem [shape: f32[1,128], index: 1, kind: output, shape index: {0}]   ;;  %s628_s2 = inlined_call_operand.vmem [shape: f32[1,128], index: 2, kind: output, shape index: {1}]  }
   0x1   :  { %10 = vsyncpa [#allocation3 + $0x1], 0  ;;  %s488_s9 = smov 0   ;;  %s490_s10 = smov 0  }
   0x2   :  { %s492_s11 = smov 0   ;;  %s494_s12 = smov 0  }
   0x3 LB: > { %s368_s13 = sadd.s32 4294967295, %s464_s12   ;;  %s508_s14 = sadd.s32 1, %s464_s12   ;;  %s464_s12 = sphi %s494_s12, %s634_s12   ;;  %s460_s11 = sphi %s492_s11, %s633_s11   ;;  %s456_s10 = sphi %s490_s10, %s632_s10   ;;  %s452_s9 = sphi %s488_s9, %s631_s9  }
   0x4   : > { %s20_s15 = ssub.s32 %s464_s12, %s508_s14  ;;  %s23_s16 = sadd.s32 1, %s460_s11 }
   0x5   : > { %p21_p0 = scmp.eq.s32.totalorder %s20_s15, 0  ;;  %p30_p1 = scmp.ne.s32.totalorder %s460_s11, %s456_s10 }
   0x6   : > { %p31_p2 = scmp.eq.s32.totalorder %s464_s12, 0  ;;  %p36_p3 = scmp.ne.s32.totalorder %s456_s10, %s452_s9 }
   0x7   : > { %s518_s17 = scalar_select %p21_p0, %s460_s11, %s23_s16  }
   0x8   : > { %p520_p4 = por %p31_p2, %p30_p1  ;;  %p37_p5 = scmp.eq.s32.totalorder %s368_s13, 0 }
   0x9   : > { %p370_p7 = scmp.ge.s32.totalorder %s464_s12, 4 }
   0xa   : > { %p526_p6 = por %p37_p5, %p36_p3 }
   0xb   : > { %98 = sbr.rel (%p370_p7) target bundleno = 31 (0x1f), region = 16 }
  0x12   : > { %s102_s20 = sand.u32 1, %s460_s11   ;;  %s381_s21 = sshll.u32 %s464_s12, 11 }
  0x13   : > { %s371_s22 = sshll.u32 %s102_s20, 8  ;;  %s112_s25 = scalar_lea.hbm %s626_s0, %s381_s21 }
  0x14   : > { %s382_s26 = scalar_select %p520_p4, [#allocation0], [#allocation6] }
  0x15   : > { %s106_s27 = scalar_lea.vmem [#allocation2], %s371_s22  ;;  %s466_s30 = smov 8192  }
  0x16   : > { %s125_s28 = sshll.u32 %s106_s27, 4  ;;  %s117_s29 = sld [smem:[%s382_s26]]   ;;  %s126_s28 = int_to_ptr.vmem [resolvable:$true] %s125_s28 }
  0x17   : > { %383 = sst [smem:[#allocation5]] (%p520_p4), %s466_s30  ;;  %s467_s3 = smov 2048  }
  0x18   : > { %384 = sst [smem:[#allocation5 + $0x1]] (%p520_p4), %s467_s3  ;;  %s468_s4 = smov 16  }
  0x19   : > { %385 = sst [smem:[#allocation5 + $0x2]] (%p520_p4), %s468_s4  ;;  %s469_s5 = smov 128  }
  0x1a   : > { %386 = sst [smem:[#allocation5 + $0x3]] (%p520_p4), %s469_s5  ;;  %s470_s7 = smov 8  }
  0x1b   : > { %387 = sst [smem:[#allocation5 + $0x4]] (%p520_p4), %s469_s5  ;;  %s103_s9 = scalar_lea.sflag [#allocation3], %s102_s20 }
  0x1c   : > { %s374_s6 = sshll.u32 %s117_s29, 26  ;;  %388 = sst [smem:[#allocation5 + $0x5]] (%p520_p4), %s470_s7 }
  0x1d   : > { %s375_s8 = sadd.s32 134217728, %s374_s6  ;;  %s471_s15 = smov [#allocation4]  }
  0x1e   : > { %389 = dma.general (%p520_p4), %s112_s25, 4096, %s126_s28, %s103_s9, %s471_s15, [#allocation5], %s375_s8, 0  }
  0x1f PF: > { %p376_p8 = scmp.ge.s32.totalorder %s464_s12, 1  ;;  %p146_p9 = scmp.lt.s32.totalorder %s464_s12, 5 }
  0x21   : > { %p147_p10 = pnand %p376_p8, %p146_p9 }
  0x22   : > { %s152_s16 = sand.u32 (!%p147_p10), 1, %s456_s10  }
  0x23   : > { %150 = sbr.rel (%p147_p10) target bundleno = 132 (0x84), region = 24  ;;  %s377_s21 = sshll.u32 (!%p147_p10), %s152_s16, 8 }
  0x24   : > { %s153_s22 = scalar_lea.sflag (!%p147_p10), [#allocation3], %s152_s16  ;;  %s555_s23 = scalar_lea.vmem (!%p147_p10), [#allocation2], %s377_s21 }
  0x2a   : > { %447 = dma.done.wait (%p526_p6), %s153_s22, 4096  }
  0x2b   : > { %449 = vsyncadd (%p526_p6), %s153_s22, 4294963200  ;;  %p378_p11 = scmp.ne.s32.totalorder %s368_s13, 0 }
  0x2c   : > { %v472_v0 = vmov (!%p378_p11), 0.0  }
  0x2d   : > { %176 = sbr.rel (%p378_p11) target bundleno = 52 (0x34), region = 32  ;;  %177 = vst [vmem:[%s627_s1] sm:$0x1] (!%p378_p11), %v472_v0  ;;  %178 = vst [vmem:[%s628_s2] sm:$0x1] (!%p378_p11), %v472_v0 }
  0x34 PF: > { %v179_v1 = vld [vmem:[%s555_s23] sm:$0xff]  ;;  %v180_v2 = vld [vmem:[%s555_s23 + $0x8] sm:$0xff]  ;;  %v181_v3 = vld [vmem:[%s555_s23 + $0x10] sm:$0xff] }
  0x35   : > { %v182_v4 = vld [vmem:[%s555_s23 + $0x18] sm:$0xff]  ;;  %v212_v5 = vadd.f32 %v180_v2, %v179_v1  ;;  %v252_v6 = vmul.f32 %v179_v1, %v179_v1  ;;  %v253_v7 = vmul.f32 %v180_v2, %v180_v2  ;;  %v254_v8 = vmul.f32 %v181_v3, %v181_v3  ;;  %v183_v9 = vld [vmem:[%s555_s23 + $0x20] sm:$0xff]  ;;  %v184_v13 = vld [vmem:[%s555_s23 + $0x28] sm:$0xff] }
  0x36   : > { %v255_v11 = vmul.f32 %v182_v4, %v182_v4  ;;  %v256_v15 = vmul.f32 %v183_v9, %v183_v9  ;;  %v185_v17 = vld [vmem:[%s555_s23 + $0x30] sm:$0xff]  ;;  %v257_v19 = vmul.f32 %v184_v13, %v184_v13  ;;  %v186_v21 = vld [vmem:[%s555_s23 + $0x38] sm:$0xff]  ;;  %v187_v25 = vld [vmem:[%s555_s23 + $0x40] sm:$0xff] }
  0x37   : > { %v213_v10 = vadd.f32 %v212_v5, %v181_v3  ;;  %v284_v12 = vadd.f32 %v253_v7, %v252_v6  ;;  %v258_v23 = vmul.f32 %v185_v17, %v185_v17  ;;  %v259_v27 = vmul.f32 %v186_v21, %v186_v21  ;;  %v188_v29 = vld [vmem:[%s555_s23 + $0x48] sm:$0xff]  ;;  %v189_v33 = vld [vmem:[%s555_s23 + $0x50] sm:$0xff]  ;;  %v190_v37 = vld [vmem:[%s555_s23 + $0x58] sm:$0xff] }
  0x38   : > { %v260_v31 = vmul.f32 %v187_v25, %v187_v25  ;;  %v261_v35 = vmul.f32 %v188_v29, %v188_v29  ;;  %v262_v39 = vmul.f32 %v189_v33, %v189_v33  ;;  %v191_v41 = vld [vmem:[%s555_s23 + $0x60] sm:$0xff]  ;;  %v263_v43 = vmul.f32 %v190_v37, %v190_v37  ;;  %v192_v45 = vld [vmem:[%s555_s23 + $0x68] sm:$0xff]  ;;  %v193_v49 = vld [vmem:[%s555_s23 + $0x70] sm:$0xff] }
  0x39   : > { %v214_v14 = vadd.f32 %v213_v10, %v182_v4  ;;  %v285_v16 = vadd.f32 %v284_v12, %v254_v8  ;;  %v264_v47 = vmul.f32 %v191_v41, %v191_v41  ;;  %v265_v51 = vmul.f32 %v192_v45, %v192_v45  ;;  %v194_v53 = vld [vmem:[%s555_s23 + $0x78] sm:$0xff]  ;;  %v195_v57 = vld [vmem:[%s555_s23 + $0x80] sm:$0xff]  ;;  %v196_v61 = vld [vmem:[%s555_s23 + $0x88] sm:$0xff] }
  0x3a   : > { %v266_v55 = vmul.f32 %v193_v49, %v193_v49  ;;  %v267_v59 = vmul.f32 %v194_v53, %v194_v53  ;;  %v268_v63 = vmul.f32 %v195_v57, %v195_v57  ;;  %v197_v1 = vld [vmem:[%s555_s23 + $0x90] sm:$0xff]  ;;  %v269_v3 = vmul.f32 %v196_v61, %v196_v61  ;;  %v198_v5 = vld [vmem:[%s555_s23 + $0x98] sm:$0xff] }
  0x3b   : > { %v215_v18 = vadd.f32 %v214_v14, %v183_v9  ;;  %v286_v20 = vadd.f32 %v285_v16, %v255_v11  ;;  %v270_v7 = vmul.f32 %v197_v1, %v197_v1  ;;  %v199_v9 = vld [vmem:[%s555_s23 + $0xa0] sm:$0xff]  ;;  %v271_v11 = vmul.f32 %v198_v5, %v198_v5 }
  0x3d   : > { %v216_v22 = vadd.f32 %v215_v18, %v184_v13  ;;  %v287_v24 = vadd.f32 %v286_v20, %v256_v15  ;;  %v200_v13 = vld [vmem:[%s555_s23 + $0xa8] sm:$0xff]  ;;  %v272_v15 = vmul.f32 %v199_v9, %v199_v9 }
  0x3f   : > { %v217_v26 = vadd.f32 %v216_v22, %v185_v17  ;;  %v288_v28 = vadd.f32 %v287_v24, %v257_v19  ;;  %v201_v17 = vld [vmem:[%s555_s23 + $0xb0] sm:$0xff]  ;;  %v273_v19 = vmul.f32 %v200_v13, %v200_v13 }
  0x41   : > { %v218_v30 = vadd.f32 %v217_v26, %v186_v21  ;;  %v289_v32 = vadd.f32 %v288_v28, %v258_v23  ;;  %v202_v21 = vld [vmem:[%s555_s23 + $0xb8] sm:$0xff]  ;;  %v274_v23 = vmul.f32 %v201_v17, %v201_v17 }
  0x43   : > { %v219_v34 = vadd.f32 %v218_v30, %v187_v25  ;;  %v290_v36 = vadd.f32 %v289_v32, %v259_v27  ;;  %v203_v25 = vld [vmem:[%s555_s23 + $0xc0] sm:$0xff]  ;;  %v275_v27 = vmul.f32 %v202_v21, %v202_v21 }
  0x45   : > { %v220_v38 = vadd.f32 %v219_v34, %v188_v29  ;;  %v291_v40 = vadd.f32 %v290_v36, %v260_v31  ;;  %v204_v29 = vld [vmem:[%s555_s23 + $0xc8] sm:$0xff]  ;;  %v276_v31 = vmul.f32 %v203_v25, %v203_v25 }
  0x47   : > { %v221_v42 = vadd.f32 %v220_v38, %v189_v33  ;;  %v292_v44 = vadd.f32 %v291_v40, %v261_v35  ;;  %v205_v33 = vld [vmem:[%s555_s23 + $0xd0] sm:$0xff]  ;;  %v277_v35 = vmul.f32 %v204_v29, %v204_v29 }
  0x49   : > { %v222_v46 = vadd.f32 %v221_v42, %v190_v37  ;;  %v293_v48 = vadd.f32 %v292_v44, %v262_v39  ;;  %v206_v37 = vld [vmem:[%s555_s23 + $0xd8] sm:$0xff]  ;;  %v278_v39 = vmul.f32 %v205_v33, %v205_v33 }
  0x4b   : > { %v223_v50 = vadd.f32 %v222_v46, %v191_v41  ;;  %v294_v52 = vadd.f32 %v293_v48, %v263_v43  ;;  %v207_v41 = vld [vmem:[%s555_s23 + $0xe0] sm:$0xff]  ;;  %v279_v43 = vmul.f32 %v206_v37, %v206_v37 }
  0x4d   : > { %v224_v54 = vadd.f32 %v223_v50, %v192_v45  ;;  %v295_v56 = vadd.f32 %v294_v52, %v264_v47  ;;  %v208_v45 = vld [vmem:[%s555_s23 + $0xe8] sm:$0xff]  ;;  %v280_v47 = vmul.f32 %v207_v41, %v207_v41 }
  0x4f   : > { %v225_v58 = vadd.f32 %v224_v54, %v193_v49  ;;  %v296_v60 = vadd.f32 %v295_v56, %v265_v51  ;;  %v209_v49 = vld [vmem:[%s555_s23 + $0xf0] sm:$0xff]  ;;  %v281_v51 = vmul.f32 %v208_v45, %v208_v45 }
  0x51   : > { %v226_v62 = vadd.f32 %v225_v58, %v194_v53  ;;  %v297_v0 = vadd.f32 %v296_v60, %v266_v55  ;;  %v210_v53 = vld [vmem:[%s555_s23 + $0xf8] sm:$0xff]  ;;  %v282_v55 = vmul.f32 %v209_v49, %v209_v49 }
  0x52   : > { %v283_v58 = vmul.f32 %v210_v53, %v210_v53 }
  0x53   : > { %v227_v2 = vadd.f32 %v226_v62, %v195_v57  ;;  %v298_v4 = vadd.f32 %v297_v0, %v267_v59 }
  0x55   : > { %v228_v6 = vadd.f32 %v227_v2, %v196_v61  ;;  %v299_v8 = vadd.f32 %v298_v4, %v268_v63 }
  0x57   : > { %v229_v10 = vadd.f32 %v228_v6, %v197_v1  ;;  %v300_v12 = vadd.f32 %v299_v8, %v269_v3 }
  0x59   : > { %v230_v14 = vadd.f32 %v229_v10, %v198_v5  ;;  %v301_v16 = vadd.f32 %v300_v12, %v270_v7  ;;  %v211_v7 = vld [vmem:[%s627_s1] sm:$0x1] }
  0x5a   : > { %v251_v12 = vld [vmem:[%s628_s2] sm:$0x1] }
  0x5b   : > { %v231_v18 = vadd.f32 %v230_v14, %v199_v9  ;;  %v302_v20 = vadd.f32 %v301_v16, %v271_v11 }
  0x5d   : > { %v232_v22 = vadd.f32 %v231_v18, %v200_v13  ;;  %v303_v24 = vadd.f32 %v302_v20, %v272_v15 }
  0x5f   : > { %v233_v26 = vadd.f32 %v232_v22, %v201_v17  ;;  %v304_v28 = vadd.f32 %v303_v24, %v273_v19 }
  0x61   : > { %v234_v30 = vadd.f32 %v233_v26, %v202_v21  ;;  %v305_v32 = vadd.f32 %v304_v28, %v274_v23 }
  0x63   : > { %v235_v34 = vadd.f32 %v234_v30, %v203_v25  ;;  %v306_v36 = vadd.f32 %v305_v32, %v275_v27 }
  0x65   : > { %v236_v38 = vadd.f32 %v235_v34, %v204_v29  ;;  %v307_v40 = vadd.f32 %v306_v36, %v276_v31 }
  0x67   : > { %v237_v42 = vadd.f32 %v236_v38, %v205_v33  ;;  %v308_v44 = vadd.f32 %v307_v40, %v277_v35 }
  0x69   : > { %v238_v46 = vadd.f32 %v237_v42, %v206_v37  ;;  %v309_v48 = vadd.f32 %v308_v44, %v278_v39 }
  0x6b   : > { %v239_v50 = vadd.f32 %v238_v46, %v207_v41  ;;  %v310_v52 = vadd.f32 %v309_v48, %v279_v43 }
  0x6d   : > { %v240_v54 = vadd.f32 %v239_v50, %v208_v45  ;;  %v311_v56 = vadd.f32 %v310_v52, %v280_v47 }
  0x6f   : > { %v241_v57 = vadd.f32 %v240_v54, %v209_v49  ;;  %v312_v59 = vadd.f32 %v311_v56, %v281_v51 }
  0x71   : > { %v242_v60 = vadd.f32 %v241_v57, %v210_v53  ;;  %v313_v61 = vadd.f32 %v312_v59, %v282_v55 }
  0x73   : > { %v243_v62 = vrot.slane %v242_v60, 4  ;;  %v314_v63 = vadd.f32 %v313_v61, %v283_v58 }
  0x75   : > { %v244_v0 = vadd.f32 %v243_v62, %v242_v60  ;;  %v315_v1 = vrot.slane %v314_v63, 4 }
  0x77   : > { %v245_v2 = vrot.slane %v244_v0, 2  ;;  %v316_v3 = vadd.f32 %v315_v1, %v314_v63 }
  0x79   : > { %v246_v4 = vadd.f32 %v245_v2, %v244_v0  ;;  %v317_v5 = vrot.slane %v316_v3, 2 }
  0x7b   : > { %v247_v6 = vrot.slane %v246_v4, 1  ;;  %v318_v8 = vadd.f32 %v317_v5, %v316_v3 }
  0x7d   : > { %v248_v9 = vadd.f32 %v247_v6, %v246_v4  ;;  %v319_v10 = vrot.slane %v318_v8, 1 }
  0x7f   : > { %v249_v11 = vadd.f32 %v248_v9, %v211_v7  ;;  %v320_v13 = vadd.f32 %v319_v10, %v318_v8 }
  0x81   : > { %250 = vst [vmem:[%s627_s1] sm:$0x1] %v249_v11  ;;  %v321_v14 = vadd.f32 %v320_v13, %v251_v12 }
  0x83   : > { %322 = vst [vmem:[%s628_s2] sm:$0x1] %v321_v14 }
  0x84 PF: > { %p13_p12 = scmp.ge.s32.totalorder %s508_s14, 6   ;;  %s631_s9 = smov %s456_s10 }
  0x85   : > { %s632_s10 = smov %s460_s11  ;;  %s633_s11 = smov %s518_s17 }
  0x86   : > { %s634_s12 = smov %s508_s14  ;;  %15 = sbr.rel (!%p13_p12) target bundleno = 3 (0x3), region = 77 }
  0x8d   :  { %340 = vsyncpa [#allocation3], 1 }
  0x8e   :  { %342 = vsyncpa [#allocation3 + $0x1], 1 }

// kernel: cresnet_block_conv1d.4
= control target key start
LH: loop header
LB: loop body
LE: loop exit
PB: predicated region body
PF: predicated region fallthrough
CT: control target
= control target key end

     0   :  { %s1945_s30 = smov 0   ;;  %s1947_s10 = smov 0   ;;  %s2433_s0 = inlined_call_operand.vmem [shape: f32[2,512,128], index: 0, kind: input, shape index: {}]   ;;  %s2434_s1 = inlined_call_operand.vmem [shape: f32[2,128], index: 1, kind: input, shape index: {}]   ;;  %s2435_s2 = inlined_call_operand.vmem [shape: f32[2,128], index: 2, kind: input, shape index: {}]   ;;  %s2436_s3 = inlined_call_operand.vmem [shape: f32[1,128], index: 3, kind: input, shape index: {}]   ;;  %s2437_s4 = inlined_call_operand.vmem [shape: f32[1,128], index: 4, kind: input, shape index: {}]   ;;  %s2438_s5 = inlined_call_operand.vmem [shape: bf16[128,128], index: 5, kind: input, shape index: {}]   ;;  %s2439_s6 = inlined_call_operand.vmem [shape: f32[1,128], index: 6, kind: input, shape index: {}]   ;;  %s2440_s7 = inlined_call_operand.vmem [shape: bf16[2,512,128], index: 7, kind: output, shape index: {0}]   ;;  %s2441_s8 = inlined_call_operand.vmem [shape: f32[1,128], index: 8, kind: output, shape index: {1}]   ;;  %s2442_s9 = inlined_call_operand.vmem [shape: f32[1,128], index: 9, kind: output, shape index: {2}]  }
   0x1   :  { %s1949_s11 = smov 0  }
   0x2 LB: > { %s1961_s12 = sadd.s32 4294967295, %s1891_s11   ;;  %s1964_s13 = sadd.s32 1, %s1891_s11   ;;  %s1891_s11 = sphi %s1949_s11, %s2446_s11   ;;  %s1887_s10 = sphi %s1947_s10, %s2445_s10   ;;  %s1883_s30 = sphi %s1945_s30, %s2444_s30  }
   0x3   : > { %s24_s14 = ssub.s32 %s1891_s11, %s1964_s13  ;;  %s27_s15 = sadd.s32 1, %s1887_s10 }
   0x4   : > { %p25_p0 = scmp.eq.s32.totalorder %s24_s14, 0  ;;  %p34_p1 = scmp.ne.s32.totalorder %s1887_s10, %s1883_s30 }
   0x5   : > { %p35_p2 = scmp.eq.s32.totalorder %s1891_s11, 0  ;;  %p190_p3 = scmp.eq.s32.totalorder %s1961_s12, 3 }
   0x6   : > { %s1974_s16 = scalar_select %p25_p0, %s1887_s10, %s27_s15  }
   0x7   : > { %p36_p4 = por %p35_p2, %p34_p1  ;;  %p1976_p5 = por %p190_p3, %p34_p1 }
   0x8   : > { %p1560_p6 = scmp.ge.s32.totalorder %s1891_s11, 4 }
   0xa   : > { %272 = sbr.rel (%p1560_p6) target bundleno = 37 (0x25), region = 40 }
  0x11   : > { %275 = sbr.rel (!%p36_p4) target bundleno = 37 (0x25), region = 44  ;;  %s277_s18 = sand.u32 (%p36_p4), 1, %s1887_s10  }
  0x12   : > { %s1618_s19 = sshll.u32 (%p36_p4), %s1891_s11, 7  ;;  %s1561_s20 = sshll.u32 (%p36_p4), %s277_s18, 8 }
  0x13   : > { %s1986_s23 = scalar_lea.vmem (%p36_p4), %s2433_s0, %s1618_s19  ;;  %s1991_s24 = scalar_lea.vmem (%p36_p4), [#allocation2], %s1561_s20 }
  0x14   : > { %v372_v0 = vld [vmem:[%s1986_s23] sm:$0xff] (%p36_p4)  ;;  %v374_v1 = vld [vmem:[%s1986_s23 + $0x8] sm:$0xff] (%p36_p4)  ;;  %v376_v2 = vld [vmem:[%s1986_s23 + $0x10] sm:$0xff] (%p36_p4) }
  0x15   : > { %373 = vst [vmem:[%s1991_s24] sm:$0xff] (%p36_p4), %v372_v0  ;;  %375 = vst [vmem:[%s1991_s24 + $0x8] sm:$0xff] (%p36_p4), %v374_v1  ;;  %v378_v3 = vld [vmem:[%s1986_s23 + $0x18] sm:$0xff] (%p36_p4)  ;;  %v380_v4 = vld [vmem:[%s1986_s23 + $0x20] sm:$0xff] (%p36_p4) }
  0x16   : > { %377 = vst [vmem:[%s1991_s24 + $0x10] sm:$0xff] (%p36_p4), %v376_v2  ;;  %v382_v5 = vld [vmem:[%s1986_s23 + $0x28] sm:$0xff] (%p36_p4)  ;;  %379 = vst [vmem:[%s1991_s24 + $0x18] sm:$0xff] (%p36_p4), %v378_v3  ;;  %v384_v6 = vld [vmem:[%s1986_s23 + $0x30] sm:$0xff] (%p36_p4) }
  0x17   : > { %381 = vst [vmem:[%s1991_s24 + $0x20] sm:$0xff] (%p36_p4), %v380_v4  ;;  %383 = vst [vmem:[%s1991_s24 + $0x28] sm:$0xff] (%p36_p4), %v382_v5  ;;  %v386_v7 = vld [vmem:[%s1986_s23 + $0x38] sm:$0xff] (%p36_p4)  ;;  %v388_v8 = vld [vmem:[%s1986_s23 + $0x40] sm:$0xff] (%p36_p4) }
  0x18   : > { %385 = vst [vmem:[%s1991_s24 + $0x30] sm:$0xff] %v384_v6  ;;  %387 = vst [vmem:[%s1991_s24 + $0x38] sm:$0xff] %v386_v7  ;;  %v390_v9 = vld [vmem:[%s1986_s23 + $0x48] sm:$0xff]  ;;  %v392_v10 = vld [vmem:[%s1986_s23 + $0x50] sm:$0xff] }
  0x19   : > { %389 = vst [vmem:[%s1991_s24 + $0x40] sm:$0xff] %v388_v8  ;;  %v394_v11 = vld [vmem:[%s1986_s23 + $0x58] sm:$0xff]  ;;  %391 = vst [vmem:[%s1991_s24 + $0x48] sm:$0xff] %v390_v9  ;;  %v396_v12 = vld [vmem:[%s1986_s23 + $0x60] sm:$0xff] }
  0x1a   : > { %393 = vst [vmem:[%s1991_s24 + $0x50] sm:$0xff] %v392_v10  ;;  %395 = vst [vmem:[%s1991_s24 + $0x58] sm:$0xff] %v394_v11  ;;  %v398_v13 = vld [vmem:[%s1986_s23 + $0x68] sm:$0xff]  ;;  %v400_v14 = vld [vmem:[%s1986_s23 + $0x70] sm:$0xff] }
  0x1b   : > { %397 = vst [vmem:[%s1991_s24 + $0x60] sm:$0xff] %v396_v12  ;;  %399 = vst [vmem:[%s1991_s24 + $0x68] sm:$0xff] %v398_v13  ;;  %v402_v15 = vld [vmem:[%s1986_s23 + $0x78] sm:$0xff]  ;;  %v404_v16 = vld [vmem:[%s1986_s23 + $0x200] sm:$0xff] }
  0x1c   : > { %401 = vst [vmem:[%s1991_s24 + $0x70] sm:$0xff] %v400_v14  ;;  %v406_v17 = vld [vmem:[%s1986_s23 + $0x208] sm:$0xff]  ;;  %403 = vst [vmem:[%s1991_s24 + $0x78] sm:$0xff] %v402_v15  ;;  %v408_v18 = vld [vmem:[%s1986_s23 + $0x210] sm:$0xff] }
  0x1d   : > { %405 = vst [vmem:[%s1991_s24 + $0x80] sm:$0xff] %v404_v16  ;;  %407 = vst [vmem:[%s1991_s24 + $0x88] sm:$0xff] %v406_v17  ;;  %v410_v19 = vld [vmem:[%s1986_s23 + $0x218] sm:$0xff]  ;;  %v412_v20 = vld [vmem:[%s1986_s23 + $0x220] sm:$0xff] }
  0x1e   : > { %409 = vst [vmem:[%s1991_s24 + $0x90] sm:$0xff] %v408_v18  ;;  %411 = vst [vmem:[%s1991_s24 + $0x98] sm:$0xff] %v410_v19  ;;  %v414_v21 = vld [vmem:[%s1986_s23 + $0x228] sm:$0xff]  ;;  %v416_v22 = vld [vmem:[%s1986_s23 + $0x230] sm:$0xff] }
  0x1f   : > { %413 = vst [vmem:[%s1991_s24 + $0xa0] sm:$0xff] %v412_v20  ;;  %v418_v23 = vld [vmem:[%s1986_s23 + $0x238] sm:$0xff]  ;;  %415 = vst [vmem:[%s1991_s24 + $0xa8] sm:$0xff] %v414_v21  ;;  %v420_v24 = vld [vmem:[%s1986_s23 + $0x240] sm:$0xff] }
  0x20   : > { %417 = vst [vmem:[%s1991_s24 + $0xb0] sm:$0xff] %v416_v22  ;;  %419 = vst [vmem:[%s1991_s24 + $0xb8] sm:$0xff] %v418_v23  ;;  %v422_v25 = vld [vmem:[%s1986_s23 + $0x248] sm:$0xff]  ;;  %v424_v26 = vld [vmem:[%s1986_s23 + $0x250] sm:$0xff] }
  0x21   : > { %421 = vst [vmem:[%s1991_s24 + $0xc0] sm:$0xff] %v420_v24  ;;  %423 = vst [vmem:[%s1991_s24 + $0xc8] sm:$0xff] %v422_v25  ;;  %v426_v27 = vld [vmem:[%s1986_s23 + $0x258] sm:$0xff]  ;;  %v428_v28 = vld [vmem:[%s1986_s23 + $0x260] sm:$0xff] }
  0x22   : > { %425 = vst [vmem:[%s1991_s24 + $0xd0] sm:$0xff] %v424_v26  ;;  %v430_v29 = vld [vmem:[%s1986_s23 + $0x268] sm:$0xff]  ;;  %427 = vst [vmem:[%s1991_s24 + $0xd8] sm:$0xff] %v426_v27  ;;  %v432_v30 = vld [vmem:[%s1986_s23 + $0x270] sm:$0xff] }
  0x23   : > { %429 = vst [vmem:[%s1991_s24 + $0xe0] sm:$0xff] %v428_v28  ;;  %431 = vst [vmem:[%s1991_s24 + $0xe8] sm:$0xff] %v430_v29  ;;  %v434_v31 = vld [vmem:[%s1986_s23 + $0x278] sm:$0xff] }
  0x24   : > { %433 = vst [vmem:[%s1991_s24 + $0xf0] sm:$0xff] %v432_v30  ;;  %435 = vst [vmem:[%s1991_s24 + $0xf8] sm:$0xff] %v434_v31 }
  0x25 PF: > { %p1564_p7 = scmp.ge.s32.totalorder %s1891_s11, 1  ;;  %p440_p8 = scmp.lt.s32.totalorder %s1891_s11, 5 }
  0x27   : > { %p441_p9 = pnand %p1564_p7, %p440_p8 }
  0x28   : > { %s447_s25 = sand.u32 (!%p441_p9), 1, %s1883_s30   ;;  %p1567_p10 = scmp.ne.s32.totalorder (!%p441_p9), %s1961_s12, 0 }
  0x29   : > { %444 = sbr.rel (%p441_p9) target bundleno = 390 (0x186), region = 82  ;;  %s1565_s26 = sshll.u32 (!%p441_p9), %s447_s25, 8 }
  0x2a   : > { %s1566_s27 = sshll.u32 (!%p441_p9), %s447_s25, 7  ;;  %s2057_s28 = scalar_lea.vmem (!%p441_p9), [#allocation2], %s1565_s26 }
  0x2b   : > { %s2059_s29 = scalar_lea.vmem (!%p441_p9), [#allocation3], %s1566_s27 }
  0x30   : > { %487 = sbr.rel (%p1567_p10) target bundleno = 55 (0x37), region = 90  ;;  %v1893_v32 = vmov (!%p1567_p10), 0.0  }
  0x31   : > { %488 = vst [vmem:[%s2441_s8] sm:$0x1] (!%p1567_p10), %v1893_v32  ;;  %489 = vst [vmem:[%s2442_s9] sm:$0x1] (!%p1567_p10), %v1893_v32 }
  0x37 PF: > { %v1861_v33 = vld [vmem:[%s2438_s5] sm:$0xff]   ;;  %v1862_v34 = vld [vmem:[%s2438_s5 + $0x8] sm:$0xff]   ;;  %v1863_v35 = vld [vmem:[%s2438_s5 + $0x10] sm:$0xff]   ;;  %v613_v36 = vlaneseq  ;;  %v1894_v44 = vmov 1966171168   ;;  %s1651_s23 = sshll.u32 (%p1976_p5), %s1961_s12, 6 }
  0x38   : > { %1771 = vmatprep.subr.bf16.mxu0 %v1861_v33  ;;  %1819 = vmatprep.subr.bf16.mxu1 %v1861_v33  ;;  %v1864_v37 = vld [vmem:[%s2438_s5 + $0x18] sm:$0xff]   ;;  %v490_v38 = vld [vmem:[%s2057_s28] sm:$0xff]  ;;  %v491_v39 = vld [vmem:[%s2057_s28 + $0x8] sm:$0xff]  ;;  %v611_v45 = vunpack.c.l.s4 %v1894_v44  ;;  %s1325_s26 = scalar_lea.vmem (%p1976_p5), %s2440_s7, %s1651_s23 }
  0x39   : > { %1772 = vmatpush3.bf16.msra.mxu0 %v1861_v33  ;;  %1827 = vmatpush3.bf16.msra.mxu1 %v1861_v33  ;;  %v2085_v40 = vld [vmem:[%s2436_s3] ss:$0 sm:$0xff]  ;;  %v614_v46 = vshrl.u32 %v613_v36, 7  ;;  %v492_v49 = vld [vmem:[%s2057_s28 + $0x10] sm:$0xff]  ;;  %v493_v50 = vld [vmem:[%s2057_s28 + $0x18] sm:$0xff] }
  0x3a   : > { %1773 = vmatprep.subr.bf16.mxu0 %v1862_v34  ;;  %1820 = vmatprep.subr.bf16.mxu1 %v1862_v34  ;;  %v529_v41 = vsub.f32 %v490_v38, %v2085_v40  ;;  %v530_v42 = vsub.f32 %v491_v39, %v2085_v40  ;;  %v2092_v43 = vld [vmem:[%s2437_s4] ss:$0 sm:$0xff]  ;;  %v612_v52 = vunpack.c.0.s8 %v611_v45  ;;  %v531_v54 = vsub.f32 %v492_v49, %v2085_v40  ;;  %v495_v56 = vld [vmem:[%s2057_s28 + $0x28] sm:$0xff]  ;;  %v496_v57 = vld [vmem:[%s2057_s28 + $0x30] sm:$0xff] }
  0x3b   : > { %v2097_v47 = vld [vmem:[%s2438_s5 + $0x20] sm:$0xff]   ;;  %v2107_v53 = vsub.s32 0, %v614_v46  ;;  %v532_v59 = vsub.f32 %v493_v50, %v2085_v40  ;;  %v534_v61 = vsub.f32 %v495_v56, %v2085_v40  ;;  %v497_v62 = vld [vmem:[%s2057_s28 + $0x38] sm:$0xff]  ;;  %v535_v63 = vsub.f32 %v496_v57, %v2085_v40  ;;  %v499_v4 = vld [vmem:[%s2057_s28 + $0x48] sm:$0xff] }
  0x3c   : > { %v2102_v48 = vld.sshfl [vmem:[%s2434_s1] sm:$0x11 pattern:$0x75316420]  ;;  %v568_v51 = vmul.f32 %v2092_v43, %v529_v41  ;;  %v569_v1 = vmul.f32 %v2092_v43, %v530_v42  ;;  %v2125_v2 = vsub.s32 %v612_v52, %v614_v46  ;;  %v536_v3 = vsub.f32 %v497_v62, %v2085_v40  ;;  %v500_v6 = vld [vmem:[%s2057_s28 + $0x50] sm:$0xff]  ;;  %v501_v14 = vld [vmem:[%s2057_s28 + $0x58] sm:$0xff] }
  0x3d   : > { %1774 = vmatpush3.bf16.msra.mxu0 %v1862_v34  ;;  %1828 = vmatpush3.bf16.msra.mxu1 %v1862_v34  ;;  %v494_v55 = vld [vmem:[%s2057_s28 + $0x20] sm:$0xff]  ;;  %v570_v7 = vmul.f32 %v2092_v43, %v531_v54  ;;  %v571_v8 = vmul.f32 %v2092_v43, %v532_v59  ;;  %v573_v10 = vmul.f32 %v2092_v43, %v534_v61  ;;  %v1866_v16 = vld [vmem:[%s2438_s5 + $0x28] sm:$0xff]   ;;  %v1867_v31 = vld [vmem:[%s2438_s5 + $0x30] sm:$0xff]  }
  0x3e   : > { %1775 = vmatprep.subr.bf16.mxu0 %v1863_v35  ;;  %1821 = vmatprep.subr.bf16.mxu1 %v1863_v35  ;;  %v2116_v58 = vld.sshfl [vmem:[%s2435_s2] sm:$0x11 pattern:$0x75316420]  ;;  %v533_v60 = vsub.f32 %v494_v55, %v2085_v40  ;;  %v616_v11 = vrot.slane %v2102_v48, %v2125_v2  ;;  %v574_v13 = vmul.f32 %v2092_v43, %v535_v63  ;;  %v503_v41 = vld [vmem:[%s2057_s28 + $0x68] sm:$0xff]  ;;  %v504_v42 = vld [vmem:[%s2057_s28 + $0x70] sm:$0xff] }
  0x3f   : > { %v498_v0 = vld [vmem:[%s2057_s28 + $0x40] sm:$0xff]  ;;  %v682_v12 = vrot.slane %v2116_v58, %v2125_v2  ;;  %v575_v17 = vmul.f32 %v2092_v43, %v536_v3  ;;  %v538_v18 = vsub.f32 %v499_v4, %v2085_v40  ;;  %v539_v19 = vsub.f32 %v500_v6, %v2085_v40 }
  0x40   : > { %v537_v5 = vsub.f32 %v498_v0, %v2085_v40  ;;  %v572_v9 = vmul.f32 %v2092_v43, %v533_v60  ;;  %v2142_v15 = vld [vmem:[%s2057_s28 + $0x60] sm:$0xff]  ;;  %v2153_v20 = vrot.slane %v616_v11, %v2107_v53  ;;  %v540_v24 = vsub.f32 %v501_v14, %v2085_v40  ;;  %v505_v0 = vld [vmem:[%s2057_s28 + $0x78] sm:$0xff] }
  0x41   : > { %1776 = vmatpush3.bf16.msra.mxu0 %v1863_v35  ;;  %1829 = vmatpush3.bf16.msra.mxu1 %v1863_v35  ;;  %v2156_v21 = vrot.slane %v682_v12, %v2107_v53  ;;  %v577_v23 = vmul.f32 %v2092_v43, %v538_v18  ;;  %v578_v25 = vmul.f32 %v2092_v43, %v539_v19  ;;  %v507_v18 = vld [vmem:[%s2057_s28 + $0x88] sm:$0xff] }
  0x42   : > { %1777 = vmatprep.subr.bf16.mxu0 %v1864_v37  ;;  %1822 = vmatprep.subr.bf16.mxu1 %v1864_v37  ;;  %v576_v22 = vmul.f32 %v2092_v43, %v537_v5  ;;  %v541_v26 = vsub.f32 %v2142_v15, %v2085_v40  ;;  %v634_v27 = vmul.f32 %v2153_v20, %v568_v51 }
  0x43   : > { %v635_v28 = vmul.f32 %v2153_v20, %v569_v1  ;;  %v636_v29 = vmul.f32 %v2153_v20, %v570_v7  ;;  %v637_v30 = vmul.f32 %v2153_v20, %v571_v8  ;;  %v638_v32 = vmul.f32 %v2153_v20, %v572_v9 }
  0x44   : > { %v639_v33 = vmul.f32 %v2153_v20, %v573_v10  ;;  %v640_v34 = vmul.f32 %v2153_v20, %v574_v13  ;;  %v641_v35 = vmul.f32 %v2153_v20, %v575_v17  ;;  %v700_v36 = vadd.f32 %v2156_v21, %v634_v27  ;;  %v506_v13 = vld [vmem:[%s2057_s28 + $0x80] sm:$0xff] }
  0x45   : > { %1778 = vmatpush3.bf16.msra.mxu0 %v1864_v37  ;;  %1830 = vmatpush3.bf16.msra.mxu1 %v1864_v37  ;;  %v701_v37 = vadd.f32 %v2156_v21, %v635_v28  ;;  %v702_v38 = vadd.f32 %v2156_v21, %v636_v29  ;;  %v703_v39 = vadd.f32 %v2156_v21, %v637_v30 }
  0x46   : > { %1779 = vmatprep.subr.bf16.mxu0 %v2097_v47  ;;  %1823 = vmatprep.subr.bf16.mxu1 %v2097_v47  ;;  %v704_v44 = vadd.f32 %v2156_v21, %v638_v32  ;;  %v705_v45 = vadd.f32 %v2156_v21, %v639_v33  ;;  %v706_v46 = vadd.f32 %v2156_v21, %v640_v34  ;;  %v732_v50 = vmax.f32 %v700_v36, 0.0  ;;  %v508_v33 = vld [vmem:[%s2057_s28 + $0x90] sm:$0xff] }
  0x47   : > { %v707_v49 = vadd.f32 %v2156_v21, %v641_v35  ;;  %v733_v51 = vmax.f32 %v701_v37, 0.0  ;;  %v734_v52 = vmax.f32 %v702_v38, 0.0  ;;  %v735_v54 = vmax.f32 %v703_v39, 0.0  ;;  %v509_v38 = vld [vmem:[%s2057_s28 + $0x98] sm:$0xff]  ;;  %v510_v39 = vld [vmem:[%s2057_s28 + $0xa0] sm:$0xff] }
  0x48   : > { %v736_v55 = vmax.f32 %v704_v44, 0.0  ;;  %v542_v56 = vsub.f32 %v503_v41, %v2085_v40  ;;  %v543_v57 = vsub.f32 %v504_v42, %v2085_v40  ;;  %v609_v59 = vcombine.high %v2102_v48, %v2102_v48 }
  0x49   : > { %1780 = vmatpush3.bf16.msra.mxu0 %v2097_v47  ;;  %1831 = vmatpush3.bf16.msra.mxu1 %v2097_v47  ;;  %v1868_v47 = vld [vmem:[%s2438_s5 + $0x38] sm:$0xff]   ;;  %v764_v60 = vpack.c.bf16 %v733_v51, %v732_v50  ;;  %v737_v61 = vmax.f32 %v705_v45, 0.0  ;;  %v642_v62 = vmul.f32 %v2153_v20, %v576_v22  ;;  %v643_v63 = vmul.f32 %v2153_v20, %v577_v23  ;;  %v511_v51 = vld [vmem:[%s2057_s28 + $0xa8] sm:$0xff] }
  0x4a   : > { %1781 = vmatprep.subr.bf16.mxu0 %v1866_v16  ;;  %1824 = vmatprep.subr.bf16.mxu1 %v1866_v16  ;;  %v765_v1 = vpack.c.bf16 %v735_v54, %v734_v52  ;;  %v738_v3 = vmax.f32 %v706_v46, 0.0  ;;  %v579_v4 = vmul.f32 %v2092_v43, %v540_v24  ;;  %v644_v5 = vmul.f32 %v2153_v20, %v578_v25 }
  0x4b   : > { %1787 = vmatprep.mubr.bf16.mxu0 %v764_v60  ;;  %v739_v48 = vmax.f32 %v707_v49, 0.0  ;;  %v708_v6 = vadd.f32 %v2156_v21, %v642_v62  ;;  %v709_v7 = vadd.f32 %v2156_v21, %v643_v63  ;;  %v580_v8 = vmul.f32 %v2092_v43, %v541_v26  ;;  %v514_v62 = vld [vmem:[%s2057_s28 + $0xc0] sm:$0xff] }
  0x4c   : > { %v645_v9 = vmul.f32 %v2153_v20, %v579_v4  ;;  %v710_v10 = vadd.f32 %v2156_v21, %v644_v5  ;;  %v581_v11 = vmul.f32 %v2092_v43, %v542_v56  ;;  %v544_v12 = vsub.f32 %v505_v0, %v2085_v40  ;;  %v512_v56 = vld [vmem:[%s2057_s28 + $0xb0] sm:$0xff] }
  0x4d   : > { %1782 = vmatpush3.bf16.msra.mxu0 %v1866_v16  ;;  %1832 = vmatpush3.bf16.msra.mxu1 %v1866_v16  ;;  %v766_v14 = vpack.c.bf16 %v737_v61, %v736_v55  ;;  %v740_v15 = vmax.f32 %v708_v6, 0.0  ;;  %v646_v16 = vmul.f32 %v2153_v20, %v580_v8  ;;  %v582_v17 = vmul.f32 %v2092_v43, %v543_v57  ;;  %v513_v57 = vld [vmem:[%s2057_s28 + $0xb8] sm:$0xff] }
  0x4e   : > { %1783 = vmatprep.subr.bf16.mxu0 %v1867_v31  ;;  %1825 = vmatprep.subr.bf16.mxu1 %v1867_v31  ;;  %v741_v19 = vmax.f32 %v709_v7, 0.0  ;;  %v711_v22 = vadd.f32 %v2156_v21, %v645_v9  ;;  %v647_v23 = vmul.f32 %v2153_v20, %v581_v11  ;;  %v583_v24 = vmul.f32 %v2092_v43, %v544_v12 }
  0x4f   : > { %v742_v25 = vmax.f32 %v710_v10, 0.0  ;;  %v712_v26 = vadd.f32 %v2156_v21, %v646_v16  ;;  %v648_v27 = vmul.f32 %v2153_v20, %v582_v17  ;;  %v545_v28 = vsub.f32 %v506_v13, %v2085_v40  ;;  %v515_v16 = vld [vmem:[%s2057_s28 + $0xc8] sm:$0xff] }
  0x50   : > { %v743_v29 = vmax.f32 %v711_v22, 0.0  ;;  %v713_v30 = vadd.f32 %v2156_v21, %v647_v23  ;;  %v546_v32 = vsub.f32 %v507_v18, %v2085_v40  ;;  %v767_v34 = vpack.c.bf16 %v739_v48, %v738_v3  ;;  %v516_v23 = vld [vmem:[%s2057_s28 + $0xd0] sm:$0xff] }
  0x51   : > { %1784 = vmatpush3.bf16.msra.mxu0 %v1867_v31  ;;  %1833 = vmatpush3.bf16.msra.mxu1 %v1867_v31  ;;  %v649_v31 = vmul.f32 %v2153_v20, %v583_v24  ;;  %v2221_v35 = vadd.f32 %v2156_v21, %v648_v27  ;;  %v584_v36 = vmul.f32 %v2092_v43, %v545_v28  ;;  %v744_v20 = vmax.f32 %v712_v26, 0.0  ;;  %v517_v28 = vld [vmem:[%s2057_s28 + $0xd8] sm:$0xff] }
  0x52   : > { %1785 = vmatprep.subr.bf16.mxu0 %v1868_v47  ;;  %1826 = vmatprep.subr.bf16.mxu1 %v1868_v47  ;;  %v623_v37 = vrot.slane %v609_v59, %v2125_v2  ;;  %v768_v41 = vpack.c.bf16 %v741_v19, %v740_v15  ;;  %v745_v42 = vmax.f32 %v713_v30, 0.0  ;;  %v585_v44 = vmul.f32 %v2092_v43, %v546_v32 }
  0x53   : > { %v2228_v45 = vpack.c.bf16 %v743_v29, %v742_v25  ;;  %v675_v49 = vcombine.high %v2116_v58, %v2116_v58  ;;  %v547_v50 = vsub.f32 %v508_v33, %v2085_v40  ;;  %v2238_v52 = vadd.f32 %v2156_v21, %v649_v31  ;;  %v518_v33 = vld [vmem:[%s2057_s28 + $0xe0] sm:$0xff] }
  0x54   : > { %v2231_v46 = vrot.slane %v623_v37, %v2107_v53  ;;  %v746_v54 = vmax.f32 %v2221_v35, 0.0  ;;  %v549_v55 = vsub.f32 %v510_v39, %v2085_v40  ;;  %v2250_v63 = vpack.c.bf16 %v745_v42, %v744_v20  ;;  %v519_v39 = vld [vmem:[%s2057_s28 + $0xe8] sm:$0xff] }
  0x55   : > { %1786 = vmatpush3.bf16.msra.mxu0 %v1868_v47  ;;  %1834 = vmatpush3.bf16.msra.mxu1 %v1868_v47  ;;  %v548_v47 = vsub.f32 %v509_v38, %v2085_v40  ;;  %v689_v58 = vrot.slane %v675_v49, %v2125_v2  ;;  %v586_v61 = vmul.f32 %v2092_v43, %v547_v50 }
  0x56   : > { %v650_v59 = vmul.f32 %v2231_v46, %v584_v36  ;;  %v651_v60 = vmul.f32 %v2231_v46, %v585_v44  ;;  %v550_v0 = vsub.f32 %v511_v51, %v2085_v40  ;;  %v551_v5 = vsub.f32 %v512_v56, %v2085_v40 }
  0x57   : > { %v587_v21 = vmul.f32 %v2092_v43, %v548_v47  ;;  %v2256_v3 = vrot.slane %v689_v58, %v2107_v53  ;;  %v652_v4 = vmul.f32 %v2231_v46, %v586_v61  ;;  %v552_v2 = vsub.f32 %v513_v57, %v2085_v40  ;;  %v521_v58 = vld [vmem:[%s2057_s28 + $0xf8] sm:$0xff] }
  0x58   : > { %1788 = vmatmul.mubr.bf16.vlgmr.msra.gmra.mrb[0].mxu0 %v765_v1  ;;  %v588_v1 = vmul.f32 %v2092_v43, %v549_v55  ;;  %v589_v6 = vmul.f32 %v2092_v43, %v550_v0  ;;  %v553_v8 = vsub.f32 %v514_v62, %v2085_v40  ;;  %v590_v11 = vmul.f32 %v2092_v43, %v551_v5 }
  0x59   : > { %1791 = vmatprep.mubr.bf16.mxu0 %v766_v14  ;;  %v653_v48 = vmul.f32 %v2231_v46, %v587_v21  ;;  %v716_v9 = vadd.f32 %v2256_v3, %v650_v59  ;;  %v717_v53 = vadd.f32 %v2256_v3, %v651_v60  ;;  %v718_v10 = vadd.f32 %v2256_v3, %v652_v4  ;;  %v520_v60 = vld [vmem:[%s2057_s28 + $0xf0] sm:$0xff] }
  0x5a   : > { %v654_v7 = vmul.f32 %v2231_v46, %v588_v1  ;;  %v655_v13 = vmul.f32 %v2231_v46, %v589_v6  ;;  %v591_v15 = vmul.f32 %v2092_v43, %v552_v2  ;;  %v656_v22 = vmul.f32 %v2231_v46, %v590_v11 }
  0x5b   : > { %v719_v12 = vadd.f32 %v2256_v3, %v653_v48  ;;  %v748_v17 = vmax.f32 %v716_v9, 0.0  ;;  %v749_v18 = vmax.f32 %v717_v53, 0.0  ;;  %v750_v19 = vmax.f32 %v718_v10, 0.0 }
  0x5c   : > { %v720_v14 = vadd.f32 %v2256_v3, %v654_v7  ;;  %v721_v25 = vadd.f32 %v2256_v3, %v655_v13  ;;  %v657_v27 = vmul.f32 %v2231_v46, %v591_v15  ;;  %v722_v30 = vadd.f32 %v2256_v3, %v656_v22 }
  0x5d   : > { %v751_v24 = vmax.f32 %v719_v12, 0.0  ;;  %v772_v29 = vpack.c.bf16 %v749_v18, %v748_v17  ;;  %v554_v31 = vsub.f32 %v515_v16, %v2085_v40  ;;  %v592_v32 = vmul.f32 %v2092_v43, %v553_v8 }
  0x5e   : > { %v752_v26 = vmax.f32 %v720_v14, 0.0  ;;  %v753_v36 = vmax.f32 %v721_v25, 0.0  ;;  %v723_v37 = vadd.f32 %v2256_v3, %v657_v27  ;;  %v555_v38 = vsub.f32 %v516_v23, %v2085_v40 }
  0x5f   : > { %1803 = vmatprep.mubr.bf16.mxu1 %v772_v29  ;;  %v593_v20 = vmul.f32 %v2092_v43, %v554_v31  ;;  %v658_v42 = vmul.f32 %v2231_v46, %v592_v32  ;;  %v556_v44 = vsub.f32 %v517_v28, %v2085_v40  ;;  %v557_v47 = vsub.f32 %v518_v33, %v2085_v40 }
  0x60   : > { %1792 = vmatmul.mubr.bf16.gmra.mrb[4].mxu0 %v767_v34  ;;  %v773_v34 = vpack.c.bf16 %v751_v24, %v750_v19  ;;  %v774_v49 = vpack.c.bf16 %v753_v36, %v752_v26  ;;  %v755_v50 = vmax.f32 %v723_v37, 0.0  ;;  %v594_v51 = vmul.f32 %v2092_v43, %v555_v38 }
  0x61   : > { %1795 = vmatprep.mubr.bf16.mxu0 %v768_v41  ;;  %v754_v41 = vmax.f32 %v722_v30, 0.0  ;;  %v659_v55 = vmul.f32 %v2231_v46, %v593_v20  ;;  %v724_v56 = vadd.f32 %v2256_v3, %v658_v42  ;;  %v595_v57 = vmul.f32 %v2092_v43, %v556_v44 }
  0x62   : > { %1804 = vmatmul.mubr.bf16.vlgmr.msra.gmra.mrb[0].mxu1 %v773_v34  ;;  %v558_v59 = vsub.f32 %v519_v39, %v2085_v40  ;;  %v747_v61 = vmax.f32 %v2238_v52, 0.0  ;;  %v660_v21 = vmul.f32 %v2231_v46, %v594_v51  ;;  %v596_v0 = vmul.f32 %v2092_v43, %v557_v47 }
  0x63   : > { %1807 = vmatprep.mubr.bf16.mxu1 %v774_v49  ;;  %v775_v62 = vpack.c.bf16 %v755_v50, %v754_v41  ;;  %v725_v1 = vadd.f32 %v2256_v3, %v659_v55  ;;  %v756_v4 = vmax.f32 %v724_v56, 0.0  ;;  %v661_v5 = vmul.f32 %v2231_v46, %v595_v57 }
  0x64   : > { %v597_v2 = vmul.f32 %v2092_v43, %v558_v59  ;;  %v726_v48 = vadd.f32 %v2256_v3, %v660_v21  ;;  %v559_v52 = vsub.f32 %v520_v60, %v2085_v40  ;;  %v560_v6 = vsub.f32 %v521_v58, %v2085_v40 }
  0x65   : > { %v757_v7 = vmax.f32 %v725_v1, 0.0  ;;  %v727_v8 = vadd.f32 %v2256_v3, %v661_v5  ;;  %v771_v9 = vpack.c.bf16 %v747_v61, %v746_v54 }
  0x66   : > { %v598_v10 = vmul.f32 %v2092_v43, %v559_v52  ;;  %v599_v11 = vmul.f32 %v2092_v43, %v560_v6  ;;  %v758_v14 = vmax.f32 %v726_v48, 0.0 }
  0x67   : > { %v776_v12 = vpack.c.bf16 %v757_v7, %v756_v4  ;;  %v759_v40 = vmax.f32 %v727_v8, 0.0 }
  0x68   : > { %1796 = vmatmul.mubr.bf16.gmra.mrb[8].mxu0 %v2228_v45  ;;  %v662_v45 = vmul.f32 %v2231_v46, %v596_v0  ;;  %v664_v15 = vmul.f32 %v2231_v46, %v598_v10  ;;  %v665_v16 = vmul.f32 %v2231_v46, %v599_v11 }
  0x69   : > { %1799 = vmatprep.mubr.bf16.mxu0 %v2250_v63  ;;  %v663_v63 = vmul.f32 %v2231_v46, %v597_v2  ;;  %v777_v54 = vpack.c.bf16 %v759_v40, %v758_v14  ;;  %v2324_v46 = vld [vmem:[%s2439_s6] ss:$0 sm:$0xff] }
  0x6a   : > { %v728_v53 = vadd.f32 %v2256_v3, %v662_v45  ;;  %1808 = vmatmul.mubr.bf16.gmra.mrb[4].mxu1 %v775_v62  ;;  %v730_v18 = vadd.f32 %v2256_v3, %v664_v15  ;;  %v731_v19 = vadd.f32 %v2256_v3, %v665_v16 }
  0x6b   : > { %v729_v13 = vadd.f32 %v2256_v3, %v663_v63  ;;  %1811 = vmatprep.mubr.bf16.mxu1 %v776_v12 }
  0x6c   : > { %v760_v17 = vmax.f32 %v728_v53, 0.0  ;;  %v762_v22 = vmax.f32 %v730_v18, 0.0  ;;  %v763_v23 = vmax.f32 %v731_v19, 0.0 }
  0x6d   : > { %v761_v35 = vmax.f32 %v729_v13, 0.0 }
  0x6e   : > { %v779_v24 = vpack.c.bf16 %v763_v23, %v762_v22 }
  0x6f   : > { %v778_v43 = vpack.c.bf16 %v761_v35, %v760_v17 }
  0x70   : > { %1800 = vmatmul.mubr.bf16.gmra.mrb[12].mxu0 %v771_v9 }
  0x72   : > { %1812 = vmatmul.mubr.bf16.gmra.mrb[8].mxu1 %v777_v54 }
  0x73   : > { %1815 = vmatprep.mubr.bf16.mxu1 %v778_v43 }
  0x7a   : > { %1816 = vmatmul.mubr.bf16.gmra.mrb[12].mxu1 %v779_v24 }
 0x12b   : > { %v1789_v25 = vpop.f32.mrb[0].mxu0 }
 0x12c   : > { %v885_v26 = vpop.f32.mrb[1].mxu0  ;;  %v894_v28 = vadd.f32 %v1789_v25, %v2324_v46 }
 0x12d   : > { %v1790_v27 = vpop.f32.mrb[2].mxu0  ;;  %v886_v30 = vadd.f32 %v2324_v46, %v885_v26 }
 0x12e   : > { %v897_v3 = vadd.f32 %v1790_v27, %v2324_v46  ;;  %v888_v29 = vpop.f32.mrb[3].mxu0 }
 0x12f   : > { %v889_v31 = vadd.f32 %v2324_v46, %v888_v29 }
 0x130   : > { %v1013_v32 = vpack.c.bf16 %v897_v3, %v894_v28 }
 0x131   : > { %v1012_v33 = vpack.c.bf16 %v889_v31, %v886_v30 }
 0x132   : > { %1732 = vst [vmem:[%s2059_s29 + $0x8] sm:$0xff] %v1013_v32   ;;  %v1174_v34 = vunpack.c.l.bf16 %v1013_v32  ;;  %v1175_v41 = vunpack.c.h.bf16 %v1013_v32 }
 0x133   : > { %1656 = vst [vmem:[%s2059_s29] sm:$0xff] %v1012_v33   ;;  %v1172_v36 = vunpack.c.l.bf16 %v1012_v33  ;;  %v1173_v37 = vunpack.c.h.bf16 %v1012_v33  ;;  %v1793_v38 = vpop.f32.mrb[4].mxu0 }
 0x134   : > { %v901_v39 = vpop.f32.mrb[5].mxu0  ;;  %v1247_v50 = vmul.f32 %v1174_v34, %v1174_v34  ;;  %v910_v51 = vadd.f32 %v1793_v38, %v2324_v46  ;;  %v1248_v61 = vmul.f32 %v1175_v41, %v1175_v41 }
 0x135   : > { %v1205_v20 = vadd.f32 %v1173_v37, %v1172_v36  ;;  %v1245_v42 = vmul.f32 %v1172_v36, %v1172_v36  ;;  %v1246_v44 = vmul.f32 %v1173_v37, %v1173_v37  ;;  %v1794_v49 = vpop.f32.mrb[6].mxu0  ;;  %v902_v59 = vadd.f32 %v2324_v46, %v901_v39  ;;  %v1805_v1 = vpop.f32.mrb[0].mxu1 }
 0x136   : > { %v913_v47 = vadd.f32 %v1794_v49, %v2324_v46  ;;  %v904_v55 = vpop.f32.mrb[7].mxu0  ;;  %v958_v4 = vadd.f32 %v1805_v1, %v2324_v46  ;;  %v949_v5 = vpop.f32.mrb[1].mxu1 }
 0x137   : > { %v1206_v56 = vadd.f32 %v1205_v20, %v1174_v34  ;;  %v1277_v57 = vadd.f32 %v1246_v44, %v1245_v42  ;;  %v905_v60 = vadd.f32 %v2324_v46, %v904_v55  ;;  %v1806_v6 = vpop.f32.mrb[2].mxu1  ;;  %v950_v63 = vadd.f32 %v2324_v46, %v949_v5 }
 0x138   : > { %v1015_v58 = vpack.c.bf16 %v913_v47, %v910_v51  ;;  %v961_v9 = vadd.f32 %v1806_v6, %v2324_v46  ;;  %v952_v53 = vpop.f32.mrb[3].mxu1 }
 0x139   : > { %v1278_v62 = vadd.f32 %v1277_v57, %v1247_v50  ;;  %v1014_v21 = vpack.c.bf16 %v905_v60, %v902_v59  ;;  %v1207_v0 = vadd.f32 %v1206_v56, %v1175_v41  ;;  %v953_v35 = vadd.f32 %v2324_v46, %v952_v53 }
 0x13a   : > { %1734 = vst [vmem:[%s2059_s29 + $0x18] sm:$0xff] %v1015_v58   ;;  %v1178_v7 = vunpack.c.l.bf16 %v1015_v58  ;;  %v1179_v10 = vunpack.c.h.bf16 %v1015_v58  ;;  %v2343_v17 = vpack.c.bf16 %v961_v9, %v958_v4 }
 0x13b   : > { %1733 = vst [vmem:[%s2059_s29 + $0x10] sm:$0xff] %v1014_v21   ;;  %v1176_v2 = vunpack.c.l.bf16 %v1014_v21  ;;  %v1177_v48 = vunpack.c.h.bf16 %v1014_v21  ;;  %v1279_v45 = vadd.f32 %v1278_v62, %v1248_v61  ;;  %v1797_v52 = vpop.f32.mrb[8].mxu0  ;;  %v2350_v23 = vpack.c.bf16 %v953_v35, %v950_v63 }
 0x13c   : > { %v917_v8 = vpop.f32.mrb[9].mxu0  ;;  %v926_v13 = vadd.f32 %v1797_v52, %v2324_v46  ;;  %1740 = vst [vmem:[%s2059_s29 + $0x48] sm:$0xff] %v2343_v17   ;;  %v1251_v24 = vmul.f32 %v1178_v7, %v1178_v7  ;;  %v1252_v3 = vmul.f32 %v1179_v10, %v1179_v10 }
 0x13d   : > { %v1208_v11 = vadd.f32 %v1207_v0, %v1176_v2  ;;  %v1249_v12 = vmul.f32 %v1176_v2, %v1176_v2  ;;  %v1798_v14 = vpop.f32.mrb[10].mxu0  ;;  %v1250_v40 = vmul.f32 %v1177_v48, %v1177_v48  ;;  %v918_v19 = vadd.f32 %v2324_v46, %v917_v8  ;;  %v1809_v28 = vpop.f32.mrb[4].mxu1  ;;  %1739 = vst [vmem:[%s2059_s29 + $0x40] sm:$0xff] %v2350_v23  }
 0x13e   : > { %v929_v15 = vadd.f32 %v1798_v14, %v2324_v46  ;;  %v920_v16 = vpop.f32.mrb[11].mxu0  ;;  %v965_v29 = vpop.f32.mrb[5].mxu1  ;;  %v974_v58 = vadd.f32 %v1809_v28, %v2324_v46 }
 0x13f   : > { %v1209_v54 = vadd.f32 %v1208_v11, %v1177_v48  ;;  %v1280_v18 = vadd.f32 %v1279_v45, %v1249_v12  ;;  %v921_v43 = vadd.f32 %v2324_v46, %v920_v16  ;;  %v1810_v36 = vpop.f32.mrb[6].mxu1  ;;  %v966_v48 = vadd.f32 %v2324_v46, %v965_v29 }
 0x140   : > { %v1017_v22 = vpack.c.bf16 %v929_v15, %v926_v13  ;;  %v968_v39 = vpop.f32.mrb[7].mxu1  ;;  %v977_v62 = vadd.f32 %v1810_v36, %v2324_v46 }
 0x141   : > { %v1210_v25 = vadd.f32 %v1209_v54, %v1178_v7  ;;  %v1281_v26 = vadd.f32 %v1280_v18, %v1250_v40  ;;  %v1016_v27 = vpack.c.bf16 %v921_v43, %v918_v19  ;;  %v969_v52 = vadd.f32 %v2324_v46, %v968_v39 }
 0x142   : > { %1736 = vst [vmem:[%s2059_s29 + $0x28] sm:$0xff] %v1017_v22   ;;  %v1182_v37 = vunpack.c.l.bf16 %v1017_v22  ;;  %v1183_v41 = vunpack.c.h.bf16 %v1017_v22  ;;  %v2364_v45 = vpack.c.bf16 %v977_v62, %v974_v58 }
 0x143   : > { %v1282_v30 = vadd.f32 %v1281_v26, %v1251_v24  ;;  %1735 = vst [vmem:[%s2059_s29 + $0x20] sm:$0xff] %v1016_v27   ;;  %v1180_v31 = vunpack.c.l.bf16 %v1016_v27  ;;  %v1181_v32 = vunpack.c.h.bf16 %v1016_v27  ;;  %v1211_v33 = vadd.f32 %v1210_v25, %v1179_v10  ;;  %v1801_v34 = vpop.f32.mrb[12].mxu0 }
 0x144   : > { %v933_v38 = vpop.f32.mrb[13].mxu0  ;;  %v942_v51 = vadd.f32 %v1801_v34, %v2324_v46  ;;  %v1255_v21 = vmul.f32 %v1182_v37, %v1182_v37  ;;  %v1256_v2 = vmul.f32 %v1183_v41, %v1183_v41  ;;  %1742 = vst [vmem:[%s2059_s29 + $0x58] sm:$0xff] %v2364_v45   ;;  %v1022_v35 = vpack.c.bf16 %v969_v52, %v966_v48 }
 0x145   : > { %v1212_v20 = vadd.f32 %v1211_v33, %v1180_v31  ;;  %v1253_v42 = vmul.f32 %v1180_v31, %v1180_v31  ;;  %v1283_v44 = vadd.f32 %v1282_v30, %v1252_v3  ;;  %v1802_v49 = vpop.f32.mrb[14].mxu0  ;;  %v1254_v50 = vmul.f32 %v1181_v32, %v1181_v32  ;;  %v1813_v5 = vpop.f32.mrb[8].mxu1 }
 0x146   : > { %v934_v47 = vadd.f32 %v2324_v46, %v933_v38  ;;  %v945_v55 = vadd.f32 %v1802_v49, %v2324_v46  ;;  %v936_v56 = vpop.f32.mrb[15].mxu0  ;;  %v981_v6 = vpop.f32.mrb[9].mxu1  ;;  %v990_v40 = vadd.f32 %v1813_v5, %v2324_v46  ;;  %v1188_v25 = vunpack.c.l.bf16 %v2350_v23  ;;  %1741 = vst [vmem:[%s2059_s29 + $0x50] sm:$0xff] %v1022_v35  }
 0x147   : > { %v1213_v57 = vadd.f32 %v1212_v20, %v1181_v32  ;;  %v1284_v59 = vadd.f32 %v1283_v44, %v1253_v42  ;;  %v937_v60 = vadd.f32 %v2324_v46, %v936_v56  ;;  %v1814_v53 = vpop.f32.mrb[10].mxu1  ;;  %v982_v54 = vadd.f32 %v2324_v46, %v981_v6 }
 0x148   : > { %v1019_v61 = vpack.c.bf16 %v945_v55, %v942_v51  ;;  %v984_v11 = vpop.f32.mrb[11].mxu1  ;;  %v993_v43 = vadd.f32 %v1814_v53, %v2324_v46  ;;  %v1189_v34 = vunpack.c.h.bf16 %v2350_v23  ;;  %v1190_v20 = vunpack.c.l.bf16 %v2343_v17 }
 0x149   : > { %v1214_v0 = vadd.f32 %v1213_v57, %v1182_v37  ;;  %v1285_v1 = vadd.f32 %v1284_v59, %v1254_v50  ;;  %v1018_v4 = vpack.c.bf16 %v937_v60, %v934_v47  ;;  %v985_v22 = vadd.f32 %v2324_v46, %v984_v11 }
 0x14a   : > { %1738 = vst [vmem:[%s2059_s29 + $0x38] sm:$0xff] %v1019_v61   ;;  %v1186_v10 = vunpack.c.l.bf16 %v1019_v61  ;;  %v1187_v15 = vunpack.c.h.bf16 %v1019_v61  ;;  %v1025_v28 = vpack.c.bf16 %v993_v43, %v990_v40  ;;  %v1261_v44 = vmul.f32 %v1188_v25, %v1188_v25 }
 0x14b   : > { %v1286_v7 = vadd.f32 %v1285_v1, %v1255_v21  ;;  %1737 = vst [vmem:[%s2059_s29 + $0x30] sm:$0xff] %v1018_v4   ;;  %v1184_v8 = vunpack.c.l.bf16 %v1018_v4  ;;  %v1185_v63 = vunpack.c.h.bf16 %v1018_v4  ;;  %v1215_v9 = vadd.f32 %v1214_v0, %v1183_v41 }
 0x14c   : > { %v1259_v24 = vmul.f32 %v1186_v10, %v1186_v10  ;;  %v1024_v3 = vpack.c.bf16 %v985_v22, %v982_v54  ;;  %v1260_v32 = vmul.f32 %v1187_v15, %v1187_v15  ;;  %1744 = vst [vmem:[%s2059_s29 + $0x68] sm:$0xff] %v1025_v28   ;;  %v1191_v23 = vunpack.c.h.bf16 %v2343_v17 }
 0x14d   : > { %v1216_v12 = vadd.f32 %v1215_v9, %v1184_v8  ;;  %v1257_v13 = vmul.f32 %v1184_v8, %v1184_v8  ;;  %v1287_v14 = vadd.f32 %v1286_v7, %v1256_v2  ;;  %v1258_v16 = vmul.f32 %v1185_v63, %v1185_v63  ;;  %v1817_v29 = vpop.f32.mrb[12].mxu1 }
 0x14e   : > { %v1006_v30 = vadd.f32 %v1817_v29, %v2324_v46  ;;  %v997_v31 = vpop.f32.mrb[13].mxu1  ;;  %1743 = vst [vmem:[%s2059_s29 + $0x60] sm:$0xff] %v1024_v3   ;;  %v1262_v55 = vmul.f32 %v1189_v34, %v1189_v34  ;;  %v1263_v59 = vmul.f32 %v1190_v20, %v1190_v20  ;;  %v1192_v61 = vunpack.c.l.bf16 %v1022_v35 }
 0x14f   : > { %v1217_v18 = vadd.f32 %v1216_v12, %v1185_v63  ;;  %v1288_v19 = vadd.f32 %v1287_v14, %v1257_v13  ;;  %v1818_v37 = vpop.f32.mrb[14].mxu1  ;;  %v998_v38 = vadd.f32 %v2324_v46, %v997_v31  ;;  %v1264_v62 = vmul.f32 %v1191_v23, %v1191_v23 }
 0x150   : > { %v1009_v39 = vadd.f32 %v1818_v37, %v2324_v46  ;;  %v1000_v41 = vpop.f32.mrb[15].mxu1  ;;  %v1193_v0 = vunpack.c.h.bf16 %v1022_v35  ;;  %v1194_v4 = vunpack.c.l.bf16 %v2364_v45  ;;  %v1195_v17 = vunpack.c.h.bf16 %v2364_v45 }
 0x151   : > { %v1218_v26 = vadd.f32 %v1217_v18, %v1186_v10  ;;  %v1289_v27 = vadd.f32 %v1288_v19, %v1258_v16  ;;  %v1001_v51 = vadd.f32 %v2324_v46, %v1000_v41  ;;  %v1265_v46 = vmul.f32 %v1192_v61, %v1192_v61 }
 0x152   : > { %v1027_v50 = vpack.c.bf16 %v1009_v39, %v1006_v30  ;;  %v1266_v52 = vmul.f32 %v1193_v0, %v1193_v0  ;;  %v1267_v7 = vmul.f32 %v1194_v4, %v1194_v4  ;;  %v1196_v9 = vunpack.c.l.bf16 %v1024_v3 }
 0x153   : > { %v1290_v33 = vadd.f32 %v1289_v27, %v1259_v24  ;;  %v1219_v36 = vadd.f32 %v1218_v26, %v1187_v15  ;;  %v1026_v57 = vpack.c.bf16 %v1001_v51, %v998_v38  ;;  %v1268_v53 = vmul.f32 %v1195_v17, %v1195_v17 }
 0x154   : > { %1746 = vst [vmem:[%s2059_s29 + $0x78] sm:$0xff] %v1027_v50   ;;  %v1197_v11 = vunpack.c.h.bf16 %v1024_v3  ;;  %v1198_v13 = vunpack.c.l.bf16 %v1025_v28  ;;  %v1269_v40 = vmul.f32 %v1196_v9, %v1196_v9  ;;  %v1199_v16 = vunpack.c.h.bf16 %v1025_v28 }
 0x155   : > { %v1220_v42 = vadd.f32 %v1219_v36, %v1188_v25  ;;  %v1291_v49 = vadd.f32 %v1290_v33, %v1260_v32  ;;  %1745 = vst [vmem:[%s2059_s29 + $0x70] sm:$0xff] %v1026_v57   ;;  %v1200_v22 = vunpack.c.l.bf16 %v1026_v57  ;;  %v1201_v26 = vunpack.c.h.bf16 %v1026_v57 }
 0x156   : > { %v1270_v54 = vmul.f32 %v1197_v11, %v1197_v11  ;;  %v1271_v45 = vmul.f32 %v1198_v13, %v1198_v13  ;;  %v1272_v24 = vmul.f32 %v1199_v16, %v1199_v16  ;;  %v1202_v29 = vunpack.c.l.bf16 %v1027_v50 }
 0x157   : > { %v1221_v47 = vadd.f32 %v1220_v42, %v1189_v34  ;;  %v1292_v56 = vadd.f32 %v1291_v49, %v1261_v44  ;;  %v1273_v3 = vmul.f32 %v1200_v22, %v1200_v22  ;;  %v1203_v32 = vunpack.c.h.bf16 %v1027_v50  ;;  %v1204_v50 = vld [vmem:[%s2441_s8] sm:$0x1] }
 0x158   : > { %v1274_v34 = vmul.f32 %v1201_v26, %v1201_v26  ;;  %v1275_v28 = vmul.f32 %v1202_v29, %v1202_v29 }
 0x159   : > { %v1222_v60 = vadd.f32 %v1221_v47, %v1190_v20  ;;  %v1293_v58 = vadd.f32 %v1292_v56, %v1262_v55  ;;  %v1276_v39 = vmul.f32 %v1203_v32, %v1203_v32 }
 0x15b   : > { %v1294_v21 = vadd.f32 %v1293_v58, %v1263_v59  ;;  %v1223_v1 = vadd.f32 %v1222_v60, %v1191_v23 }
 0x15d   : > { %v1224_v5 = vadd.f32 %v1223_v1, %v1192_v61  ;;  %v1295_v2 = vadd.f32 %v1294_v21, %v1264_v62  ;;  %v1244_v61 = vld [vmem:[%s2442_s9] sm:$0x1] }
 0x15e   : > { %v1341_v1 = vld [vmem:[%s2059_s29] sm:$0xff] (%p1976_p5)  }
 0x15f   : > { %v1225_v48 = vadd.f32 %v1224_v5, %v1193_v0  ;;  %v1296_v6 = vadd.f32 %v1295_v2, %v1265_v46  ;;  %v1349_v5 = vld [vmem:[%s2059_s29 + $0x10] sm:$0xff] (%p1976_p5)   ;;  %v1353_v46 = vld [vmem:[%s2059_s29 + $0x18] sm:$0xff] (%p1976_p5)   ;;  %v1357_v2 = vld [vmem:[%s2059_s29 + $0x20] sm:$0xff] (%p1976_p5)   ;;  %1342 = vst [vmem:[%s1325_s26] sm:$0xff] (%p1976_p5), %v1341_v1  }
 0x160   : > { %1350 = vst [vmem:[%s1325_s26 + $0x10] sm:$0xff] (%p1976_p5), %v1349_v5   ;;  %1354 = vst [vmem:[%s1325_s26 + $0x18] sm:$0xff] (%p1976_p5), %v1353_v46  }
 0x161   : > { %v1226_v8 = vadd.f32 %v1225_v48, %v1194_v4  ;;  %v1297_v63 = vadd.f32 %v1296_v6, %v1266_v52  ;;  %v1345_v4 = vld [vmem:[%s2059_s29 + $0x8] sm:$0xff] (%p1976_p5)   ;;  %1358 = vst [vmem:[%s1325_s26 + $0x20] sm:$0xff] (%p1976_p5), %v1357_v2   ;;  %v1365_v48 = vld [vmem:[%s2059_s29 + $0x30] sm:$0xff] (%p1976_p5)   ;;  %v1369_v52 = vld [vmem:[%s2059_s29 + $0x38] sm:$0xff] (%p1976_p5)  }
 0x162   : > { %1346 = vst [vmem:[%s1325_s26 + $0x8] sm:$0xff] (%p1976_p5), %v1345_v4   ;;  %v1373_v6 = vld [vmem:[%s2059_s29 + $0x40] sm:$0xff] (%p1976_p5)   ;;  %1366 = vst [vmem:[%s1325_s26 + $0x30] sm:$0xff] (%p1976_p5), %v1365_v48  }
 0x163   : > { %v1298_v10 = vadd.f32 %v1297_v63, %v1267_v7  ;;  %v1227_v12 = vadd.f32 %v1226_v8, %v1195_v17  ;;  %v1361_v17 = vld [vmem:[%s2059_s29 + $0x28] sm:$0xff] (%p1976_p5)   ;;  %1370 = vst [vmem:[%s1325_s26 + $0x38] sm:$0xff] (%p1976_p5), %v1369_v52   ;;  %1374 = vst [vmem:[%s1325_s26 + $0x100] sm:$0xff] (%p1976_p5), %v1373_v6   ;;  %v1381_v8 = vld [vmem:[%s2059_s29 + $0x50] sm:$0xff] (%p1976_p5)  }
 0x164   : > { %1362 = vst [vmem:[%s1325_s26 + $0x28] sm:$0xff] (%p1976_p5), %v1361_v17   ;;  %v1377_v7 = vld [vmem:[%s2059_s29 + $0x48] sm:$0xff] (%p1976_p5)   ;;  %v1385_v63 = vld [vmem:[%s2059_s29 + $0x58] sm:$0xff] (%p1976_p5)   ;;  %1382 = vst [vmem:[%s1325_s26 + $0x110] sm:$0xff] (%p1976_p5), %v1381_v8  }
 0x165   : > { %v1228_v14 = vadd.f32 %v1227_v12, %v1196_v9  ;;  %v1299_v15 = vadd.f32 %v1298_v10, %v1268_v53  ;;  %1378 = vst [vmem:[%s1325_s26 + $0x108] sm:$0xff] (%p1976_p5), %v1377_v7   ;;  %1386 = vst [vmem:[%s1325_s26 + $0x118] sm:$0xff] (%p1976_p5), %v1385_v63   ;;  %v1389_v9 = vld [vmem:[%s2059_s29 + $0x60] sm:$0xff] (%p1976_p5)   ;;  %v1393_v53 = vld [vmem:[%s2059_s29 + $0x68] sm:$0xff] (%p1976_p5)  }
 0x166   : > { %v1397_v10 = vld [vmem:[%s2059_s29 + $0x70] sm:$0xff] (%p1976_p5)   ;;  %1390 = vst [vmem:[%s1325_s26 + $0x120] sm:$0xff] (%p1976_p5), %v1389_v9   ;;  %1394 = vst [vmem:[%s1325_s26 + $0x128] sm:$0xff] (%p1976_p5), %v1393_v53  }
 0x167   : > { %v1229_v35 = vadd.f32 %v1228_v14, %v1197_v11  ;;  %v1300_v18 = vadd.f32 %v1299_v15, %v1269_v40  ;;  %1398 = vst [vmem:[%s1325_s26 + $0x130] sm:$0xff] (%p1976_p5), %v1397_v10   ;;  %v1401_v11 = vld [vmem:[%s2059_s29 + $0x78] sm:$0xff] (%p1976_p5)  }
 0x168   : > { %1402 = vst [vmem:[%s1325_s26 + $0x138] sm:$0xff] (%p1976_p5), %v1401_v11  }
 0x169   : > { %v1230_v19 = vadd.f32 %v1229_v35, %v1198_v13  ;;  %v1301_v43 = vadd.f32 %v1300_v18, %v1270_v54 }
 0x16b   : > { %v1302_v25 = vadd.f32 %v1301_v43, %v1271_v45  ;;  %v1231_v27 = vadd.f32 %v1230_v19, %v1199_v16 }
 0x16d   : > { %v1232_v30 = vadd.f32 %v1231_v27, %v1200_v22  ;;  %v1303_v31 = vadd.f32 %v1302_v25, %v1272_v24 }
 0x16f   : > { %v1233_v33 = vadd.f32 %v1232_v30, %v1201_v26  ;;  %v1304_v36 = vadd.f32 %v1303_v31, %v1273_v3 }
 0x171   : > { %v1234_v37 = vadd.f32 %v1233_v33, %v1202_v29  ;;  %v1305_v38 = vadd.f32 %v1304_v36, %v1274_v34 }
 0x173   : > { %v1235_v41 = vadd.f32 %v1234_v37, %v1203_v32  ;;  %v1306_v20 = vadd.f32 %v1305_v38, %v1275_v28 }
 0x175   : > { %v1236_v42 = vrot.slane %v1235_v41, 4  ;;  %v1307_v44 = vadd.f32 %v1306_v20, %v1276_v39 }
 0x177   : > { %v1237_v49 = vadd.f32 %v1236_v42, %v1235_v41  ;;  %v1308_v51 = vrot.slane %v1307_v44, 4 }
 0x179   : > { %v1238_v23 = vrot.slane %v1237_v49, 2  ;;  %v1309_v47 = vadd.f32 %v1308_v51, %v1307_v44 }
 0x17b   : > { %v1239_v55 = vadd.f32 %v1238_v23, %v1237_v49  ;;  %v1310_v56 = vrot.slane %v1309_v47, 2 }
 0x17d   : > { %v1240_v57 = vrot.slane %v1239_v55, 1  ;;  %v1311_v59 = vadd.f32 %v1310_v56, %v1309_v47 }
 0x17f   : > { %v1241_v60 = vadd.f32 %v1240_v57, %v1239_v55  ;;  %v1312_v58 = vrot.slane %v1311_v59, 1  ;;  %1322 = sbr.rel (!%p1976_p5) target bundleno = 390 (0x186), region = 94 }
 0x181   : > { %v1242_v62 = vadd.f32 %v1241_v60, %v1204_v50  ;;  %v1313_v21 = vadd.f32 %v1312_v58, %v1311_v59 }
 0x183   : > { %1243 = vst [vmem:[%s2441_s8] sm:$0x1] %v1242_v62  ;;  %v1314_v0 = vadd.f32 %v1313_v21, %v1244_v61 }
 0x185   : > { %1315 = vst [vmem:[%s2442_s9] sm:$0x1] %v1314_v0 }
 0x186 PF: > { %p17_p11 = scmp.ge.s32.totalorder %s1964_s13, 6   ;;  %s2444_s30 = smov %s1887_s10 }
 0x187   : > { %s2445_s10 = smov %s1974_s16  ;;  %s2446_s11 = smov %s1964_s13 }
 0x188   :  { %19 = sbr.rel (!%p17_p11) target bundleno = 2 (0x2), region = 182 }

// kernel: cresnet_block_conv1d.5
= control target key start
LH: loop header
LB: loop body
LE: loop exit
PB: predicated region body
PF: predicated region fallthrough
CT: control target
= control target key end

     0   :  { %14 = vsyncpa [#allocation5], 0  ;;  %s3061_s0 = inlined_call_operand.vmem [shape: f32[2,512,128], index: 0, kind: input, shape index: {}]   ;;  %s3062_s1 = inlined_call_operand.vmem [shape: bf16[2,512,128], index: 1, kind: input, shape index: {}]   ;;  %s3063_s2 = inlined_call_operand.vmem [shape: f32[2,128], index: 2, kind: input, shape index: {}]   ;;  %s3064_s3 = inlined_call_operand.vmem [shape: f32[2,128], index: 3, kind: input, shape index: {}]   ;;  %s3065_s4 = inlined_call_operand.vmem [shape: f32[1,128], index: 4, kind: input, shape index: {}]   ;;  %s3066_s5 = inlined_call_operand.vmem [shape: f32[1,128], index: 5, kind: input, shape index: {}]   ;;  %s3067_s6 = inlined_call_operand.vmem [shape: bf16[128,256], index: 6, kind: input, shape index: {}]   ;;  %s3068_s7 = inlined_call_operand.vmem [shape: f32[1,256], index: 7, kind: input, shape index: {}]   ;;  %s3069_s8 = inlined_call_operand.vmem [shape: bf16[128,256], index: 8, kind: input, shape index: {}]   ;;  %s3070_s9 = inlined_call_operand.hbm [shape: f32[2,512,256], index: 9, kind: output, shape index: {}]  }
   0x1   :  { %16 = vsyncpa [#allocation5 + $0x1], 0  ;;  %s2295_s30 = smov 0   ;;  %s2297_s10 = smov 0  }
   0x2   :  { %s2299_s11 = smov 0   ;;  %s2301_s12 = smov 0  }
   0x3 LB: > { %s1833_s13 = sadd.s32 4294967295, %s2235_s12   ;;  %s1834_s14 = sadd.s32 4294967294, %s2235_s12   ;;  %s2235_s12 = sphi %s2301_s12, %s3077_s12   ;;  %s2231_s11 = sphi %s2299_s11, %s3076_s11   ;;  %s2227_s10 = sphi %s2297_s10, %s3075_s10   ;;  %s2223_s30 = sphi %s2295_s30, %s3074_s30  }
   0x4   : > { %s2318_s15 = sadd.s32 1, %s2235_s12   ;;  %s29_s16 = sadd.s32 1, %s2231_s11 }
   0x5   : > { %s26_s17 = ssub.s32 %s2235_s12, %s2318_s15  ;;  %p36_p0 = scmp.ne.s32.totalorder %s2231_s11, %s2227_s10 }
   0x6   : > { %p27_p1 = scmp.eq.s32.totalorder %s26_s17, 0  ;;  %p37_p2 = scmp.eq.s32.totalorder %s2235_s12, 0 }
   0x7   : > { %p239_p3 = scmp.eq.s32.totalorder %s1833_s13, 3  ;;  %p244_p4 = scmp.ne.s32.totalorder %s2227_s10, %s2223_s30 }
   0x8   : > { %s2331_s18 = scalar_select %p27_p1, %s2231_s11, %s29_s16  }
   0x9   : > { %p2333_p5 = por %p37_p2, %p36_p0  ;;  %p2337_p6 = por %p239_p3, %p36_p0 }
   0xa   : > { %p245_p7 = scmp.eq.s32.totalorder %s1834_s14, 3  ;;  %p1836_p9 = scmp.ge.s32.totalorder %s2235_s12, 4 }
   0xc   : > { %p2341_p8 = por %p245_p7, %p244_p4  ;;  %282 = sbr.rel (%p1836_p9) target bundleno = 51 (0x33), region = 44 }
  0x13   : > { %285 = sbr.rel (!%p2333_p5) target bundleno = 39 (0x27), region = 48  ;;  %s287_s22 = sand.u32 (%p2333_p5), 1, %s2231_s11  }
  0x14   : > { %s1889_s23 = sshll.u32 (%p2333_p5), %s2235_s12, 7  ;;  %s1837_s24 = sshll.u32 (%p2333_p5), %s287_s22, 8 }
  0x15   : > { %s2353_s27 = scalar_lea.vmem (%p2333_p5), %s3061_s0, %s1889_s23  ;;  %s2358_s28 = scalar_lea.vmem (%p2333_p5), [#allocation2], %s1837_s24 }
  0x16   : > { %v382_v0 = vld [vmem:[%s2353_s27] sm:$0xff] (%p2333_p5)  ;;  %v384_v1 = vld [vmem:[%s2353_s27 + $0x8] sm:$0xff] (%p2333_p5)  ;;  %v386_v2 = vld [vmem:[%s2353_s27 + $0x10] sm:$0xff] (%p2333_p5) }
  0x17   : > { %383 = vst [vmem:[%s2358_s28] sm:$0xff] (%p2333_p5), %v382_v0  ;;  %385 = vst [vmem:[%s2358_s28 + $0x8] sm:$0xff] (%p2333_p5), %v384_v1  ;;  %v388_v3 = vld [vmem:[%s2353_s27 + $0x18] sm:$0xff] (%p2333_p5)  ;;  %v390_v4 = vld [vmem:[%s2353_s27 + $0x20] sm:$0xff] (%p2333_p5) }
  0x18   : > { %387 = vst [vmem:[%s2358_s28 + $0x10] sm:$0xff] (%p2333_p5), %v386_v2  ;;  %v392_v5 = vld [vmem:[%s2353_s27 + $0x28] sm:$0xff] (%p2333_p5)  ;;  %389 = vst [vmem:[%s2358_s28 + $0x18] sm:$0xff] (%p2333_p5), %v388_v3  ;;  %v394_v6 = vld [vmem:[%s2353_s27 + $0x30] sm:$0xff] (%p2333_p5) }
  0x19   : > { %391 = vst [vmem:[%s2358_s28 + $0x20] sm:$0xff] (%p2333_p5), %v390_v4  ;;  %393 = vst [vmem:[%s2358_s28 + $0x28] sm:$0xff] (%p2333_p5), %v392_v5  ;;  %v396_v7 = vld [vmem:[%s2353_s27 + $0x38] sm:$0xff] (%p2333_p5)  ;;  %v398_v8 = vld [vmem:[%s2353_s27 + $0x40] sm:$0xff] (%p2333_p5) }
  0x1a   : > { %395 = vst [vmem:[%s2358_s28 + $0x30] sm:$0xff] %v394_v6  ;;  %397 = vst [vmem:[%s2358_s28 + $0x38] sm:$0xff] %v396_v7  ;;  %v400_v9 = vld [vmem:[%s2353_s27 + $0x48] sm:$0xff]  ;;  %v402_v10 = vld [vmem:[%s2353_s27 + $0x50] sm:$0xff] }
  0x1b   : > { %399 = vst [vmem:[%s2358_s28 + $0x40] sm:$0xff] %v398_v8  ;;  %v404_v11 = vld [vmem:[%s2353_s27 + $0x58] sm:$0xff]  ;;  %401 = vst [vmem:[%s2358_s28 + $0x48] sm:$0xff] %v400_v9  ;;  %v406_v12 = vld [vmem:[%s2353_s27 + $0x60] sm:$0xff] }
  0x1c   : > { %403 = vst [vmem:[%s2358_s28 + $0x50] sm:$0xff] %v402_v10  ;;  %405 = vst [vmem:[%s2358_s28 + $0x58] sm:$0xff] %v404_v11  ;;  %v408_v13 = vld [vmem:[%s2353_s27 + $0x68] sm:$0xff]  ;;  %v410_v14 = vld [vmem:[%s2353_s27 + $0x70] sm:$0xff] }
  0x1d   : > { %407 = vst [vmem:[%s2358_s28 + $0x60] sm:$0xff] %v406_v12  ;;  %409 = vst [vmem:[%s2358_s28 + $0x68] sm:$0xff] %v408_v13  ;;  %v412_v15 = vld [vmem:[%s2353_s27 + $0x78] sm:$0xff]  ;;  %v414_v16 = vld [vmem:[%s2353_s27 + $0x200] sm:$0xff] }
  0x1e   : > { %411 = vst [vmem:[%s2358_s28 + $0x70] sm:$0xff] %v410_v14  ;;  %v416_v17 = vld [vmem:[%s2353_s27 + $0x208] sm:$0xff]  ;;  %413 = vst [vmem:[%s2358_s28 + $0x78] sm:$0xff] %v412_v15  ;;  %v418_v18 = vld [vmem:[%s2353_s27 + $0x210] sm:$0xff] }
  0x1f   : > { %415 = vst [vmem:[%s2358_s28 + $0x80] sm:$0xff] %v414_v16  ;;  %417 = vst [vmem:[%s2358_s28 + $0x88] sm:$0xff] %v416_v17  ;;  %v420_v19 = vld [vmem:[%s2353_s27 + $0x218] sm:$0xff]  ;;  %v422_v20 = vld [vmem:[%s2353_s27 + $0x220] sm:$0xff] }
  0x20   : > { %419 = vst [vmem:[%s2358_s28 + $0x90] sm:$0xff] %v418_v18  ;;  %421 = vst [vmem:[%s2358_s28 + $0x98] sm:$0xff] %v420_v19  ;;  %v424_v21 = vld [vmem:[%s2353_s27 + $0x228] sm:$0xff]  ;;  %v426_v22 = vld [vmem:[%s2353_s27 + $0x230] sm:$0xff] }
  0x21   : > { %423 = vst [vmem:[%s2358_s28 + $0xa0] sm:$0xff] %v422_v20  ;;  %v428_v23 = vld [vmem:[%s2353_s27 + $0x238] sm:$0xff]  ;;  %425 = vst [vmem:[%s2358_s28 + $0xa8] sm:$0xff] %v424_v21  ;;  %v430_v24 = vld [vmem:[%s2353_s27 + $0x240] sm:$0xff] }
  0x22   : > { %427 = vst [vmem:[%s2358_s28 + $0xb0] sm:$0xff] %v426_v22  ;;  %429 = vst [vmem:[%s2358_s28 + $0xb8] sm:$0xff] %v428_v23  ;;  %v432_v25 = vld [vmem:[%s2353_s27 + $0x248] sm:$0xff]  ;;  %v434_v26 = vld [vmem:[%s2353_s27 + $0x250] sm:$0xff] }
  0x23   : > { %431 = vst [vmem:[%s2358_s28 + $0xc0] sm:$0xff] %v430_v24  ;;  %433 = vst [vmem:[%s2358_s28 + $0xc8] sm:$0xff] %v432_v25  ;;  %v436_v27 = vld [vmem:[%s2353_s27 + $0x258] sm:$0xff]  ;;  %v438_v28 = vld [vmem:[%s2353_s27 + $0x260] sm:$0xff] }
  0x24   : > { %435 = vst [vmem:[%s2358_s28 + $0xd0] sm:$0xff] %v434_v26  ;;  %v440_v29 = vld [vmem:[%s2353_s27 + $0x268] sm:$0xff]  ;;  %437 = vst [vmem:[%s2358_s28 + $0xd8] sm:$0xff] %v436_v27  ;;  %v442_v30 = vld [vmem:[%s2353_s27 + $0x270] sm:$0xff] }
  0x25   : > { %439 = vst [vmem:[%s2358_s28 + $0xe0] sm:$0xff] %v438_v28  ;;  %441 = vst [vmem:[%s2358_s28 + $0xe8] sm:$0xff] %v440_v29  ;;  %v444_v31 = vld [vmem:[%s2353_s27 + $0x278] sm:$0xff] }
  0x26   : > { %443 = vst [vmem:[%s2358_s28 + $0xf0] sm:$0xff] %v442_v30  ;;  %445 = vst [vmem:[%s2358_s28 + $0xf8] sm:$0xff] %v444_v31 }
  0x27 PF: > { %451 = sbr.rel (!%p2333_p5) target bundleno = 51 (0x33), region = 86  ;;  %s453_s29 = sand.u32 (%p2333_p5), 1, %s2231_s11  }
  0x28   : > { %s1890_s14 = sshll.u32 (%p2333_p5), %s2235_s12, 6  ;;  %s1840_s16 = sshll.u32 (%p2333_p5), %s453_s29, 7 }
  0x29   : > { %s2428_s23 = scalar_lea.vmem (%p2333_p5), %s3062_s1, %s1890_s14  ;;  %s455_s19 = scalar_lea.vmem (%p2333_p5), [#allocation3], %s1840_s16 }
  0x2a   : > { %v474_v32 = vld [vmem:[%s2428_s23] sm:$0xff] (%p2333_p5)   ;;  %v478_v33 = vld [vmem:[%s2428_s23 + $0x8] sm:$0xff] (%p2333_p5)   ;;  %v482_v34 = vld [vmem:[%s2428_s23 + $0x10] sm:$0xff] (%p2333_p5)  }
  0x2b   : > { %475 = vst [vmem:[%s455_s19] sm:$0xff] (%p2333_p5), %v474_v32   ;;  %479 = vst [vmem:[%s455_s19 + $0x8] sm:$0xff] (%p2333_p5), %v478_v33   ;;  %v486_v35 = vld [vmem:[%s2428_s23 + $0x18] sm:$0xff] (%p2333_p5)   ;;  %v490_v36 = vld [vmem:[%s2428_s23 + $0x20] sm:$0xff] (%p2333_p5)  }
  0x2c   : > { %483 = vst [vmem:[%s455_s19 + $0x10] sm:$0xff] (%p2333_p5), %v482_v34   ;;  %v494_v37 = vld [vmem:[%s2428_s23 + $0x28] sm:$0xff] (%p2333_p5)   ;;  %487 = vst [vmem:[%s455_s19 + $0x18] sm:$0xff] (%p2333_p5), %v486_v35   ;;  %v498_v38 = vld [vmem:[%s2428_s23 + $0x30] sm:$0xff] (%p2333_p5)  }
  0x2d   : > { %491 = vst [vmem:[%s455_s19 + $0x20] sm:$0xff] (%p2333_p5), %v490_v36   ;;  %495 = vst [vmem:[%s455_s19 + $0x28] sm:$0xff] (%p2333_p5), %v494_v37   ;;  %v502_v39 = vld [vmem:[%s2428_s23 + $0x38] sm:$0xff] (%p2333_p5)   ;;  %v506_v40 = vld [vmem:[%s2428_s23 + $0x100] sm:$0xff] (%p2333_p5)  }
  0x2e   : > { %499 = vst [vmem:[%s455_s19 + $0x30] sm:$0xff] %v498_v38   ;;  %503 = vst [vmem:[%s455_s19 + $0x38] sm:$0xff] %v502_v39   ;;  %v510_v41 = vld [vmem:[%s2428_s23 + $0x108] sm:$0xff]   ;;  %v514_v42 = vld [vmem:[%s2428_s23 + $0x110] sm:$0xff]  }
  0x2f   : > { %507 = vst [vmem:[%s455_s19 + $0x40] sm:$0xff] %v506_v40   ;;  %v518_v43 = vld [vmem:[%s2428_s23 + $0x118] sm:$0xff]   ;;  %511 = vst [vmem:[%s455_s19 + $0x48] sm:$0xff] %v510_v41   ;;  %v522_v44 = vld [vmem:[%s2428_s23 + $0x120] sm:$0xff]  }
  0x30   : > { %515 = vst [vmem:[%s455_s19 + $0x50] sm:$0xff] %v514_v42   ;;  %519 = vst [vmem:[%s455_s19 + $0x58] sm:$0xff] %v518_v43   ;;  %v526_v45 = vld [vmem:[%s2428_s23 + $0x128] sm:$0xff]   ;;  %v530_v46 = vld [vmem:[%s2428_s23 + $0x130] sm:$0xff]  }
  0x31   : > { %523 = vst [vmem:[%s455_s19 + $0x60] sm:$0xff] %v522_v44   ;;  %527 = vst [vmem:[%s455_s19 + $0x68] sm:$0xff] %v526_v45   ;;  %v534_v47 = vld [vmem:[%s2428_s23 + $0x138] sm:$0xff]  }
  0x32   : > { %531 = vst [vmem:[%s455_s19 + $0x70] sm:$0xff] %v530_v46   ;;  %535 = vst [vmem:[%s455_s19 + $0x78] sm:$0xff] %v534_v47  }
  0x33 PF: > { %p1843_p10 = scmp.ge.s32.totalorder %s2235_s12, 1  ;;  %p623_p11 = scmp.lt.s32.totalorder %s2235_s12, 5 }
  0x35   : > { %p624_p12 = pnand %p1843_p10, %p623_p11 }
  0x36   : > { %v2153_v48 = vld [vmem:[%s3067_s6 + $0x4] ss:$8 sps:$4 sm:$0xff] (!%p624_p12)   ;;  %v2237_v50 = vmov (!%p624_p12), 0   ;;  %v2157_v51 = vld [vmem:[%s3067_s6] ss:$8 sps:$4 sm:$0xff] (!%p624_p12)   ;;  %s2472_s26 = sand.u32 (!%p624_p12), 1, %s2227_s10   ;;  %v835_v2 = vlaneseq (!%p624_p12) }
  0x37   : > { %627 = sbr.rel (%p624_p12) target bundleno = 437 (0x1b5), region = 127  ;;  %v2155_v49 = vld [vmem:[%s3069_s8 + $0x4] ss:$8 sps:$4 sm:$0xff] (!%p624_p12)   ;;  %1142 = vmatprep.mubr.bf16.mxu1 (!%p624_p12), %v2237_v50  ;;  %1479 = vmatprep.mubr.bf16.mxu0 (!%p624_p12), %v2237_v50  ;;  %v2158_v52 = vld [vmem:[%s3069_s8] ss:$8 sps:$4 sm:$0xff] (!%p624_p12)   ;;  %s1845_s16 = sshll.u32 (!%p624_p12), %s2472_s26, 7 }
  0x38   : > { %1110 = vmatprep.subr.bf16.mxu1 (!%p624_p12), %v2153_v48  ;;  %1447 = vmatprep.subr.bf16.mxu0 (!%p624_p12), %v2155_v49  ;;  %v2159_v53 = vld [vmem:[%s3067_s6 + $0x14] ss:$8 sps:$4 sm:$0xff] (!%p624_p12)   ;;  %v2163_v55 = vld [vmem:[%s3067_s6 + $0x10] ss:$8 sps:$4 sm:$0xff] (!%p624_p12)   ;;  %v2165_v57 = vld [vmem:[%s3067_s6 + $0x24] ss:$8 sps:$4 sm:$0xff] (!%p624_p12)  }
  0x39   : > { %1111 = vmatpush1.bf16.msra.mxu1 (!%p624_p12), %v2157_v51  ;;  %1448 = vmatpush1.bf16.msra.mxu0 (!%p624_p12), %v2158_v52  ;;  %v2161_v54 = vld [vmem:[%s3069_s8 + $0x14] ss:$8 sps:$4 sm:$0xff] (!%p624_p12)   ;;  %v2164_v56 = vld [vmem:[%s3069_s8 + $0x10] ss:$8 sps:$4 sm:$0xff] (!%p624_p12)   ;;  %v2167_v58 = vld [vmem:[%s3069_s8 + $0x24] ss:$8 sps:$4 sm:$0xff] (!%p624_p12)  }
  0x3a   : > { %1112 = vmatprep.subr.bf16.mxu1 (!%p624_p12), %v2159_v53  ;;  %1449 = vmatprep.subr.bf16.mxu0 (!%p624_p12), %v2161_v54  ;;  %v2169_v59 = vld [vmem:[%s3067_s6 + $0x20] ss:$8 sps:$4 sm:$0xff] (!%p624_p12)   ;;  %v2171_v61 = vld [vmem:[%s3067_s6 + $0x34] ss:$8 sps:$4 sm:$0xff] (!%p624_p12)   ;;  %v2175_v63 = vld [vmem:[%s3067_s6 + $0x30] ss:$8 sps:$4 sm:$0xff] (!%p624_p12)  }
  0x3b   : > { %v2170_v60 = vld [vmem:[%s3069_s8 + $0x20] ss:$8 sps:$4 sm:$0xff] (!%p624_p12)   ;;  %v2173_v62 = vld [vmem:[%s3069_s8 + $0x34] ss:$8 sps:$4 sm:$0xff] (!%p624_p12)   ;;  %v2238_v0 = vmov (!%p624_p12), 1966171168  }
  0x3c   : > { %v833_v1 = vunpack.c.l.s4 (!%p624_p12), %v2238_v0  ;;  %v2176_v3 = vld [vmem:[%s3069_s8 + $0x30] ss:$8 sps:$4 sm:$0xff] (!%p624_p12)   ;;  %v2177_v4 = vld [vmem:[%s3067_s6 + $0x44] ss:$8 sps:$4 sm:$0xff] (!%p624_p12)   ;;  %v2181_v6 = vld [vmem:[%s3067_s6 + $0x40] ss:$8 sps:$4 sm:$0xff] (!%p624_p12)  }
  0x3d   : > { %1113 = vmatpush1.bf16.msra.mxu1 (!%p624_p12), %v2163_v55  ;;  %1450 = vmatpush1.bf16.msra.mxu0 (!%p624_p12), %v2164_v56  ;;  %v2179_v5 = vld [vmem:[%s3069_s8 + $0x44] ss:$8 sps:$4 sm:$0xff] (!%p624_p12)   ;;  %v2182_v7 = vld [vmem:[%s3069_s8 + $0x40] ss:$8 sps:$4 sm:$0xff] (!%p624_p12)   ;;  %v2514_v9 = vshrl.u32 (!%p624_p12), %v835_v2, 7  ;;  %s1844_s24 = sshll.u32 (!%p624_p12), %s2472_s26, 8 }
  0x3e   : > { %1114 = vmatprep.subr.bf16.mxu1 %v2165_v57  ;;  %1451 = vmatprep.subr.bf16.mxu0 %v2167_v58  ;;  %v834_v8 = vunpack.c.0.s8 %v833_v1  ;;  %v2183_v10 = vld [vmem:[%s3067_s6 + $0x54] ss:$8 sps:$4 sm:$0xff]   ;;  %v2187_v12 = vld [vmem:[%s3067_s6 + $0x50] ss:$8 sps:$4 sm:$0xff]   ;;  %v2189_v15 = vld [vmem:[%s3067_s6 + $0x64] ss:$8 sps:$4 sm:$0xff]  }
  0x3f   : > { %v2185_v11 = vld [vmem:[%s3069_s8 + $0x54] ss:$8 sps:$4 sm:$0xff]   ;;  %v2188_v14 = vld [vmem:[%s3069_s8 + $0x50] ss:$8 sps:$4 sm:$0xff]   ;;  %v2191_v16 = vld [vmem:[%s3069_s8 + $0x64] ss:$8 sps:$4 sm:$0xff]  }
  0x40   : > { %v2527_v13 = vsub.s32 %v834_v8, %v2514_v9  ;;  %s2538_s19 = scalar_lea.vmem [#allocation3], %s1845_s16  ;;  %v2544_v18 = vld [vmem:[%s3065_s4] ss:$0 sm:$0xff]  ;;  %v2547_v19 = vsub.s32 0, %v2514_v9  ;;  %v2195_v28 = vld [vmem:[%s3067_s6 + $0x74] ss:$8 sps:$4 sm:$0xff]  }
  0x41   : > { %1115 = vmatpush1.bf16.msra.mxu1 %v2169_v59  ;;  %1452 = vmatpush1.bf16.msra.mxu0 %v2170_v60  ;;  %v1894_v17 = vld [vmem:[%s2538_s19] sm:$0xff]   ;;  %v2197_v29 = vld [vmem:[%s3069_s8 + $0x74] ss:$8 sps:$4 sm:$0xff]   ;;  %v1957_v33 = vld [vmem:[%s2538_s19 + $0x8] sm:$0xff]   ;;  %s2588_s22 = scalar_lea.vmem [#allocation2], %s1844_s24  ;;  %s1846_s29 = sshll.u32 %s2472_s26, 9 }
  0x42   : > { %1116 = vmatprep.subr.bf16.mxu1 %v2171_v61  ;;  %1453 = vmatprep.subr.bf16.mxu0 %v2173_v62  ;;  %v2193_v20 = vld [vmem:[%s3067_s6 + $0x60] ss:$8 sps:$4 sm:$0xff]   ;;  %v1895_v22 = vunpack.c.l.bf16 %v1894_v17  ;;  %v1896_v23 = vunpack.c.h.bf16 %v1894_v17  ;;  %v1899_v37 = vunpack.c.l.bf16 %v1957_v33  ;;  %v1900_v38 = vunpack.c.h.bf16 %v1957_v33  ;;  %v1958_v39 = vld [vmem:[%s2538_s19 + $0x10] sm:$0xff]   ;;  %v1959_v43 = vld [vmem:[%s2538_s19 + $0x18] sm:$0xff]   ;;  %s2897_s14 = scalar_lea.vmem [#allocation4], %s1846_s29  ;;  %s1705_s17 = scalar_lea.sflag [#allocation5], %s2472_s26 }
  0x43   : > { %v2194_v21 = vld [vmem:[%s3069_s8 + $0x60] ss:$8 sps:$4 sm:$0xff]   ;;  %v1903_v46 = vunpack.c.l.bf16 %v1958_v39  ;;  %v1904_v47 = vunpack.c.h.bf16 %v1958_v39  ;;  %v2199_v48 = vld [vmem:[%s3067_s6 + $0x70] ss:$8 sps:$4 sm:$0xff]   ;;  %v1907_v54 = vunpack.c.l.bf16 %v1959_v43  ;;  %v1908_v58 = vunpack.c.h.bf16 %v1959_v43 }
  0x44   : > { %v2558_v24 = vld.sshfl [vmem:[%s3063_s2] sm:$0x11 pattern:$0x75316420]  ;;  %v751_v30 = vsub.f32 %v1895_v22, %v2544_v18  ;;  %v752_v31 = vsub.f32 %v1896_v23, %v2544_v18  ;;  %v1304_v36 = vld [vmem:[%s2588_s22 + $0x8] sm:$0xff]  ;;  %v753_v44 = vsub.f32 %v1899_v37, %v2544_v18  ;;  %v754_v45 = vsub.f32 %v1900_v38, %v2544_v18 }
  0x45   : > { %1117 = vmatpush1.bf16.msra.mxu1 %v2175_v63  ;;  %1454 = vmatpush1.bf16.msra.mxu0 %v2176_v3  ;;  %v2563_v25 = vld [vmem:[%s3066_s5] ss:$0 sm:$0xff]  ;;  %v838_v26 = vrot.slane %v2558_v24, %v2527_v13  ;;  %v2200_v49 = vld [vmem:[%s3069_s8 + $0x70] ss:$8 sps:$4 sm:$0xff]   ;;  %v755_v57 = vsub.f32 %v1903_v46, %v2544_v18  ;;  %v756_v61 = vsub.f32 %v1904_v47, %v2544_v18 }
  0x46   : > { %1118 = vmatprep.subr.bf16.mxu1 %v2177_v4  ;;  %1455 = vmatprep.subr.bf16.mxu0 %v2179_v5  ;;  %v2570_v27 = vld.sshfl [vmem:[%s3064_s3] sm:$0x11 pattern:$0x75316420]  ;;  %v790_v40 = vmul.f32 %v2563_v25, %v751_v30  ;;  %v791_v41 = vmul.f32 %v2563_v25, %v752_v31  ;;  %v792_v55 = vmul.f32 %v2563_v25, %v753_v44 }
  0x47   : > { %v904_v32 = vrot.slane %v2570_v27, %v2527_v13  ;;  %v2584_v34 = vrot.slane %v838_v26, %v2547_v19  ;;  %v1303_v35 = vld [vmem:[%s2588_s22] sm:$0xff]  ;;  %v793_v56 = vmul.f32 %v2563_v25, %v754_v45  ;;  %v757_v62 = vsub.f32 %v1907_v54, %v2544_v18  ;;  %v1961_v26 = vld [vmem:[%s2538_s19 + $0x28] sm:$0xff]  }
  0x48   : > { %v1335_v53 = vpack.c.bf16 %v1304_v36, %v1303_v35  ;;  %v794_v1 = vmul.f32 %v2563_v25, %v755_v57  ;;  %v758_v2 = vsub.f32 %v1908_v58, %v2544_v18  ;;  %v795_v5 = vmul.f32 %v2563_v25, %v756_v61  ;;  %v1960_v8 = vld [vmem:[%s2538_s19 + $0x20] sm:$0xff]   ;;  %v2660_v61 = vld [vmem:[%s2588_s22 + $0x38] sm:$0xff] }
  0x49   : > { %1119 = vmatpush1.bf16.msra.mxu1 %v2181_v6  ;;  %1456 = vmatpush1.bf16.msra.mxu0 %v2182_v7  ;;  %v2596_v42 = vrot.slane %v904_v32, %v2547_v19  ;;  %v856_v51 = vmul.f32 %v2584_v34, %v790_v40  ;;  %v857_v52 = vmul.f32 %v2584_v34, %v791_v41  ;;  %v1911_v22 = vunpack.c.l.bf16 %v1960_v8 }
  0x4a   : > { %1120 = vmatprep.subr.bf16.mxu1 %v2183_v10  ;;  %1457 = vmatprep.subr.bf16.mxu0 %v2185_v11  ;;  %v858_v63 = vmul.f32 %v2584_v34, %v792_v55  ;;  %v859_v0 = vmul.f32 %v2584_v34, %v793_v56  ;;  %v1305_v11 = vld [vmem:[%s2588_s22 + $0x10] sm:$0xff]  ;;  %v797_v17 = vmul.f32 %v2563_v25, %v758_v2  ;;  %v1912_v23 = vunpack.c.h.bf16 %v1960_v8 }
  0x4b   : > { %v922_v59 = vadd.f32 %v2596_v42, %v856_v51  ;;  %v923_v60 = vadd.f32 %v2596_v42, %v857_v52  ;;  %v759_v32 = vsub.f32 %v1911_v22, %v2544_v18  ;;  %v1915_v37 = vunpack.c.l.bf16 %v1961_v26  ;;  %v1963_v51 = vld [vmem:[%s2538_s19 + $0x38] sm:$0xff]   ;;  %v1307_v52 = vld [vmem:[%s2588_s22 + $0x20] sm:$0xff] }
  0x4c   : > { %v924_v6 = vadd.f32 %v2596_v42, %v858_v63  ;;  %v925_v7 = vadd.f32 %v2596_v42, %v859_v0  ;;  %v760_v33 = vsub.f32 %v1912_v23, %v2544_v18  ;;  %v863_v36 = vmul.f32 %v2584_v34, %v797_v17  ;;  %v2664_v63 = vld [vmem:[%s2588_s22 + $0x40] sm:$0xff]  ;;  %v2667_v0 = vld [vmem:[%s2588_s22 + $0x48] sm:$0xff] }
  0x4d   : > { %1121 = vmatpush1.bf16.msra.mxu1 %v2187_v12  ;;  %1458 = vmatpush1.bf16.msra.mxu0 %v2188_v14  ;;  %v954_v3 = vmax.f32 %v922_v59, 0.0  ;;  %v955_v4 = vmax.f32 %v923_v60, 0.0  ;;  %v1306_v12 = vld [vmem:[%s2588_s22 + $0x18] sm:$0xff]  ;;  %v860_v14 = vmul.f32 %v2584_v34, %v794_v1  ;;  %v1916_v38 = vunpack.c.h.bf16 %v1961_v26  ;;  %v2655_v59 = vld [vmem:[%s2588_s22 + $0x30] sm:$0xff] }
  0x4e   : > { %1122 = vmatprep.subr.bf16.mxu1 %v2189_v15  ;;  %1459 = vmatprep.subr.bf16.mxu0 %v2191_v16  ;;  %v796_v15 = vmul.f32 %v2563_v25, %v757_v62  ;;  %v861_v16 = vmul.f32 %v2584_v34, %v795_v5  ;;  %v798_v40 = vmul.f32 %v2563_v25, %v759_v32  ;;  %v1923_v2 = vunpack.c.l.bf16 %v1963_v51  ;;  %v2672_v5 = vld [vmem:[%s2588_s22 + $0x50] sm:$0xff] }
  0x4f   : > { %v986_v10 = vpack.c.bf16 %v955_v4, %v954_v3  ;;  %v926_v30 = vadd.f32 %v2596_v42, %v860_v14  ;;  %v799_v41 = vmul.f32 %v2563_v25, %v760_v33  ;;  %v761_v44 = vsub.f32 %v1915_v37, %v2544_v18 }
  0x50   : > { %v862_v31 = vmul.f32 %v2584_v34, %v796_v15  ;;  %v927_v35 = vadd.f32 %v2596_v42, %v861_v16  ;;  %v762_v45 = vsub.f32 %v1916_v38, %v2544_v18  ;;  %v864_v47 = vmul.f32 %v2584_v34, %v798_v40  ;;  %v1964_v15 = vld [vmem:[%s2538_s19 + $0x40] sm:$0xff]  }
  0x51   : > { %1123 = vmatpush1.bf16.msra.mxu1 %v2193_v20  ;;  %1460 = vmatpush1.bf16.msra.mxu0 %v2194_v21  ;;  %v956_v20 = vmax.f32 %v924_v6, 0.0  ;;  %v957_v21 = vmax.f32 %v925_v7, 0.0  ;;  %v929_v55 = vadd.f32 %v2596_v42, %v863_v36  ;;  %v800_v56 = vmul.f32 %v2563_v25, %v761_v44  ;;  %v2675_v6 = vld [vmem:[%s2588_s22 + $0x58] sm:$0xff] }
  0x52   : > { %1124 = vmatprep.subr.bf16.mxu1 %v2195_v28  ;;  %1461 = vmatprep.subr.bf16.mxu0 %v2197_v29  ;;  %v1336_v28 = vpack.c.bf16 %v1306_v12, %v1305_v11  ;;  %v1962_v29 = vld [vmem:[%s2538_s19 + $0x30] sm:$0xff]   ;;  %v928_v54 = vadd.f32 %v2596_v42, %v862_v31  ;;  %v958_v57 = vmax.f32 %v926_v30, 0.0  ;;  %v959_v58 = vmax.f32 %v927_v35, 0.0 }
  0x53   : > { %v987_v39 = vpack.c.bf16 %v957_v21, %v956_v20  ;;  %v1919_v43 = vunpack.c.l.bf16 %v1962_v29  ;;  %v1920_v46 = vunpack.c.h.bf16 %v1962_v29  ;;  %v801_v60 = vmul.f32 %v2563_v25, %v762_v45 }
  0x54   : > { %v930_v62 = vadd.f32 %v2596_v42, %v864_v47  ;;  %v831_v8 = vcombine.high %v2558_v24, %v2558_v24  ;;  %v961_v11 = vmax.f32 %v929_v55, 0.0  ;;  %v866_v12 = vmul.f32 %v2584_v34, %v800_v56  ;;  %v1966_v47 = vld [vmem:[%s2538_s19 + $0x50] sm:$0xff]  }
  0x55   : > { %1125 = vmatpush1.bf16.msra.mxu1 %v2199_v48  ;;  %1462 = vmatpush1.bf16.msra.mxu0 %v2200_v49  ;;  %v865_v48 = vmul.f32 %v2584_v34, %v799_v41  ;;  %v763_v49 = vsub.f32 %v1919_v43, %v2544_v18  ;;  %v764_v1 = vsub.f32 %v1920_v46, %v2544_v18  ;;  %v1924_v14 = vunpack.c.h.bf16 %v1963_v51 }
  0x56   : > { %v988_v16 = vpack.c.bf16 %v959_v58, %v958_v57  ;;  %v1338_v17 = vpack.c.bf16 %v2660_v61, %v2655_v59  ;;  %v1339_v20 = vpack.c.bf16 %v2667_v0, %v2664_v63  ;;  %v867_v21 = vmul.f32 %v2584_v34, %v801_v60 }
  0x57   : > { %v931_v4 = vadd.f32 %v2596_v42, %v865_v48  ;;  %v802_v7 = vmul.f32 %v2563_v25, %v763_v49  ;;  %v962_v22 = vmax.f32 %v930_v62, 0.0  ;;  %v1340_v23 = vpack.c.bf16 %v2675_v6, %v2672_v5 }
  0x58   : > { %1480 = vmatmul.mubr.bf16.vlgmr.msra.gmra.mrb[0].mxu0 %v1335_v53  ;;  %1143 = vmatmul.mubr.bf16.vlgmr.msra.gmra.mrb[0].mxu1 %v986_v10  ;;  %v1308_v53 = vld [vmem:[%s2588_s22 + $0x28] sm:$0xff]  ;;  %v960_v10 = vmax.f32 %v928_v54, 0.0  ;;  %v803_v24 = vmul.f32 %v2563_v25, %v764_v1  ;;  %v765_v26 = vsub.f32 %v1923_v2, %v2544_v18  ;;  %v1927_v31 = vunpack.c.l.bf16 %v1964_v15 }
  0x59   : > { %1489 = vmatprep.mubr.bf16.mxu0 %v2237_v50  ;;  %1152 = vmatprep.mubr.bf16.mxu1 %v2237_v50  ;;  %v1337_v3 = vpack.c.bf16 %v1308_v53, %v1307_v52  ;;  %v963_v29 = vmax.f32 %v931_v4, 0.0  ;;  %v868_v30 = vmul.f32 %v2584_v34, %v802_v7  ;;  %v1928_v32 = vunpack.c.h.bf16 %v1964_v15 }
  0x5a   : > { %v989_v33 = vpack.c.bf16 %v961_v11, %v960_v10  ;;  %v2694_v35 = vadd.f32 %v2596_v42, %v866_v12  ;;  %v766_v36 = vsub.f32 %v1924_v14, %v2544_v18  ;;  %v845_v37 = vrot.slane %v831_v8, %v2527_v13 }
  0x5b   : > { %v2700_v38 = vadd.f32 %v2596_v42, %v867_v21  ;;  %v768_v40 = vsub.f32 %v1928_v32, %v2544_v18  ;;  %v869_v43 = vmul.f32 %v2584_v34, %v803_v24  ;;  %v804_v44 = vmul.f32 %v2563_v25, %v765_v26 }
  0x5c   : > { %v2708_v45 = vrot.slane %v845_v37, %v2547_v19  ;;  %v897_v46 = vcombine.high %v2570_v27, %v2570_v27  ;;  %v2713_v48 = vpack.c.bf16 %v963_v29, %v962_v22  ;;  %v2716_v49 = vadd.f32 %v2596_v42, %v868_v30  ;;  %v1967_v27 = vld [vmem:[%s2538_s19 + $0x58] sm:$0xff]  }
  0x5d   : > { %v807_v52 = vmul.f32 %v2563_v25, %v768_v40  ;;  %v2721_v53 = vmul.f32 %v2563_v25, %v766_v36  ;;  %v964_v57 = vmax.f32 %v2694_v35, 0.0  ;;  %v1935_v60 = vunpack.c.l.bf16 %v1966_v47 }
  0x5e   : > { %v911_v54 = vrot.slane %v897_v46, %v2527_v13  ;;  %v1936_v2 = vunpack.c.h.bf16 %v1966_v47  ;;  %v1968_v13 = vld [vmem:[%s2538_s19 + $0x60] sm:$0xff]   ;;  %v1939_v7 = vunpack.c.l.bf16 %v1967_v27  ;;  %v1940_v8 = vunpack.c.h.bf16 %v1967_v27 }
  0x5f   : > { %v873_v59 = vmul.f32 %v2708_v45, %v807_v52  ;;  %v771_v4 = vsub.f32 %v1935_v60, %v2544_v18  ;;  %v1943_v22 = vunpack.c.l.bf16 %v1968_v13  ;;  %v2764_v52 = vmul.f32 %v2584_v34, %v804_v44 }
  0x60   : > { %1490 = vmatmul.mubr.bf16.gmra.mrb[4].mxu0 %v1336_v28  ;;  %1153 = vmatmul.mubr.bf16.gmra.mrb[4].mxu1 %v987_v39  ;;  %v1965_v28 = vld [vmem:[%s2538_s19 + $0x48] sm:$0xff]   ;;  %v767_v39 = vsub.f32 %v1927_v31, %v2544_v18  ;;  %v2730_v61 = vrot.slane %v911_v54, %v2547_v19  ;;  %v772_v15 = vsub.f32 %v1936_v2, %v2544_v18  ;;  %v1944_v54 = vunpack.c.h.bf16 %v1968_v13  ;;  %v1970_v2 = vld [vmem:[%s2538_s19 + $0x70] sm:$0xff]  }
  0x61   : > { %1499 = vmatprep.mubr.bf16.mxu0 %v2237_v50  ;;  %1162 = vmatprep.mubr.bf16.mxu1 %v2237_v50  ;;  %v1931_v41 = vunpack.c.l.bf16 %v1965_v28  ;;  %v1932_v55 = vunpack.c.h.bf16 %v1965_v28  ;;  %v773_v21 = vsub.f32 %v1939_v7, %v2544_v18  ;;  %v774_v31 = vsub.f32 %v1940_v8, %v2544_v18 }
  0x62   : > { %v806_v51 = vmul.f32 %v2563_v25, %v767_v39  ;;  %v939_v11 = vadd.f32 %v2730_v61, %v873_v59  ;;  %v811_v29 = vmul.f32 %v2563_v25, %v772_v15  ;;  %v776_v44 = vsub.f32 %v1944_v54, %v2544_v18 }
  0x63   : > { %v769_v56 = vsub.f32 %v1931_v41, %v2544_v18  ;;  %v770_v62 = vsub.f32 %v1932_v55, %v2544_v18  ;;  %v812_v32 = vmul.f32 %v2563_v25, %v773_v21  ;;  %v813_v46 = vmul.f32 %v2563_v25, %v774_v31 }
  0x64   : > { %v872_v58 = vmul.f32 %v2708_v45, %v806_v51  ;;  %v971_v24 = vmax.f32 %v939_v11, 0.0  ;;  %v877_v40 = vmul.f32 %v2708_v45, %v811_v29  ;;  %v1969_v51 = vld [vmem:[%s2538_s19 + $0x68] sm:$0xff]   ;;  %v775_v55 = vsub.f32 %v1943_v22, %v2544_v18  ;;  %v1971_v22 = vld [vmem:[%s2538_s19 + $0x78] sm:$0xff]  }
  0x65   : > { %v808_v1 = vmul.f32 %v2563_v25, %v769_v56  ;;  %v809_v12 = vmul.f32 %v2563_v25, %v770_v62  ;;  %v878_v47 = vmul.f32 %v2708_v45, %v812_v32  ;;  %v1948_v8 = vunpack.c.h.bf16 %v1969_v51 }
  0x66   : > { %v938_v10 = vadd.f32 %v2730_v61, %v872_v58  ;;  %v943_v56 = vadd.f32 %v2730_v61, %v877_v40  ;;  %v879_v58 = vmul.f32 %v2708_v45, %v813_v46  ;;  %v814_v62 = vmul.f32 %v2563_v25, %v775_v55 }
  0x67   : > { %v874_v14 = vmul.f32 %v2708_v45, %v808_v1  ;;  %v875_v26 = vmul.f32 %v2708_v45, %v809_v12  ;;  %v944_v59 = vadd.f32 %v2730_v61, %v878_v47  ;;  %v1947_v1 = vunpack.c.l.bf16 %v1969_v51 }
  0x68   : > { %1500 = vmatmul.mubr.bf16.gmra.mrb[8].mxu0 %v1337_v3  ;;  %1163 = vmatmul.mubr.bf16.gmra.mrb[8].mxu1 %v988_v16  ;;  %v965_v3 = vmax.f32 %v2700_v38, 0.0  ;;  %v810_v16 = vmul.f32 %v2563_v25, %v771_v4  ;;  %v975_v13 = vmax.f32 %v943_v56, 0.0  ;;  %v945_v4 = vadd.f32 %v2730_v61, %v879_v58 }
  0x69   : > { %1509 = vmatprep.mubr.bf16.mxu0 %v2237_v50  ;;  %1172 = vmatprep.mubr.bf16.mxu1 %v2237_v50  ;;  %v940_v28 = vadd.f32 %v2730_v61, %v874_v14  ;;  %v941_v37 = vadd.f32 %v2730_v61, %v875_v26  ;;  %v976_v7 = vmax.f32 %v944_v59, 0.0  ;;  %v966_v63 = vmax.f32 %v2716_v49, 0.0 }
  0x6a   : > { %v876_v30 = vmul.f32 %v2708_v45, %v810_v16  ;;  %v815_v0 = vmul.f32 %v2563_v25, %v776_v44  ;;  %v778_v12 = vsub.f32 %v1948_v8, %v2544_v18  ;;  %v1951_v14 = vunpack.c.l.bf16 %v1970_v2 }
  0x6b   : > { %v972_v39 = vmax.f32 %v940_v28, 0.0  ;;  %v1952_v49 = vunpack.c.h.bf16 %v1970_v2  ;;  %v1956_v38 = vunpack.c.h.bf16 %v1971_v22  ;;  %v871_v40 = vmul.f32 %v2584_v34, %v2721_v53 }
  0x6c   : > { %v942_v41 = vadd.f32 %v2730_v61, %v876_v30  ;;  %v881_v15 = vmul.f32 %v2708_v45, %v815_v0  ;;  %v817_v26 = vmul.f32 %v2563_v25, %v778_v12  ;;  %v779_v28 = vsub.f32 %v1951_v14, %v2544_v18  ;;  %v1317_v0 = vld [vmem:[%s2588_s22 + $0x70] sm:$0xff] }
  0x6d   : > { %v780_v32 = vsub.f32 %v1952_v49, %v2544_v18  ;;  %v782_v54 = vsub.f32 %v1956_v38, %v2544_v18  ;;  %v936_v58 = vadd.f32 %v2596_v42, %v2764_v52  ;;  %v937_v59 = vadd.f32 %v2596_v42, %v871_v40  ;;  %v1322_v49 = vld [vmem:[%s2588_s22 + $0x98] sm:$0xff] }
  0x6e   : > { %v974_v27 = vmax.f32 %v942_v41, 0.0  ;;  %v947_v29 = vadd.f32 %v2730_v61, %v881_v15  ;;  %v818_v35 = vmul.f32 %v2563_v25, %v779_v28  ;;  %v1320_v15 = vld [vmem:[%s2588_s22 + $0x88] sm:$0xff]  ;;  %v1325_v28 = vld [vmem:[%s2588_s22 + $0xb0] sm:$0xff] }
  0x6f   : > { %v819_v47 = vmul.f32 %v2563_v25, %v780_v32  ;;  %v1329_v32 = vld [vmem:[%s2588_s22 + $0xd0] sm:$0xff] }
  0x70   : > { %1510 = vmatmul.mubr.bf16.gmra.mrb[12].mxu0 %v1338_v17  ;;  %1173 = vmatmul.mubr.bf16.gmra.mrb[12].mxu1 %v989_v33  ;;  %v970_v17 = vmax.f32 %v938_v10, 0.0  ;;  %v2753_v33 = vadd.f32 %v2596_v42, %v869_v43  ;;  %v973_v43 = vmax.f32 %v941_v37, 0.0  ;;  %v777_v10 = vsub.f32 %v1947_v1, %v2544_v18 }
  0x71   : > { %1519 = vmatprep.mubr.bf16.mxu0 %v2237_v50  ;;  %1182 = vmatprep.mubr.bf16.mxu1 %v2237_v50  ;;  %v2786_v11 = vpack.c.bf16 %v975_v13, %v974_v27  ;;  %v883_v37 = vmul.f32 %v2708_v45, %v817_v26  ;;  %v979_v41 = vmax.f32 %v947_v29, 0.0  ;;  %v884_v5 = vmul.f32 %v2708_v45, %v818_v35  ;;  %v1324_v26 = vld [vmem:[%s2588_s22 + $0xa8] sm:$0xff]  ;;  %v1326_v29 = vld [vmem:[%s2588_s22 + $0xb8] sm:$0xff]  ;;  %v1331_v35 = vld [vmem:[%s2588_s22 + $0xe0] sm:$0xff] }
  0x72   : > { %v2755_v36 = vpack.c.bf16 %v971_v24, %v970_v17  ;;  %v2773_v60 = vpack.c.bf16 %v973_v43, %v972_v39  ;;  %v816_v21 = vmul.f32 %v2563_v25, %v777_v10  ;;  %v991_v17 = vpack.c.bf16 %v965_v3, %v964_v57  ;;  %v1315_v57 = vld [vmem:[%s2588_s22 + $0x60] sm:$0xff]  ;;  %v1316_v3 = vld [vmem:[%s2588_s22 + $0x68] sm:$0xff] }
  0x73   : > { %v1955_v39 = vunpack.c.l.bf16 %v1971_v22  ;;  %v967_v51 = vmax.f32 %v2753_v33, 0.0  ;;  %v949_v43 = vadd.f32 %v2730_v61, %v883_v37  ;;  %v885_v53 = vmul.f32 %v2708_v45, %v819_v47  ;;  %v1330_v37 = vld [vmem:[%s2588_s22 + $0xd8] sm:$0xff] }
  0x74   : > { %v882_v31 = vmul.f32 %v2708_v45, %v816_v21  ;;  %v1341_v55 = vpack.c.bf16 %v1316_v3, %v1315_v57  ;;  %v950_v27 = vadd.f32 %v2730_v61, %v884_v5  ;;  %v1321_v21 = vld [vmem:[%s2588_s22 + $0x90] sm:$0xff]  ;;  %v1334_v3 = vld [vmem:[%s2588_s22 + $0xf8] sm:$0xff] }
  0x75   : > { %v781_v6 = vsub.f32 %v1955_v39, %v2544_v18  ;;  %v981_v56 = vmax.f32 %v949_v43, 0.0  ;;  %v951_v44 = vadd.f32 %v2730_v61, %v885_v53  ;;  %v992_v1 = vpack.c.bf16 %v967_v51, %v966_v63  ;;  %v1332_v39 = vld [vmem:[%s2588_s22 + $0xe8] sm:$0xff]  ;;  %v1333_v57 = vld [vmem:[%s2588_s22 + $0xf0] sm:$0xff] }
  0x76   : > { %v948_v46 = vadd.f32 %v2730_v61, %v882_v31  ;;  %v982_v18 = vmax.f32 %v950_v27, 0.0  ;;  %v969_v63 = vmax.f32 %v937_v59, 0.0  ;;  %v1344_v22 = vpack.c.bf16 %v1322_v49, %v1321_v21  ;;  %v1328_v31 = vld [vmem:[%s2588_s22 + $0xc8] sm:$0xff] }
  0x77   : > { %v820_v33 = vmul.f32 %v2563_v25, %v781_v6  ;;  %v1349_v38 = vpack.c.bf16 %v1332_v39, %v1331_v35  ;;  %v1350_v40 = vpack.c.bf16 %v1334_v3, %v1333_v57 }
  0x78   : > { %1520 = vmatmul.mubr.bf16.gmra.mrb[16].mxu0 %v1339_v20  ;;  %1183 = vmatmul.mubr.bf16.gmra.mrb[16].mxu1 %v2713_v48  ;;  %v880_v20 = vmul.f32 %v2708_v45, %v814_v62  ;;  %v977_v48 = vmax.f32 %v945_v4, 0.0  ;;  %v980_v34 = vmax.f32 %v948_v46, 0.0  ;;  %v821_v62 = vmul.f32 %v2563_v25, %v782_v54 }
  0x79   : > { %1529 = vmatprep.mubr.bf16.mxu0 %v2237_v50  ;;  %1192 = vmatprep.mubr.bf16.mxu1 %v2237_v50  ;;  %v886_v13 = vmul.f32 %v2708_v45, %v820_v33  ;;  %v983_v4 = vmax.f32 %v951_v44, 0.0  ;;  %v968_v25 = vmax.f32 %v936_v58, 0.0  ;;  %v1026_v46 = vsub.s32 1, %v2514_v9 }
  0x7a   : > { %v946_v16 = vadd.f32 %v2730_v61, %v880_v20  ;;  %v2797_v24 = vpack.c.bf16 %v977_v48, %v976_v7  ;;  %v2832_v2 = vpack.c.bf16 %v981_v56, %v980_v34  ;;  %v887_v7 = vmul.f32 %v2708_v45, %v821_v62  ;;  %v1318_v20 = vld [vmem:[%s2588_s22 + $0x78] sm:$0xff] }
  0x7b   : > { %v952_v8 = vadd.f32 %v2730_v61, %v886_v13  ;;  %v2837_v52 = vpack.c.bf16 %v983_v4, %v982_v18  ;;  %v1342_v48 = vpack.c.bf16 %v1318_v20, %v1317_v0  ;;  %v993_v14 = vpack.c.bf16 %v969_v63, %v968_v25 }
  0x7c   : > { %v978_v30 = vmax.f32 %v946_v16, 0.0  ;;  %v953_v42 = vadd.f32 %v2730_v61, %v887_v7  ;;  %v1319_v61 = vld [vmem:[%s2588_s22 + $0x80] sm:$0xff] }
  0x7d   : > { %v984_v10 = vmax.f32 %v952_v8, 0.0  ;;  %v1343_v16 = vpack.c.bf16 %v1320_v15, %v1319_v61 }
  0x7e   : > { %v985_v45 = vmax.f32 %v953_v42, 0.0 }
  0x80   : > { %1530 = vmatmul.mubr.bf16.gmra.mrb[20].mxu0 %v1340_v23  ;;  %1193 = vmatmul.mubr.bf16.gmra.mrb[20].mxu1 %v991_v17  ;;  %v2821_v23 = vpack.c.bf16 %v979_v41, %v978_v30  ;;  %v1001_v12 = vpack.c.bf16 %v985_v45, %v984_v10  ;;  %v1323_v17 = vld [vmem:[%s2588_s22 + $0xa0] sm:$0xff] }
  0x81   : > { %1539 = vmatprep.mubr.bf16.mxu0 %v2237_v50  ;;  %1202 = vmatprep.mubr.bf16.mxu1 %v2237_v50  ;;  %v1327_v30 = vld [vmem:[%s2588_s22 + $0xc0] sm:$0xff] }
  0x82   : > { %v1018_v41 = vld [vmem:[%s3068_s7] sm:$0x3] }
  0x83   : > { %v2888_v47 = vrot.slane %v1018_v41, %v2547_v19  ;;  %v2890_v51 = vrot.slane %v1018_v41, %v1026_v46 }
  0x88   : > { %1540 = vmatmul.mubr.bf16.gmra.mrb[24].mxu0 %v1341_v55  ;;  %1203 = vmatmul.mubr.bf16.gmra.mrb[24].mxu1 %v992_v1 }
  0x89   : > { %1549 = vmatprep.mubr.bf16.mxu0 %v2237_v50  ;;  %1212 = vmatprep.mubr.bf16.mxu1 %v2237_v50 }
  0x90   : > { %1550 = vmatmul.mubr.bf16.gmra.mrb[28].mxu0 %v1342_v48  ;;  %1213 = vmatmul.mubr.bf16.gmra.mrb[28].mxu1 %v993_v14 }
  0x91   : > { %1559 = vmatprep.mubr.bf16.mxu0 %v2237_v50  ;;  %1222 = vmatprep.mubr.bf16.mxu1 %v2237_v50 }
  0x98   : > { %1560 = vmatmul.mubr.bf16.gmra.mrb[32].mxu0 %v1343_v16  ;;  %1223 = vmatmul.mubr.bf16.gmra.mrb[32].mxu1 %v2755_v36  ;;  %v1345_v36 = vpack.c.bf16 %v1324_v26, %v1323_v17 }
  0x99   : > { %1569 = vmatprep.mubr.bf16.mxu0 %v2237_v50  ;;  %1232 = vmatprep.mubr.bf16.mxu1 %v2237_v50 }
  0xa0   : > { %1570 = vmatmul.mubr.bf16.gmra.mrb[36].mxu0 %v1344_v22  ;;  %1233 = vmatmul.mubr.bf16.gmra.mrb[36].mxu1 %v2773_v60  ;;  %v1346_v60 = vpack.c.bf16 %v1326_v29, %v1325_v28 }
  0xa1   : > { %1579 = vmatprep.mubr.bf16.mxu0 %v2237_v50  ;;  %1242 = vmatprep.mubr.bf16.mxu1 %v2237_v50 }
  0xa8   : > { %1580 = vmatmul.mubr.bf16.gmra.mrb[40].mxu0 %v1345_v36  ;;  %1243 = vmatmul.mubr.bf16.gmra.mrb[40].mxu1 %v2786_v11  ;;  %v1347_v11 = vpack.c.bf16 %v1328_v31, %v1327_v30 }
  0xa9   : > { %1589 = vmatprep.mubr.bf16.mxu0 %v2237_v50  ;;  %1252 = vmatprep.mubr.bf16.mxu1 %v2237_v50 }
  0xb0   : > { %1590 = vmatmul.mubr.bf16.gmra.mrb[44].mxu0 %v1346_v60  ;;  %1253 = vmatmul.mubr.bf16.gmra.mrb[44].mxu1 %v2797_v24  ;;  %v1348_v24 = vpack.c.bf16 %v1330_v37, %v1329_v32 }
  0xb1   : > { %1599 = vmatprep.mubr.bf16.mxu0 %v2237_v50  ;;  %1262 = vmatprep.mubr.bf16.mxu1 %v2237_v50 }
  0xb8   : > { %1600 = vmatmul.mubr.bf16.gmra.mrb[48].mxu0 %v1347_v11  ;;  %1263 = vmatmul.mubr.bf16.gmra.mrb[48].mxu1 %v2821_v23 }
  0xb9   : > { %1609 = vmatprep.mubr.bf16.mxu0 %v2237_v50  ;;  %1272 = vmatprep.mubr.bf16.mxu1 %v2237_v50 }
  0xc0   : > { %1610 = vmatmul.mubr.bf16.gmra.mrb[52].mxu0 %v1348_v24  ;;  %1273 = vmatmul.mubr.bf16.gmra.mrb[52].mxu1 %v2832_v2 }
  0xc1   : > { %1619 = vmatprep.mubr.bf16.mxu0 %v2237_v50  ;;  %1282 = vmatprep.mubr.bf16.mxu1 %v2237_v50 }
  0xc8   : > { %1620 = vmatmul.mubr.bf16.gmra.mrb[56].mxu0 %v1349_v38  ;;  %1283 = vmatmul.mubr.bf16.gmra.mrb[56].mxu1 %v2837_v52 }
  0xc9   : > { %1629 = vmatprep.mubr.bf16.mxu0 %v2237_v50  ;;  %1292 = vmatprep.mubr.bf16.mxu1 %v2237_v50 }
  0xd0   : > { %1630 = vmatmul.mubr.bf16.gmra.mrb[60].mxu0 %v1350_v40  ;;  %1293 = vmatmul.mubr.bf16.gmra.mrb[60].mxu1 %v1001_v12 }
 0x12b   : > { %v1481_v43 = vpop.f32.mrb[0].mxu0  ;;  %v1144_v5 = vpop.f32.mrb[0].mxu1 }
 0x12c   : > { %v1483_v6 = vpop.f32.mrb[1].mxu0  ;;  %v1145_v50 = vadd.f32 %v1144_v5, %v2888_v47  ;;  %v1146_v23 = vpop.f32.mrb[1].mxu1 }
 0x12d   : > { %v1485_v34 = vpop.f32.mrb[2].mxu0  ;;  %v1147_v53 = vadd.f32 %v1146_v23, %v2890_v51  ;;  %v1148_v54 = vpop.f32.mrb[2].mxu1 }
 0x12e   : > { %v1487_v55 = vpop.f32.mrb[3].mxu0  ;;  %v1482_v56 = vadd.f32 %v1481_v43, %v1145_v50  ;;  %v1149_v9 = vadd.f32 %v1148_v54, %v2888_v47  ;;  %v1150_v27 = vpop.f32.mrb[3].mxu1 }
 0x12f   : > { %v1484_v19 = vadd.f32 %v1483_v6, %v1147_v53  ;;  %v1151_v33 = vadd.f32 %v1150_v27, %v2890_v51 }
 0x130   : > { %1640 = vst [vmem:[%s2897_s14] sm:$0xff] %v1482_v56  ;;  %v1486_v58 = vadd.f32 %v1485_v34, %v1149_v9 }
 0x131   : > { %1641 = vst [vmem:[%s2897_s14 + $0x8] sm:$0xff] %v1484_v19  ;;  %v1488_v59 = vadd.f32 %v1487_v55, %v1151_v33 }
 0x132   : > { %1642 = vst [vmem:[%s2897_s14 + $0x10] sm:$0xff] %v1486_v58 }
 0x133   : > { %v1491_v44 = vpop.f32.mrb[4].mxu0  ;;  %1643 = vst [vmem:[%s2897_s14 + $0x18] sm:$0xff] %v1488_v59  ;;  %v1154_v62 = vpop.f32.mrb[4].mxu1 }
 0x134   : > { %v1493_v1 = vpop.f32.mrb[5].mxu0  ;;  %v1155_v2 = vadd.f32 %v1154_v62, %v2888_v47  ;;  %v1156_v18 = vpop.f32.mrb[5].mxu1 }
 0x135   : > { %v1495_v13 = vpop.f32.mrb[6].mxu0  ;;  %v1157_v4 = vadd.f32 %v1156_v18, %v2890_v51  ;;  %v1158_v7 = vpop.f32.mrb[6].mxu1 }
 0x136   : > { %v1497_v8 = vpop.f32.mrb[7].mxu0  ;;  %v1492_v52 = vadd.f32 %v1491_v44, %v1155_v2  ;;  %v1159_v42 = vadd.f32 %v1158_v7, %v2888_v47  ;;  %v1160_v25 = vpop.f32.mrb[7].mxu1 }
 0x137   : > { %v1494_v63 = vadd.f32 %v1493_v1, %v1157_v4  ;;  %v1161_v0 = vadd.f32 %v1160_v25, %v2890_v51 }
 0x138   : > { %1644 = vst [vmem:[%s2897_s14 + $0x20] sm:$0xff] %v1492_v52  ;;  %v1496_v20 = vadd.f32 %v1495_v13, %v1159_v42 }
 0x139   : > { %1645 = vst [vmem:[%s2897_s14 + $0x28] sm:$0xff] %v1494_v63  ;;  %v1498_v10 = vadd.f32 %v1497_v8, %v1161_v0 }
 0x13a   : > { %1646 = vst [vmem:[%s2897_s14 + $0x30] sm:$0xff] %v1496_v20 }
 0x13b   : > { %v1501_v45 = vpop.f32.mrb[8].mxu0  ;;  %1647 = vst [vmem:[%s2897_s14 + $0x38] sm:$0xff] %v1498_v10  ;;  %v1164_v48 = vpop.f32.mrb[8].mxu1 }
 0x13c   : > { %v1503_v12 = vpop.f32.mrb[9].mxu0  ;;  %v1165_v14 = vadd.f32 %v1164_v48, %v2888_v47  ;;  %v1166_v61 = vpop.f32.mrb[9].mxu1 }
 0x13d   : > { %v1505_v15 = vpop.f32.mrb[10].mxu0  ;;  %v1167_v16 = vadd.f32 %v1166_v61, %v2890_v51  ;;  %v1168_v21 = vpop.f32.mrb[10].mxu1 }
 0x13e   : > { %v1507_v49 = vpop.f32.mrb[11].mxu0  ;;  %v1502_v22 = vadd.f32 %v1501_v45, %v1165_v14  ;;  %v1169_v17 = vadd.f32 %v1168_v21, %v2888_v47  ;;  %v1170_v26 = vpop.f32.mrb[11].mxu1 }
 0x13f   : > { %v1504_v36 = vadd.f32 %v1503_v12, %v1167_v16  ;;  %v1171_v28 = vadd.f32 %v1170_v26, %v2890_v51 }
 0x140   : > { %1648 = vst [vmem:[%s2897_s14 + $0x40] sm:$0xff] %v1502_v22  ;;  %v1506_v29 = vadd.f32 %v1505_v15, %v1169_v17 }
 0x141   : > { %1649 = vst [vmem:[%s2897_s14 + $0x48] sm:$0xff] %v1504_v36  ;;  %v1508_v60 = vadd.f32 %v1507_v49, %v1171_v28 }
 0x142   : > { %1650 = vst [vmem:[%s2897_s14 + $0x50] sm:$0xff] %v1506_v29 }
 0x143   : > { %v1511_v30 = vpop.f32.mrb[12].mxu0  ;;  %1651 = vst [vmem:[%s2897_s14 + $0x58] sm:$0xff] %v1508_v60  ;;  %v1174_v31 = vpop.f32.mrb[12].mxu1 }
 0x144   : > { %v1513_v11 = vpop.f32.mrb[13].mxu0  ;;  %v1175_v32 = vadd.f32 %v1174_v31, %v2888_v47  ;;  %v1176_v37 = vpop.f32.mrb[13].mxu1 }
 0x145   : > { %v1515_v24 = vpop.f32.mrb[14].mxu0  ;;  %v1177_v35 = vadd.f32 %v1176_v37, %v2890_v51  ;;  %v1178_v39 = vpop.f32.mrb[14].mxu1 }
 0x146   : > { %v1517_v38 = vpop.f32.mrb[15].mxu0  ;;  %v1512_v57 = vadd.f32 %v1511_v30, %v1175_v32  ;;  %v1179_v3 = vadd.f32 %v1178_v39, %v2888_v47  ;;  %v1180_v40 = vpop.f32.mrb[15].mxu1 }
 0x147   : > { %v1514_v41 = vadd.f32 %v1513_v11, %v1177_v35  ;;  %v1181_v46 = vadd.f32 %v1180_v40, %v2890_v51 }
 0x148   : > { %1652 = vst [vmem:[%s2897_s14 + $0x60] sm:$0xff] %v1512_v57  ;;  %v1516_v43 = vadd.f32 %v1515_v24, %v1179_v3 }
 0x149   : > { %1653 = vst [vmem:[%s2897_s14 + $0x68] sm:$0xff] %v1514_v41  ;;  %v1518_v5 = vadd.f32 %v1517_v38, %v1181_v46 }
 0x14a   : > { %1654 = vst [vmem:[%s2897_s14 + $0x70] sm:$0xff] %v1516_v43 }
 0x14b   : > { %v1521_v6 = vpop.f32.mrb[16].mxu0  ;;  %1655 = vst [vmem:[%s2897_s14 + $0x78] sm:$0xff] %v1518_v5  ;;  %v1184_v50 = vpop.f32.mrb[16].mxu1 }
 0x14c   : > { %v1523_v23 = vpop.f32.mrb[17].mxu0  ;;  %v1185_v34 = vadd.f32 %v1184_v50, %v2888_v47  ;;  %v1186_v53 = vpop.f32.mrb[17].mxu1 }
 0x14d   : > { %v1525_v54 = vpop.f32.mrb[18].mxu0  ;;  %v1187_v55 = vadd.f32 %v1186_v53, %v2890_v51  ;;  %v1188_v56 = vpop.f32.mrb[18].mxu1 }
 0x14e   : > { %v1527_v9 = vpop.f32.mrb[19].mxu0  ;;  %v1522_v27 = vadd.f32 %v1521_v6, %v1185_v34  ;;  %v1189_v19 = vadd.f32 %v1188_v56, %v2888_v47  ;;  %v1190_v33 = vpop.f32.mrb[19].mxu1 }
 0x14f   : > { %v1524_v58 = vadd.f32 %v1523_v23, %v1187_v55  ;;  %v1191_v59 = vadd.f32 %v1190_v33, %v2890_v51 }
 0x150   : > { %1656 = vst [vmem:[%s2897_s14 + $0x80] sm:$0xff] %v1522_v27  ;;  %v1526_v44 = vadd.f32 %v1525_v54, %v1189_v19 }
 0x151   : > { %1657 = vst [vmem:[%s2897_s14 + $0x88] sm:$0xff] %v1524_v58  ;;  %v1528_v62 = vadd.f32 %v1527_v9, %v1191_v59 }
 0x152   : > { %1658 = vst [vmem:[%s2897_s14 + $0x90] sm:$0xff] %v1526_v44 }
 0x153   : > { %v1531_v1 = vpop.f32.mrb[20].mxu0  ;;  %1659 = vst [vmem:[%s2897_s14 + $0x98] sm:$0xff] %v1528_v62  ;;  %v1194_v2 = vpop.f32.mrb[20].mxu1 }
 0x154   : > { %v1533_v18 = vpop.f32.mrb[21].mxu0  ;;  %v1195_v13 = vadd.f32 %v1194_v2, %v2888_v47  ;;  %v1196_v4 = vpop.f32.mrb[21].mxu1 }
 0x155   : > { %v1535_v7 = vpop.f32.mrb[22].mxu0  ;;  %v1197_v8 = vadd.f32 %v1196_v4, %v2890_v51  ;;  %v1198_v52 = vpop.f32.mrb[22].mxu1 }
 0x156   : > { %v1537_v42 = vpop.f32.mrb[23].mxu0  ;;  %v1532_v25 = vadd.f32 %v1531_v1, %v1195_v13  ;;  %v1199_v63 = vadd.f32 %v1198_v52, %v2888_v47  ;;  %v1200_v0 = vpop.f32.mrb[23].mxu1 }
 0x157   : > { %v1534_v20 = vadd.f32 %v1533_v18, %v1197_v8  ;;  %v1201_v10 = vadd.f32 %v1200_v0, %v2890_v51 }
 0x158   : > { %1660 = vst [vmem:[%s2897_s14 + $0xa0] sm:$0xff] %v1532_v25  ;;  %v1536_v45 = vadd.f32 %v1535_v7, %v1199_v63 }
 0x159   : > { %1661 = vst [vmem:[%s2897_s14 + $0xa8] sm:$0xff] %v1534_v20  ;;  %v1538_v48 = vadd.f32 %v1537_v42, %v1201_v10 }
 0x15a   : > { %1662 = vst [vmem:[%s2897_s14 + $0xb0] sm:$0xff] %v1536_v45 }
 0x15b   : > { %v1541_v12 = vpop.f32.mrb[24].mxu0  ;;  %1663 = vst [vmem:[%s2897_s14 + $0xb8] sm:$0xff] %v1538_v48  ;;  %v1204_v14 = vpop.f32.mrb[24].mxu1 }
 0x15c   : > { %v1543_v61 = vpop.f32.mrb[25].mxu0  ;;  %v1205_v15 = vadd.f32 %v1204_v14, %v2888_v47  ;;  %v1206_v16 = vpop.f32.mrb[25].mxu1 }
 0x15d   : > { %v1545_v21 = vpop.f32.mrb[26].mxu0  ;;  %v1207_v49 = vadd.f32 %v1206_v16, %v2890_v51  ;;  %v1208_v22 = vpop.f32.mrb[26].mxu1 }
 0x15e   : > { %v1547_v17 = vpop.f32.mrb[27].mxu0  ;;  %v1542_v26 = vadd.f32 %v1541_v12, %v1205_v15  ;;  %v1209_v36 = vadd.f32 %v1208_v22, %v2888_v47  ;;  %v1210_v28 = vpop.f32.mrb[27].mxu1 }
 0x15f   : > { %v1544_v29 = vadd.f32 %v1543_v61, %v1207_v49  ;;  %v1211_v60 = vadd.f32 %v1210_v28, %v2890_v51 }
 0x160   : > { %1664 = vst [vmem:[%s2897_s14 + $0xc0] sm:$0xff] %v1542_v26  ;;  %v1546_v30 = vadd.f32 %v1545_v21, %v1209_v36 }
 0x161   : > { %1665 = vst [vmem:[%s2897_s14 + $0xc8] sm:$0xff] %v1544_v29  ;;  %v1548_v31 = vadd.f32 %v1547_v17, %v1211_v60 }
 0x162   : > { %1666 = vst [vmem:[%s2897_s14 + $0xd0] sm:$0xff] %v1546_v30 }
 0x163   : > { %v1551_v11 = vpop.f32.mrb[28].mxu0  ;;  %1667 = vst [vmem:[%s2897_s14 + $0xd8] sm:$0xff] %v1548_v31  ;;  %v1214_v32 = vpop.f32.mrb[28].mxu1 }
 0x164   : > { %v1553_v37 = vpop.f32.mrb[29].mxu0  ;;  %v1215_v24 = vadd.f32 %v1214_v32, %v2888_v47  ;;  %v1216_v35 = vpop.f32.mrb[29].mxu1 }
 0x165   : > { %v1555_v39 = vpop.f32.mrb[30].mxu0  ;;  %v1217_v38 = vadd.f32 %v1216_v35, %v2890_v51  ;;  %v1218_v57 = vpop.f32.mrb[30].mxu1 }
 0x166   : > { %v1557_v3 = vpop.f32.mrb[31].mxu0  ;;  %v1552_v40 = vadd.f32 %v1551_v11, %v1215_v24  ;;  %v1219_v41 = vadd.f32 %v1218_v57, %v2888_v47  ;;  %v1220_v46 = vpop.f32.mrb[31].mxu1 }
 0x167   : > { %v1554_v43 = vadd.f32 %v1553_v37, %v1217_v38  ;;  %v1221_v5 = vadd.f32 %v1220_v46, %v2890_v51 }
 0x168   : > { %1668 = vst [vmem:[%s2897_s14 + $0xe0] sm:$0xff] %v1552_v40  ;;  %v1556_v6 = vadd.f32 %v1555_v39, %v1219_v41 }
 0x169   : > { %1669 = vst [vmem:[%s2897_s14 + $0xe8] sm:$0xff] %v1554_v43  ;;  %v1558_v50 = vadd.f32 %v1557_v3, %v1221_v5 }
 0x16a   : > { %1670 = vst [vmem:[%s2897_s14 + $0xf0] sm:$0xff] %v1556_v6 }
 0x16b   : > { %v1561_v23 = vpop.f32.mrb[32].mxu0  ;;  %1671 = vst [vmem:[%s2897_s14 + $0xf8] sm:$0xff] %v1558_v50  ;;  %v1224_v34 = vpop.f32.mrb[32].mxu1 }
 0x16c   : > { %v1563_v53 = vpop.f32.mrb[33].mxu0  ;;  %v1225_v54 = vadd.f32 %v1224_v34, %v2888_v47  ;;  %v1226_v55 = vpop.f32.mrb[33].mxu1 }
 0x16d   : > { %v1565_v56 = vpop.f32.mrb[34].mxu0  ;;  %v1227_v9 = vadd.f32 %v1226_v55, %v2890_v51  ;;  %v1228_v27 = vpop.f32.mrb[34].mxu1 }
 0x16e   : > { %v1567_v19 = vpop.f32.mrb[35].mxu0  ;;  %v1562_v33 = vadd.f32 %v1561_v23, %v1225_v54  ;;  %v1229_v58 = vadd.f32 %v1228_v27, %v2888_v47  ;;  %v1230_v59 = vpop.f32.mrb[35].mxu1 }
 0x16f   : > { %v1564_v44 = vadd.f32 %v1563_v53, %v1227_v9  ;;  %v1231_v62 = vadd.f32 %v1230_v59, %v2890_v51 }
 0x170   : > { %1672 = vst [vmem:[%s2897_s14 + $0x100] sm:$0xff] %v1562_v33  ;;  %v1566_v1 = vadd.f32 %v1565_v56, %v1229_v58 }
 0x171   : > { %1673 = vst [vmem:[%s2897_s14 + $0x108] sm:$0xff] %v1564_v44  ;;  %v1568_v2 = vadd.f32 %v1567_v19, %v1231_v62 }
 0x172   : > { %1674 = vst [vmem:[%s2897_s14 + $0x110] sm:$0xff] %v1566_v1 }
 0x173   : > { %v1571_v18 = vpop.f32.mrb[36].mxu0  ;;  %1675 = vst [vmem:[%s2897_s14 + $0x118] sm:$0xff] %v1568_v2  ;;  %v1234_v13 = vpop.f32.mrb[36].mxu1 }
 0x174   : > { %v1573_v4 = vpop.f32.mrb[37].mxu0  ;;  %v1235_v7 = vadd.f32 %v1234_v13, %v2888_v47  ;;  %v1236_v8 = vpop.f32.mrb[37].mxu1 }
 0x175   : > { %v1575_v52 = vpop.f32.mrb[38].mxu0  ;;  %v1237_v42 = vadd.f32 %v1236_v8, %v2890_v51  ;;  %v1238_v25 = vpop.f32.mrb[38].mxu1 }
 0x176   : > { %v1577_v63 = vpop.f32.mrb[39].mxu0  ;;  %v1572_v0 = vadd.f32 %v1571_v18, %v1235_v7  ;;  %v1239_v20 = vadd.f32 %v1238_v25, %v2888_v47  ;;  %v1240_v10 = vpop.f32.mrb[39].mxu1 }
 0x177   : > { %v1574_v45 = vadd.f32 %v1573_v4, %v1237_v42  ;;  %v1241_v48 = vadd.f32 %v1240_v10, %v2890_v51 }
 0x178   : > { %1676 = vst [vmem:[%s2897_s14 + $0x120] sm:$0xff] %v1572_v0  ;;  %v1576_v12 = vadd.f32 %v1575_v52, %v1239_v20 }
 0x179   : > { %1677 = vst [vmem:[%s2897_s14 + $0x128] sm:$0xff] %v1574_v45  ;;  %v1578_v14 = vadd.f32 %v1577_v63, %v1241_v48 }
 0x17a   : > { %1678 = vst [vmem:[%s2897_s14 + $0x130] sm:$0xff] %v1576_v12 }
 0x17b   : > { %v1581_v61 = vpop.f32.mrb[40].mxu0  ;;  %1679 = vst [vmem:[%s2897_s14 + $0x138] sm:$0xff] %v1578_v14  ;;  %v1244_v15 = vpop.f32.mrb[40].mxu1 }
 0x17c   : > { %v1583_v16 = vpop.f32.mrb[41].mxu0  ;;  %v1245_v21 = vadd.f32 %v1244_v15, %v2888_v47  ;;  %v1246_v49 = vpop.f32.mrb[41].mxu1 }
 0x17d   : > { %v1585_v22 = vpop.f32.mrb[42].mxu0  ;;  %v1247_v17 = vadd.f32 %v1246_v49, %v2890_v51  ;;  %v1248_v26 = vpop.f32.mrb[42].mxu1 }
 0x17e   : > { %v1587_v36 = vpop.f32.mrb[43].mxu0  ;;  %v1582_v28 = vadd.f32 %v1581_v61, %v1245_v21  ;;  %v1249_v29 = vadd.f32 %v1248_v26, %v2888_v47  ;;  %v1250_v60 = vpop.f32.mrb[43].mxu1 }
 0x17f   : > { %v1584_v30 = vadd.f32 %v1583_v16, %v1247_v17  ;;  %v1251_v31 = vadd.f32 %v1250_v60, %v2890_v51 }
 0x180   : > { %1680 = vst [vmem:[%s2897_s14 + $0x140] sm:$0xff] %v1582_v28  ;;  %v1586_v11 = vadd.f32 %v1585_v22, %v1249_v29 }
 0x181   : > { %1681 = vst [vmem:[%s2897_s14 + $0x148] sm:$0xff] %v1584_v30  ;;  %v1588_v32 = vadd.f32 %v1587_v36, %v1251_v31 }
 0x182   : > { %1682 = vst [vmem:[%s2897_s14 + $0x150] sm:$0xff] %v1586_v11 }
 0x183   : > { %v1591_v37 = vpop.f32.mrb[44].mxu0  ;;  %1683 = vst [vmem:[%s2897_s14 + $0x158] sm:$0xff] %v1588_v32  ;;  %v1254_v24 = vpop.f32.mrb[44].mxu1 }
 0x184   : > { %v1593_v35 = vpop.f32.mrb[45].mxu0  ;;  %v1255_v39 = vadd.f32 %v1254_v24, %v2888_v47  ;;  %v1256_v38 = vpop.f32.mrb[45].mxu1 }
 0x185   : > { %v1595_v57 = vpop.f32.mrb[46].mxu0  ;;  %v1257_v3 = vadd.f32 %v1256_v38, %v2890_v51  ;;  %v1258_v40 = vpop.f32.mrb[46].mxu1 }
 0x186   : > { %v1597_v41 = vpop.f32.mrb[47].mxu0  ;;  %v1592_v46 = vadd.f32 %v1591_v37, %v1255_v39  ;;  %v1259_v43 = vadd.f32 %v1258_v40, %v2888_v47  ;;  %v1260_v5 = vpop.f32.mrb[47].mxu1 }
 0x187   : > { %v1594_v6 = vadd.f32 %v1593_v35, %v1257_v3  ;;  %v1261_v50 = vadd.f32 %v1260_v5, %v2890_v51 }
 0x188   : > { %1684 = vst [vmem:[%s2897_s14 + $0x160] sm:$0xff] %v1592_v46  ;;  %v1596_v23 = vadd.f32 %v1595_v57, %v1259_v43 }
 0x189   : > { %1685 = vst [vmem:[%s2897_s14 + $0x168] sm:$0xff] %v1594_v6  ;;  %v1598_v34 = vadd.f32 %v1597_v41, %v1261_v50 }
 0x18a   : > { %1686 = vst [vmem:[%s2897_s14 + $0x170] sm:$0xff] %v1596_v23 }
 0x18b   : > { %v1601_v53 = vpop.f32.mrb[48].mxu0  ;;  %1687 = vst [vmem:[%s2897_s14 + $0x178] sm:$0xff] %v1598_v34  ;;  %v1264_v54 = vpop.f32.mrb[48].mxu1 }
 0x18c   : > { %v1603_v55 = vpop.f32.mrb[49].mxu0  ;;  %v1265_v56 = vadd.f32 %v1264_v54, %v2888_v47  ;;  %v1266_v9 = vpop.f32.mrb[49].mxu1 }
 0x18d   : > { %v1605_v27 = vpop.f32.mrb[50].mxu0  ;;  %v1267_v19 = vadd.f32 %v1266_v9, %v2890_v51  ;;  %v1268_v33 = vpop.f32.mrb[50].mxu1 }
 0x18e   : > { %v1607_v58 = vpop.f32.mrb[51].mxu0  ;;  %v1602_v59 = vadd.f32 %v1601_v53, %v1265_v56  ;;  %v1269_v44 = vadd.f32 %v1268_v33, %v2888_v47  ;;  %v1270_v62 = vpop.f32.mrb[51].mxu1 }
 0x18f   : > { %v1604_v1 = vadd.f32 %v1603_v55, %v1267_v19  ;;  %v1271_v2 = vadd.f32 %v1270_v62, %v2890_v51 }
 0x190   : > { %1688 = vst [vmem:[%s2897_s14 + $0x180] sm:$0xff] %v1602_v59  ;;  %v1606_v18 = vadd.f32 %v1605_v27, %v1269_v44 }
 0x191   : > { %1689 = vst [vmem:[%s2897_s14 + $0x188] sm:$0xff] %v1604_v1  ;;  %v1608_v13 = vadd.f32 %v1607_v58, %v1271_v2 }
 0x192   : > { %1690 = vst [vmem:[%s2897_s14 + $0x190] sm:$0xff] %v1606_v18 }
 0x193   : > { %v1611_v4 = vpop.f32.mrb[52].mxu0  ;;  %1691 = vst [vmem:[%s2897_s14 + $0x198] sm:$0xff] %v1608_v13  ;;  %v1274_v7 = vpop.f32.mrb[52].mxu1 }
 0x194   : > { %v1613_v8 = vpop.f32.mrb[53].mxu0  ;;  %v1275_v52 = vadd.f32 %v1274_v7, %v2888_v47  ;;  %v1276_v42 = vpop.f32.mrb[53].mxu1 }
 0x195   : > { %v1615_v25 = vpop.f32.mrb[54].mxu0  ;;  %v1277_v63 = vadd.f32 %v1276_v42, %v2890_v51  ;;  %v1278_v0 = vpop.f32.mrb[54].mxu1 }
 0x196   : > { %v1617_v20 = vpop.f32.mrb[55].mxu0  ;;  %v1612_v10 = vadd.f32 %v1611_v4, %v1275_v52  ;;  %v1279_v45 = vadd.f32 %v1278_v0, %v2888_v47  ;;  %v1280_v48 = vpop.f32.mrb[55].mxu1 }
 0x197   : > { %v1614_v12 = vadd.f32 %v1613_v8, %v1277_v63  ;;  %v1281_v14 = vadd.f32 %v1280_v48, %v2890_v51 }
 0x198   : > { %1692 = vst [vmem:[%s2897_s14 + $0x1a0] sm:$0xff] %v1612_v10  ;;  %v1616_v61 = vadd.f32 %v1615_v25, %v1279_v45 }
 0x199   : > { %1693 = vst [vmem:[%s2897_s14 + $0x1a8] sm:$0xff] %v1614_v12  ;;  %v1618_v15 = vadd.f32 %v1617_v20, %v1281_v14 }
 0x19a   : > { %1694 = vst [vmem:[%s2897_s14 + $0x1b0] sm:$0xff] %v1616_v61 }
 0x19b   : > { %v1621_v16 = vpop.f32.mrb[56].mxu0  ;;  %1695 = vst [vmem:[%s2897_s14 + $0x1b8] sm:$0xff] %v1618_v15  ;;  %v1284_v21 = vpop.f32.mrb[56].mxu1 }
 0x19c   : > { %v1623_v49 = vpop.f32.mrb[57].mxu0  ;;  %v1285_v22 = vadd.f32 %v1284_v21, %v2888_v47  ;;  %v1286_v17 = vpop.f32.mrb[57].mxu1 }
 0x19d   : > { %v1625_v26 = vpop.f32.mrb[58].mxu0  ;;  %v1287_v36 = vadd.f32 %v1286_v17, %v2890_v51  ;;  %v1288_v28 = vpop.f32.mrb[58].mxu1 }
 0x19e   : > { %v1627_v29 = vpop.f32.mrb[59].mxu0  ;;  %v1622_v60 = vadd.f32 %v1621_v16, %v1285_v22  ;;  %v1289_v30 = vadd.f32 %v1288_v28, %v2888_v47  ;;  %v1290_v31 = vpop.f32.mrb[59].mxu1 }
 0x19f   : > { %v1624_v11 = vadd.f32 %v1623_v49, %v1287_v36  ;;  %v1291_v32 = vadd.f32 %v1290_v31, %v2890_v51 }
 0x1a0   : > { %1696 = vst [vmem:[%s2897_s14 + $0x1c0] sm:$0xff] %v1622_v60  ;;  %v1626_v37 = vadd.f32 %v1625_v26, %v1289_v30 }
 0x1a1   : > { %1697 = vst [vmem:[%s2897_s14 + $0x1c8] sm:$0xff] %v1624_v11  ;;  %v1628_v24 = vadd.f32 %v1627_v29, %v1291_v32 }
 0x1a2   : > { %1698 = vst [vmem:[%s2897_s14 + $0x1d0] sm:$0xff] %v1626_v37 }
 0x1a3   : > { %v1631_v35 = vpop.f32.mrb[60].mxu0  ;;  %1699 = vst [vmem:[%s2897_s14 + $0x1d8] sm:$0xff] %v1628_v24  ;;  %v1294_v39 = vpop.f32.mrb[60].mxu1 }
 0x1a4   : > { %v1633_v38 = vpop.f32.mrb[61].mxu0  ;;  %v1295_v57 = vadd.f32 %v1294_v39, %v2888_v47  ;;  %v1296_v3 = vpop.f32.mrb[61].mxu1 }
 0x1a5   : > { %v1635_v40 = vpop.f32.mrb[62].mxu0  ;;  %v1297_v41 = vadd.f32 %v1296_v3, %v2890_v51  ;;  %v1298_v46 = vpop.f32.mrb[62].mxu1 }
 0x1a6   : > { %v1637_v43 = vpop.f32.mrb[63].mxu0  ;;  %v1632_v5 = vadd.f32 %v1631_v35, %v1295_v57  ;;  %v1299_v6 = vadd.f32 %v1298_v46, %v2888_v47  ;;  %v1300_v50 = vpop.f32.mrb[63].mxu1 }
 0x1a7   : > { %v1634_v23 = vadd.f32 %v1633_v38, %v1297_v41  ;;  %v1301_v34 = vadd.f32 %v1300_v50, %v2890_v51 }
 0x1a8   : > { %1700 = vst [vmem:[%s2897_s14 + $0x1e0] sm:$0xff] %v1632_v5  ;;  %v1636_v53 = vadd.f32 %v1635_v40, %v1299_v6 }
 0x1a9   : > { %1701 = vst [vmem:[%s2897_s14 + $0x1e8] sm:$0xff] %v1634_v23  ;;  %v1638_v54 = vadd.f32 %v1637_v43, %v1301_v34 }
 0x1aa   : > { %1702 = vst [vmem:[%s2897_s14 + $0x1f0] sm:$0xff] %v1636_v53 }
 0x1ab   : > { %1703 = vst [vmem:[%s2897_s14 + $0x1f8] sm:$0xff] %v1638_v54 }
 0x1ac   : > { %s1892_s16 = sshll.u32 %s1833_s13, 12  ;;  %s1735_s22 = sshll.u32 %s2897_s14, 4  ;;  %s1736_s22 = int_to_ptr.vmem [resolvable:$true] %s1735_s22 }
 0x1ad   : > { %s1718_s25 = scalar_lea.hbm %s3070_s9, %s1892_s16  ;;  %s2239_s27 = smov 4096  }
 0x1ae   : > { %2100 = sst [smem:[#allocation7]] (%p2337_p6), %s2239_s27  ;;  %s2240_s26 = smov 16384  }
 0x1af   : > { %2101 = sst [smem:[#allocation7 + $0x1]] (%p2337_p6), %s2240_s26  ;;  %s2241_s19 = smov 16  }
 0x1b0   : > { %2102 = sst [smem:[#allocation7 + $0x2]] (%p2337_p6), %s2241_s19  ;;  %s2242_s28 = smov 256  }
 0x1b1   : > { %2103 = sst [smem:[#allocation7 + $0x3]] (%p2337_p6), %s2242_s28  ;;  %s2243_s13 = smov [#allocation6]  }
 0x1b2   : > { %2104 = sst [smem:[#allocation7 + $0x4]] (%p2337_p6), %s2242_s28  ;;  %s2244_s29 = smov 0  }
 0x1b3   : > { %2105 = sst [smem:[#allocation7 + $0x5]] (%p2337_p6), %s2241_s19 }
 0x1b4   : > { %2106 = dma.general (%p2337_p6), %s1736_s22, 8192, %s1718_s25, %s1705_s17, %s2243_s13, [#allocation7], %s2244_s29, 0  }
 0x1b5 PF: > { %p2112_p13 = scmp.ge.s32.totalorder %s2235_s12, 2  ;;  %s1763_s14 = sand.u32 1, %s2223_s30  }
 0x1b6   : > { %s1764_s16 = scalar_lea.sflag [#allocation5], %s1763_s14 }
 0x1b7   : > { %p2109_p0 = pnand %p2112_p13, %p2341_p8 }
 0x1b9   : > { %2218 = dma.done.wait (!%p2109_p0), %s1764_s16, 8192  }
 0x1ba   : > { %2220 = vsyncadd (!%p2109_p0), %s1764_s16, 4294959104  ;;  %p19_p1 = scmp.ge.s32.totalorder %s2318_s15, 6   ;;  %s3074_s30 = smov %s2227_s10 }
 0x1bb   : > { %s3075_s10 = smov %s2231_s11  ;;  %s3076_s11 = smov %s2331_s18 }
 0x1bc   : > { %s3077_s12 = smov %s2318_s15  ;;  %21 = sbr.rel (!%p19_p1) target bundleno = 3 (0x3), region = 188 }
 0x1c3   :  { %1769 = vsyncpa [#allocation5], 1 }
 0x1c4   :  { %1771 = vsyncpa [#allocation5 + $0x1], 1 }

</bundles_post_ra>
